<compile_context>
chip_gen: v6e
topology: v6e:2x2x1
jax: 0.10.0
libtpu: 0.0.40
codegen_flags: <defaults>
</compile_context>

<pallas_src>
from functools import partial

import jax
import jax.numpy as jnp
import numpy as np
from jax import lax
from jax.experimental import pallas as pl
from jax.experimental.pallas import tpu as pltpu


def _round_up(n, m):
    return ((n + m - 1) // m) * m


def _sigmoid(x):
    # sigmoid(x) = 0.5*(tanh(0.5x)+1): one EUP tanh; mul/add land on the 4-wide VALU.
    return 0.5 * jnp.tanh(0.5 * x) + 0.5


def lstm_ae_kernel(x_ref,                           # (1, T*Bt, D)  time-major batch tile, f32
                   wih_e_ref, whh_e_ref, b_e_ref,   # (D,4Hp) bf16, (Hp,4Hp) bf16, (1,4Hp) f32
                   wfuse_ref, bfuse_ref,            # (Hp,4Hp) bf16, (1,4Hp) f32 (latent o dec-in fused)
                   whh_d_ref,                       # (Hp,4Hp) bf16
                   wout_ref, bout_ref,              # (Hp,Dp) bf16, (1,Dp) f32
                   out_ref,                         # (1, T*Bt, Dp)
                   xproj_ref,                       # VMEM scratch (T*Bt, 4Hp) f32
                   hs_ref,                          # VMEM scratch (T*Bt, Hp)  f32
                   *, seq_len, bt, hidden_p):
    T, Bt, Hp = seq_len, bt, hidden_p
    unroll = min(T, 8)

    def cell(gates, c):
        # each gate occupies a full 128-lane slab -> vreg-aligned slices
        i = _sigmoid(gates[:, 0 * Hp:1 * Hp])
        f = _sigmoid(gates[:, 1 * Hp:2 * Hp])
        g = jnp.tanh(gates[:, 2 * Hp:3 * Hp])
        o = _sigmoid(gates[:, 3 * Hp:4 * Hp])
        c_new = f * c + i * g
        h_new = o * jnp.tanh(c_new)
        return h_new, c_new

    # ---- encoder: input projection hoisted out of the recurrence (bias folded once),
    #      parked in VMEM scratch so the loop carries only (h, c) ----
    x2d = x_ref[0].astype(jnp.bfloat16)                                 # (T*Bt, D)
    xproj_ref[...] = (jnp.dot(x2d, wih_e_ref[...],
                              preferred_element_type=jnp.float32)
                      + b_e_ref[...])                                    # (T*Bt, 4Hp)

    whh_e = whh_e_ref[...]
    h0 = jnp.zeros((Bt, Hp), jnp.float32)
    c0 = jnp.zeros((Bt, Hp), jnp.float32)

    def enc_step(t, carry):
        h, c = carry
        row = pl.multiple_of(t * Bt, 8)
        gates = xproj_ref[pl.ds(row, Bt), :] + jnp.dot(
            h.astype(jnp.bfloat16), whh_e, preferred_element_type=jnp.float32)
        return cell(gates, c)

    h_enc, _ = lax.fori_loop(0, T, enc_step, (h0, c0), unroll=unroll)

    # ---- latent Linear pre-composed with decoder input projection; same latent fed every
    #      decoder step -> hoisted to a single (Bt,Hp)@(Hp,4Hp) matmul ----
    gx = (jnp.dot(h_enc.astype(jnp.bfloat16), wfuse_ref[...],
                  preferred_element_type=jnp.float32) + bfuse_ref[...])  # (Bt, 4Hp)

    whh_d = whh_d_ref[...]

    def dec_step(t, carry):
        h, c = carry
        gates = gx + jnp.dot(h.astype(jnp.bfloat16), whh_d,
                             preferred_element_type=jnp.float32)
        h, c = cell(gates, c)
        row = pl.multiple_of(t * Bt, 8)
        hs_ref[pl.ds(row, Bt), :] = h                                    # sublane-aligned write
        return (h, c)

    lax.fori_loop(0, T, dec_step, (h0, c0), unroll=unroll)

    # ---- output projection hoisted: one matmul + one lane-dense store ----
    out = (jnp.dot(hs_ref[...].astype(jnp.bfloat16), wout_ref[...],
                   preferred_element_type=jnp.float32) + bout_ref[...])  # (T*Bt, Dp)
    out_ref[0] = out.astype(out_ref.dtype)


def _pad_gate_cols(w, H, Hp):
    """(..., 4H) -> (..., 4Hp): each PyTorch gate block padded to a full 128-lane slab."""
    parts = jnp.split(w, 4, axis=-1)
    pad = [(0, 0)] * (w.ndim - 1) + [(0, Hp - H)]
    return jnp.concatenate([jnp.pad(p, pad) for p in parts], axis=-1)


@jax.jit
def lstm_autoencoder(x, params):
    """Pallas forward pass. x: (B, T, D) float32 -> (B, T, D) float32."""
    B, T, D = x.shape
    H = params["whh_e"].shape[0]

    Hp = _round_up(H, 128)      # per-gate lane-aligned slab
    Dp = _round_up(D, 128)      # lane-dense output store

    # Batch tiling: target 256 rows per tile (fills MXU M on v6e/v7x; v5e does it in two
    # 128-row passes), sublane-aligned, minimal padding.
    bt_target = 256
    n_tiles = max(1, pl.cdiv(B, bt_target))
    Bt = _round_up(pl.cdiv(B, n_tiles), 8)
    Bp = Bt * n_tiles

    # --- input layout: (B,T,D) -> time-major, batch-padded, tiled (n_tiles, T*Bt, D) so each
    #     grid step gets a contiguous, sublane-aligned slab and per-step rows are contiguous.
    xt = jnp.transpose(x, (1, 0, 2))                          # (T, B, D)
    xt = jnp.pad(xt, ((0, 0), (0, Bp - B), (0, 0)))           # (T, Bp, D)
    x_r = (xt.reshape(T, n_tiles, Bt, D)
             .transpose(1, 0, 2, 3)
             .reshape(n_tiles, T * Bt, D))

    # --- weights: per-gate lane padding (zeros -> padded h/c lanes stay exactly 0),
    #     matmul operands cast to bf16, biases kept f32. ---
    f32, bf16 = jnp.float32, jnp.bfloat16
    wih_e = _pad_gate_cols(params["wih_e"], H, Hp).astype(bf16)                               # (D,4Hp)
    whh_e = jnp.pad(_pad_gate_cols(params["whh_e"], H, Hp), ((0, Hp - H), (0, 0))).astype(bf16)
    b_e = _pad_gate_cols(params["b_e"], H, Hp).astype(f32)                                    # (1,4Hp)

    # fuse latent Linear with decoder input projection (latent is never emitted)
    w_fuse = params["wlat"] @ params["wih_d"]                                                 # (H,4H)
    b_fuse = params["blat"] @ params["wih_d"] + params["b_d"]                                 # (1,4H)
    wfuse = jnp.pad(_pad_gate_cols(w_fuse, H, Hp), ((0, Hp - H), (0, 0))).astype(bf16)        # (Hp,4Hp)
    bfuse = _pad_gate_cols(b_fuse, H, Hp).astype(f32)                                         # (1,4Hp)

    whh_d = jnp.pad(_pad_gate_cols(params["whh_d"], H, Hp), ((0, Hp - H), (0, 0))).astype(bf16)
    wout = jnp.pad(params["wout"], ((0, Hp - H), (0, Dp - D))).astype(bf16)                   # (Hp,Dp)
    bout = jnp.pad(params["bout"], ((0, 0), (0, Dp - D))).astype(f32)                         # (1,Dp)

    weights = (wih_e, whh_e, b_e, wfuse, bfuse, whh_d, wout, bout)

    def resident(a):
        # same block for every grid step -> stays resident in VMEM, fetched once
        return pl.BlockSpec(a.shape, lambda i: (0,) * a.ndim)

    grid_spec = pltpu.PrefetchScalarGridSpec(
        num_scalar_prefetch=0,
        grid=(n_tiles,),
        in_specs=[pl.BlockSpec((1, T * Bt, D), lambda i: (i, 0, 0))]
                 + [resident(w) for w in weights],
        out_specs=pl.BlockSpec((1, T * Bt, Dp), lambda i: (i, 0, 0)),
        scratch_shapes=[pltpu.VMEM((T * Bt, 4 * Hp), jnp.float32),   # hoisted x projection
                        pltpu.VMEM((T * Bt, Hp), jnp.float32)],      # decoder hidden states
    )

    # VMEM budget: resident weights (x2 safety) + double-buffered x/out tiles + f32 scratches.
    weight_bytes = sum(int(w.size) * w.dtype.itemsize for w in weights)
    io_bytes = 2 * T * Bt * (D + Dp) * 4
    scratch_bytes = T * Bt * (4 * Hp + Hp) * 4
    est = 2 * weight_bytes + 2 * io_bytes + scratch_bytes + (8 << 20)
    vmem_limit = int(min(max(est, 32 << 20), 64 << 20))   # 64 MiB = v7x physical ceiling

    out_p = pl.pallas_call(
        partial(lstm_ae_kernel, seq_len=T, bt=Bt, hidden_p=Hp),
        out_shape=jax.ShapeDtypeStruct((n_tiles, T * Bt, Dp), x.dtype),
        grid_spec=grid_spec,
        compiler_params=pltpu.CompilerParams(
            dimension_semantics=("parallel",),          # megacore split on v7x
            vmem_limit_bytes=vmem_limit),
    )(x_r, *weights)

    # (n_tiles, T*Bt, Dp) -> (B, T, D): strip padding outside the kernel
    out = (out_p.reshape(n_tiles, T, Bt, Dp)
               .transpose(1, 0, 2, 3)
               .reshape(T, Bp, Dp)[:, :B, :D])
    return jnp.transpose(out, (1, 0, 2))


def init_params(key, input_dim, hidden_dim, latent_dim):
    """Deterministic synthetic init (PyTorch-style uniform(-1/sqrt(H), 1/sqrt(H)))."""
    ks = jax.random.split(key, 10)
    s = 1.0 / np.sqrt(hidden_dim)

    def u(k, shape, scale):
        return jax.random.uniform(k, shape, jnp.float32, -scale, scale)

    return {
        # encoder LSTM (weights pre-transposed to (in, 4H); gate order i,f,g,o)
        "wih_e": u(ks[0], (input_dim, 4 * hidden_dim), s),
        "whh_e": u(ks[1], (hidden_dim, 4 * hidden_dim), s),
        "b_e":   u(ks[2], (1, 4 * hidden_dim), s),           # b_ih + b_hh folded together
        # latent Linear: hidden -> latent
        "wlat":  u(ks[3], (hidden_dim, latent_dim), s),
        "blat":  u(ks[4], (1, latent_dim), s),
        # decoder LSTM
        "wih_d": u(ks[5], (latent_dim, 4 * hidden_dim), s),
        "whh_d": u(ks[6], (hidden_dim, 4 * hidden_dim), s),
        "b_d":   u(ks[7], (1, 4 * hidden_dim), s),
        # output Linear: hidden -> input_dim
        "wout":  u(ks[8], (hidden_dim, input_dim), s),
        "bout":  u(ks[9], (1, input_dim), s),
    }


def reference_forward(x, params):
    """Pure-JAX f32 reference with identical semantics, for a correctness check."""
    B, T, D = x.shape
    H = params["whh_e"].shape[0]

    def sigmoid(v):
        return 1.0 / (1.0 + jnp.exp(-v))

    def cell(gates, c):
        i = sigmoid(gates[:, 0 * H:1 * H])
        f = sigmoid(gates[:, 1 * H:2 * H])
        g = jnp.tanh(gates[:, 2 * H:3 * H])
        o = sigmoid(gates[:, 3 * H:4 * H])
        c = f * c + i * g
        return o * jnp.tanh(c), c

    h = jnp.zeros((B, H), jnp.float32)
    c = jnp.zeros((B, H), jnp.float32)
    for t in range(T):
        gates = x[:, t, :] @ params["wih_e"] + h @ params["whh_e"] + params["b_e"]
        h, c = cell(gates, c)

    lat = h @ params["wlat"] + params["blat"]
    gx = lat @ params["wih_d"] + params["b_d"]

    h = jnp.zeros((B, H), jnp.float32)
    c = jnp.zeros((B, H), jnp.float32)
    outs = []
    for t in range(T):
        gates = gx + h @ params["whh_d"]
        h, c = cell(gates, c)
        outs.append(h @ params["wout"] + params["bout"])
    return jnp.stack(outs, axis=1)


if __name__ == "__main__":
    B, T, D = 2, 8, 8          # batch, sequence length, input_dim (sensor channels)
    H, L = 64, 16              # hidden_dim, latent_dim (module defaults)

    key = jax.random.PRNGKey(0)
    kx, kp = jax.random.split(key)
    x = jax.random.normal(kx, (B, T, D), jnp.float32)
    params = init_params(kp, D, H, L)

    out = lstm_autoencoder(x, params)
    out = jax.block_until_ready(out)

    ref = jax.block_until_ready(reference_forward(x, params))
    assert out.shape == (B, T, D)
    # bf16 weights in the kernel (recurrent rounding compounds over T) -> 2e-2 tolerance
    assert np.allclose(np.asarray(out), np.asarray(ref), rtol=2e-2, atol=2e-2), (
        "pallas kernel deviates from JAX reference")

    print("KERNEL_OK")
</pallas_src>

<mosaic_0001>
module attributes {stable_mosaic.version = 11 : i64} {
  func.func @lstm_ae_kernel(%arg0: i32, %arg1: memref<1x64x8xf32, #tpu.memory_space<vmem>>, %arg2: memref<8x512xbf16, #tpu.memory_space<vmem>>, %arg3: memref<128x512xbf16, #tpu.memory_space<vmem>>, %arg4: memref<1x512xf32, #tpu.memory_space<vmem>>, %arg5: memref<128x512xbf16, #tpu.memory_space<vmem>>, %arg6: memref<1x512xf32, #tpu.memory_space<vmem>>, %arg7: memref<128x512xbf16, #tpu.memory_space<vmem>>, %arg8: memref<128x128xbf16, #tpu.memory_space<vmem>>, %arg9: memref<1x128xf32, #tpu.memory_space<vmem>>, %arg10: memref<1x64x128xf32, #tpu.memory_space<vmem>>, %arg11: memref<64x512xf32, #tpu.memory_space<vmem>>, %arg12: memref<64x128xf32, #tpu.memory_space<vmem>>) attributes {dimension_semantics = [#tpu.dimension_semantics<parallel>], iteration_bounds = array<i64: 1>, scalar_prefetch = 0 : i64, scratch_operands = 2 : i64, tpu.core_type = #tpu.core_type<tc>, window_params = [{transform_indices = @transform_0, window_bounds = array<i64: 1, 64, 8>}, {pipeline_mode = #tpu.pipeline_mode<synchronous>, transform_indices = @transform_1, window_bounds = array<i64: 8, 512>}, {pipeline_mode = #tpu.pipeline_mode<synchronous>, transform_indices = @transform_2, window_bounds = array<i64: 128, 512>}, {pipeline_mode = #tpu.pipeline_mode<synchronous>, transform_indices = @transform_3, window_bounds = array<i64: 1, 512>}, {pipeline_mode = #tpu.pipeline_mode<synchronous>, transform_indices = @transform_4, window_bounds = array<i64: 128, 512>}, {pipeline_mode = #tpu.pipeline_mode<synchronous>, transform_indices = @transform_5, window_bounds = array<i64: 1, 512>}, {pipeline_mode = #tpu.pipeline_mode<synchronous>, transform_indices = @transform_6, window_bounds = array<i64: 128, 512>}, {pipeline_mode = #tpu.pipeline_mode<synchronous>, transform_indices = @transform_7, window_bounds = array<i64: 128, 128>}, {pipeline_mode = #tpu.pipeline_mode<synchronous>, transform_indices = @transform_8, window_bounds = array<i64: 1, 128>}, {transform_indices = @transform_9, window_bounds = array<i64: 1, 64, 128>}]} {
    %c0 = arith.constant 0 : index
    %c0_0 = arith.constant 0 : index
    %c0_1 = arith.constant 0 : index
    %0 = vector.load %arg1[%c0, %c0_0, %c0_1] : memref<1x64x8xf32, #tpu.memory_space<vmem>>, vector<1x64x8xf32>
    %1 = vector.shape_cast %0 : vector<1x64x8xf32> to vector<64x8xf32>
    %2 = arith.truncf %1 : vector<64x8xf32> to vector<64x8xbf16>
    %c0_2 = arith.constant 0 : index
    %c0_3 = arith.constant 0 : index
    %3 = vector.load %arg2[%c0_2, %c0_3] : memref<8x512xbf16, #tpu.memory_space<vmem>>, vector<8x512xbf16>
    %cst = arith.constant dense<0.000000e+00> : vector<64x512xf32>
    %4 = tpu.matmul %2, %3, %cst {dimension_numbers = #tpu.dot_dimension_numbers<[1], [0], [0], [1], [0, 0, 1, 1], [], []>} : vector<64x8xbf16>, vector<8x512xbf16>, vector<64x512xf32> -> vector<64x512xf32>
    %c0_4 = arith.constant 0 : index
    %c0_5 = arith.constant 0 : index
    %5 = vector.load %arg4[%c0_4, %c0_5] : memref<1x512xf32, #tpu.memory_space<vmem>>, vector<1x512xf32>
    %6 = vector.broadcast %5 : vector<1x512xf32> to vector<64x512xf32>
    %7 = arith.addf %4, %6 : vector<64x512xf32>
    %c0_6 = arith.constant 0 : index
    %c0_7 = arith.constant 0 : index
    %8 = vector.load %arg11[%c0_6, %c0_7] : memref<64x512xf32, #tpu.memory_space<vmem>>, vector<64x512xf32>
    tpu.vector_store %arg11[%c0_6, %c0_7], %7 {strides = array<i32>} : memref<64x512xf32, #tpu.memory_space<vmem>>, vector<64x512xf32>,
    %c0_8 = arith.constant 0 : index
    %c0_9 = arith.constant 0 : index
    %9 = vector.load %arg3[%c0_8, %c0_9] : memref<128x512xbf16, #tpu.memory_space<vmem>>, vector<128x512xbf16>
    %cst_10 = arith.constant 0.000000e+00 : f32
    %10 = vector.broadcast %cst_10 : f32 to vector<8x128xf32>
    %cst_11 = arith.constant 0.000000e+00 : f32
    %11 = vector.broadcast %cst_11 : f32 to vector<8x128xf32>
    %c0_i32 = arith.constant 0 : i32
    %c8_i32 = arith.constant 8 : i32
    %12 = arith.muli %c0_i32, %c8_i32 : i32
    %13 = tpu.assume_multiple %12, 8 : i32
    %14 = arith.index_cast %13 : i32 to index
    %c0_12 = arith.constant 0 : index
    %15 = vector.load %arg11[%14, %c0_12] : memref<64x512xf32, #tpu.memory_space<vmem>>, vector<8x512xf32>
    %16 = arith.truncf %10 : vector<8x128xf32> to vector<8x128xbf16>
    %cst_13 = arith.constant dense<0.000000e+00> : vector<8x512xf32>
    %17 = tpu.matmul %16, %9, %cst_13 {dimension_numbers = #tpu.dot_dimension_numbers<[1], [0], [0], [1], [0, 0, 1, 1], [], []>} : vector<8x128xbf16>, vector<128x512xbf16>, vector<8x512xf32> -> vector<8x512xf32>
    %18 = arith.addf %15, %17 : vector<8x512xf32>
    %19 = vector.extract_strided_slice %18 {offsets = [0, 0], sizes = [8, 128], strides = [1, 1]} : vector<8x512xf32> to vector<8x128xf32>
    %cst_14 = arith.constant 5.000000e-01 : f32
    %20 = vector.broadcast %cst_14 : f32 to vector<8x128xf32>
    %21 = arith.mulf %20, %19 : vector<8x128xf32>
    %22 = math.tanh %21 : vector<8x128xf32>
    %cst_15 = arith.constant 5.000000e-01 : f32
    %23 = vector.broadcast %cst_15 : f32 to vector<8x128xf32>
    %24 = arith.mulf %23, %22 : vector<8x128xf32>
    %cst_16 = arith.constant 5.000000e-01 : f32
    %25 = vector.broadcast %cst_16 : f32 to vector<8x128xf32>
    %26 = arith.addf %24, %25 : vector<8x128xf32>
    %27 = vector.extract_strided_slice %18 {offsets = [0, 128], sizes = [8, 128], strides = [1, 1]} : vector<8x512xf32> to vector<8x128xf32>
    %cst_17 = arith.constant 5.000000e-01 : f32
    %28 = vector.broadcast %cst_17 : f32 to vector<8x128xf32>
    %29 = arith.mulf %28, %27 : vector<8x128xf32>
    %30 = math.tanh %29 : vector<8x128xf32>
    %cst_18 = arith.constant 5.000000e-01 : f32
    %31 = vector.broadcast %cst_18 : f32 to vector<8x128xf32>
    %32 = arith.mulf %31, %30 : vector<8x128xf32>
    %cst_19 = arith.constant 5.000000e-01 : f32
    %33 = vector.broadcast %cst_19 : f32 to vector<8x128xf32>
    %34 = arith.addf %32, %33 : vector<8x128xf32>
    %35 = vector.extract_strided_slice %18 {offsets = [0, 256], sizes = [8, 128], strides = [1, 1]} : vector<8x512xf32> to vector<8x128xf32>
    %36 = math.tanh %35 : vector<8x128xf32>
    %37 = vector.extract_strided_slice %18 {offsets = [0, 384], sizes = [8, 128], strides = [1, 1]} : vector<8x512xf32> to vector<8x128xf32>
    %cst_20 = arith.constant 5.000000e-01 : f32
    %38 = vector.broadcast %cst_20 : f32 to vector<8x128xf32>
    %39 = arith.mulf %38, %37 : vector<8x128xf32>
    %40 = math.tanh %39 : vector<8x128xf32>
    %cst_21 = arith.constant 5.000000e-01 : f32
    %41 = vector.broadcast %cst_21 : f32 to vector<8x128xf32>
    %42 = arith.mulf %41, %40 : vector<8x128xf32>
    %cst_22 = arith.constant 5.000000e-01 : f32
    %43 = vector.broadcast %cst_22 : f32 to vector<8x128xf32>
    %44 = arith.addf %42, %43 : vector<8x128xf32>
    %45 = arith.mulf %34, %11 : vector<8x128xf32>
    %46 = arith.mulf %26, %36 : vector<8x128xf32>
    %47 = arith.addf %45, %46 : vector<8x128xf32>
    %48 = math.tanh %47 : vector<8x128xf32>
    %49 = arith.mulf %44, %48 : vector<8x128xf32>
    %c1_i32 = arith.constant 1 : i32
    %c8_i32_23 = arith.constant 8 : i32
    %50 = arith.muli %c1_i32, %c8_i32_23 : i32
    %51 = tpu.assume_multiple %50, 8 : i32
    %52 = arith.index_cast %51 : i32 to index
    %c0_24 = arith.constant 0 : index
    %53 = vector.load %arg11[%52, %c0_24] : memref<64x512xf32, #tpu.memory_space<vmem>>, vector<8x512xf32>
    %54 = arith.truncf %49 : vector<8x128xf32> to vector<8x128xbf16>
    %cst_25 = arith.constant dense<0.000000e+00> : vector<8x512xf32>
    %55 = tpu.matmul %54, %9, %cst_25 {dimension_numbers = #tpu.dot_dimension_numbers<[1], [0], [0], [1], [0, 0, 1, 1], [], []>} : vector<8x128xbf16>, vector<128x512xbf16>, vector<8x512xf32> -> vector<8x512xf32>
    %56 = arith.addf %53, %55 : vector<8x512xf32>
    %57 = vector.extract_strided_slice %56 {offsets = [0, 0], sizes = [8, 128], strides = [1, 1]} : vector<8x512xf32> to vector<8x128xf32>
    %cst_26 = arith.constant 5.000000e-01 : f32
    %58 = vector.broadcast %cst_26 : f32 to vector<8x128xf32>
    %59 = arith.mulf %58, %57 : vector<8x128xf32>
    %60 = math.tanh %59 : vector<8x128xf32>
    %cst_27 = arith.constant 5.000000e-01 : f32
    %61 = vector.broadcast %cst_27 : f32 to vector<8x128xf32>
    %62 = arith.mulf %61, %60 : vector<8x128xf32>
    %cst_28 = arith.constant 5.000000e-01 : f32
    %63 = vector.broadcast %cst_28 : f32 to vector<8x128xf32>
    %64 = arith.addf %62, %63 : vector<8x128xf32>
    %65 = vector.extract_strided_slice %56 {offsets = [0, 128], sizes = [8, 128], strides = [1, 1]} : vector<8x512xf32> to vector<8x128xf32>
    %cst_29 = arith.constant 5.000000e-01 : f32
    %66 = vector.broadcast %cst_29 : f32 to vector<8x128xf32>
    %67 = arith.mulf %66, %65 : vector<8x128xf32>
    %68 = math.tanh %67 : vector<8x128xf32>
    %cst_30 = arith.constant 5.000000e-01 : f32
    %69 = vector.broadcast %cst_30 : f32 to vector<8x128xf32>
    %70 = arith.mulf %69, %68 : vector<8x128xf32>
    %cst_31 = arith.constant 5.000000e-01 : f32
    %71 = vector.broadcast %cst_31 : f32 to vector<8x128xf32>
    %72 = arith.addf %70, %71 : vector<8x128xf32>
    %73 = vector.extract_strided_slice %56 {offsets = [0, 256], sizes = [8, 128], strides = [1, 1]} : vector<8x512xf32> to vector<8x128xf32>
    %74 = math.tanh %73 : vector<8x128xf32>
    %75 = vector.extract_strided_slice %56 {offsets = [0, 384], sizes = [8, 128], strides = [1, 1]} : vector<8x512xf32> to vector<8x128xf32>
    %cst_32 = arith.constant 5.000000e-01 : f32
    %76 = vector.broadcast %cst_32 : f32 to vector<8x128xf32>
    %77 = arith.mulf %76, %75 : vector<8x128xf32>
    %78 = math.tanh %77 : vector<8x128xf32>
    %cst_33 = arith.constant 5.000000e-01 : f32
    %79 = vector.broadcast %cst_33 : f32 to vector<8x128xf32>
    %80 = arith.mulf %79, %78 : vector<8x128xf32>
    %cst_34 = arith.constant 5.000000e-01 : f32
    %81 = vector.broadcast %cst_34 : f32 to vector<8x128xf32>
    %82 = arith.addf %80, %81 : vector<8x128xf32>
    %83 = arith.mulf %72, %47 : vector<8x128xf32>
    %84 = arith.mulf %64, %74 : vector<8x128xf32>
    %85 = arith.addf %83, %84 : vector<8x128xf32>
    %86 = math.tanh %85 : vector<8x128xf32>
    %87 = arith.mulf %82, %86 : vector<8x128xf32>
    %c2_i32 = arith.constant 2 : i32
    %c8_i32_35 = arith.constant 8 : i32
    %88 = arith.muli %c2_i32, %c8_i32_35 : i32
    %89 = tpu.assume_multiple %88, 8 : i32
    %90 = arith.index_cast %89 : i32 to index
    %c0_36 = arith.constant 0 : index
    %91 = vector.load %arg11[%90, %c0_36] : memref<64x512xf32, #tpu.memory_space<vmem>>, vector<8x512xf32>
    %92 = arith.truncf %87 : vector<8x128xf32> to vector<8x128xbf16>
    %cst_37 = arith.constant dense<0.000000e+00> : vector<8x512xf32>
    %93 = tpu.matmul %92, %9, %cst_37 {dimension_numbers = #tpu.dot_dimension_numbers<[1], [0], [0], [1], [0, 0, 1, 1], [], []>} : vector<8x128xbf16>, vector<128x512xbf16>, vector<8x512xf32> -> vector<8x512xf32>
    %94 = arith.addf %91, %93 : vector<8x512xf32>
    %95 = vector.extract_strided_slice %94 {offsets = [0, 0], sizes = [8, 128], strides = [1, 1]} : vector<8x512xf32> to vector<8x128xf32>
    %cst_38 = arith.constant 5.000000e-01 : f32
    %96 = vector.broadcast %cst_38 : f32 to vector<8x128xf32>
    %97 = arith.mulf %96, %95 : vector<8x128xf32>
    %98 = math.tanh %97 : vector<8x128xf32>
    %cst_39 = arith.constant 5.000000e-01 : f32
    %99 = vector.broadcast %cst_39 : f32 to vector<8x128xf32>
    %100 = arith.mulf %99, %98 : vector<8x128xf32>
    %cst_40 = arith.constant 5.000000e-01 : f32
    %101 = vector.broadcast %cst_40 : f32 to vector<8x128xf32>
    %102 = arith.addf %100, %101 : vector<8x128xf32>
    %103 = vector.extract_strided_slice %94 {offsets = [0, 128], sizes = [8, 128], strides = [1, 1]} : vector<8x512xf32> to vector<8x128xf32>
    %cst_41 = arith.constant 5.000000e-01 : f32
    %104 = vector.broadcast %cst_41 : f32 to vector<8x128xf32>
    %105 = arith.mulf %104, %103 : vector<8x128xf32>
    %106 = math.tanh %105 : vector<8x128xf32>
    %cst_42 = arith.constant 5.000000e-01 : f32
    %107 = vector.broadcast %cst_42 : f32 to vector<8x128xf32>
    %108 = arith.mulf %107, %106 : vector<8x128xf32>
    %cst_43 = arith.constant 5.000000e-01 : f32
    %109 = vector.broadcast %cst_43 : f32 to vector<8x128xf32>
    %110 = arith.addf %108, %109 : vector<8x128xf32>
    %111 = vector.extract_strided_slice %94 {offsets = [0, 256], sizes = [8, 128], strides = [1, 1]} : vector<8x512xf32> to vector<8x128xf32>
    %112 = math.tanh %111 : vector<8x128xf32>
    %113 = vector.extract_strided_slice %94 {offsets = [0, 384], sizes = [8, 128], strides = [1, 1]} : vector<8x512xf32> to vector<8x128xf32>
    %cst_44 = arith.constant 5.000000e-01 : f32
    %114 = vector.broadcast %cst_44 : f32 to vector<8x128xf32>
    %115 = arith.mulf %114, %113 : vector<8x128xf32>
    %116 = math.tanh %115 : vector<8x128xf32>
    %cst_45 = arith.constant 5.000000e-01 : f32
    %117 = vector.broadcast %cst_45 : f32 to vector<8x128xf32>
    %118 = arith.mulf %117, %116 : vector<8x128xf32>
    %cst_46 = arith.constant 5.000000e-01 : f32
    %119 = vector.broadcast %cst_46 : f32 to vector<8x128xf32>
    %120 = arith.addf %118, %119 : vector<8x128xf32>
    %121 = arith.mulf %110, %85 : vector<8x128xf32>
    %122 = arith.mulf %102, %112 : vector<8x128xf32>
    %123 = arith.addf %121, %122 : vector<8x128xf32>
    %124 = math.tanh %123 : vector<8x128xf32>
    %125 = arith.mulf %120, %124 : vector<8x128xf32>
    %c3_i32 = arith.constant 3 : i32
    %c8_i32_47 = arith.constant 8 : i32
    %126 = arith.muli %c3_i32, %c8_i32_47 : i32
    %127 = tpu.assume_multiple %126, 8 : i32
    %128 = arith.index_cast %127 : i32 to index
    %c0_48 = arith.constant 0 : index
    %129 = vector.load %arg11[%128, %c0_48] : memref<64x512xf32, #tpu.memory_space<vmem>>, vector<8x512xf32>
    %130 = arith.truncf %125 : vector<8x128xf32> to vector<8x128xbf16>
    %cst_49 = arith.constant dense<0.000000e+00> : vector<8x512xf32>
    %131 = tpu.matmul %130, %9, %cst_49 {dimension_numbers = #tpu.dot_dimension_numbers<[1], [0], [0], [1], [0, 0, 1, 1], [], []>} : vector<8x128xbf16>, vector<128x512xbf16>, vector<8x512xf32> -> vector<8x512xf32>
    %132 = arith.addf %129, %131 : vector<8x512xf32>
    %133 = vector.extract_strided_slice %132 {offsets = [0, 0], sizes = [8, 128], strides = [1, 1]} : vector<8x512xf32> to vector<8x128xf32>
    %cst_50 = arith.constant 5.000000e-01 : f32
    %134 = vector.broadcast %cst_50 : f32 to vector<8x128xf32>
    %135 = arith.mulf %134, %133 : vector<8x128xf32>
    %136 = math.tanh %135 : vector<8x128xf32>
    %cst_51 = arith.constant 5.000000e-01 : f32
    %137 = vector.broadcast %cst_51 : f32 to vector<8x128xf32>
    %138 = arith.mulf %137, %136 : vector<8x128xf32>
    %cst_52 = arith.constant 5.000000e-01 : f32
    %139 = vector.broadcast %cst_52 : f32 to vector<8x128xf32>
    %140 = arith.addf %138, %139 : vector<8x128xf32>
    %141 = vector.extract_strided_slice %132 {offsets = [0, 128], sizes = [8, 128], strides = [1, 1]} : vector<8x512xf32> to vector<8x128xf32>
    %cst_53 = arith.constant 5.000000e-01 : f32
    %142 = vector.broadcast %cst_53 : f32 to vector<8x128xf32>
    %143 = arith.mulf %142, %141 : vector<8x128xf32>
    %144 = math.tanh %143 : vector<8x128xf32>
    %cst_54 = arith.constant 5.000000e-01 : f32
    %145 = vector.broadcast %cst_54 : f32 to vector<8x128xf32>
    %146 = arith.mulf %145, %144 : vector<8x128xf32>
    %cst_55 = arith.constant 5.000000e-01 : f32
    %147 = vector.broadcast %cst_55 : f32 to vector<8x128xf32>
    %148 = arith.addf %146, %147 : vector<8x128xf32>
    %149 = vector.extract_strided_slice %132 {offsets = [0, 256], sizes = [8, 128], strides = [1, 1]} : vector<8x512xf32> to vector<8x128xf32>
    %150 = math.tanh %149 : vector<8x128xf32>
    %151 = vector.extract_strided_slice %132 {offsets = [0, 384], sizes = [8, 128], strides = [1, 1]} : vector<8x512xf32> to vector<8x128xf32>
    %cst_56 = arith.constant 5.000000e-01 : f32
    %152 = vector.broadcast %cst_56 : f32 to vector<8x128xf32>
    %153 = arith.mulf %152, %151 : vector<8x128xf32>
    %154 = math.tanh %153 : vector<8x128xf32>
    %cst_57 = arith.constant 5.000000e-01 : f32
    %155 = vector.broadcast %cst_57 : f32 to vector<8x128xf32>
    %156 = arith.mulf %155, %154 : vector<8x128xf32>
    %cst_58 = arith.constant 5.000000e-01 : f32
    %157 = vector.broadcast %cst_58 : f32 to vector<8x128xf32>
    %158 = arith.addf %156, %157 : vector<8x128xf32>
    %159 = arith.mulf %148, %123 : vector<8x128xf32>
    %160 = arith.mulf %140, %150 : vector<8x128xf32>
    %161 = arith.addf %159, %160 : vector<8x128xf32>
    %162 = math.tanh %161 : vector<8x128xf32>
    %163 = arith.mulf %158, %162 : vector<8x128xf32>
    %c4_i32 = arith.constant 4 : i32
    %c8_i32_59 = arith.constant 8 : i32
    %164 = arith.muli %c4_i32, %c8_i32_59 : i32
    %165 = tpu.assume_multiple %164, 8 : i32
    %166 = arith.index_cast %165 : i32 to index
    %c0_60 = arith.constant 0 : index
    %167 = vector.load %arg11[%166, %c0_60] : memref<64x512xf32, #tpu.memory_space<vmem>>, vector<8x512xf32>
    %168 = arith.truncf %163 : vector<8x128xf32> to vector<8x128xbf16>
    %cst_61 = arith.constant dense<0.000000e+00> : vector<8x512xf32>
    %169 = tpu.matmul %168, %9, %cst_61 {dimension_numbers = #tpu.dot_dimension_numbers<[1], [0], [0], [1], [0, 0, 1, 1], [], []>} : vector<8x128xbf16>, vector<128x512xbf16>, vector<8x512xf32> -> vector<8x512xf32>
    %170 = arith.addf %167, %169 : vector<8x512xf32>
    %171 = vector.extract_strided_slice %170 {offsets = [0, 0], sizes = [8, 128], strides = [1, 1]} : vector<8x512xf32> to vector<8x128xf32>
    %cst_62 = arith.constant 5.000000e-01 : f32
    %172 = vector.broadcast %cst_62 : f32 to vector<8x128xf32>
    %173 = arith.mulf %172, %171 : vector<8x128xf32>
    %174 = math.tanh %173 : vector<8x128xf32>
    %cst_63 = arith.constant 5.000000e-01 : f32
    %175 = vector.broadcast %cst_63 : f32 to vector<8x128xf32>
    %176 = arith.mulf %175, %174 : vector<8x128xf32>
    %cst_64 = arith.constant 5.000000e-01 : f32
    %177 = vector.broadcast %cst_64 : f32 to vector<8x128xf32>
    %178 = arith.addf %176, %177 : vector<8x128xf32>
    %179 = vector.extract_strided_slice %170 {offsets = [0, 128], sizes = [8, 128], strides = [1, 1]} : vector<8x512xf32> to vector<8x128xf32>
    %cst_65 = arith.constant 5.000000e-01 : f32
    %180 = vector.broadcast %cst_65 : f32 to vector<8x128xf32>
    %181 = arith.mulf %180, %179 : vector<8x128xf32>
    %182 = math.tanh %181 : vector<8x128xf32>
    %cst_66 = arith.constant 5.000000e-01 : f32
    %183 = vector.broadcast %cst_66 : f32 to vector<8x128xf32>
    %184 = arith.mulf %183, %182 : vector<8x128xf32>
    %cst_67 = arith.constant 5.000000e-01 : f32
    %185 = vector.broadcast %cst_67 : f32 to vector<8x128xf32>
    %186 = arith.addf %184, %185 : vector<8x128xf32>
    %187 = vector.extract_strided_slice %170 {offsets = [0, 256], sizes = [8, 128], strides = [1, 1]} : vector<8x512xf32> to vector<8x128xf32>
    %188 = math.tanh %187 : vector<8x128xf32>
    %189 = vector.extract_strided_slice %170 {offsets = [0, 384], sizes = [8, 128], strides = [1, 1]} : vector<8x512xf32> to vector<8x128xf32>
    %cst_68 = arith.constant 5.000000e-01 : f32
    %190 = vector.broadcast %cst_68 : f32 to vector<8x128xf32>
    %191 = arith.mulf %190, %189 : vector<8x128xf32>
    %192 = math.tanh %191 : vector<8x128xf32>
    %cst_69 = arith.constant 5.000000e-01 : f32
    %193 = vector.broadcast %cst_69 : f32 to vector<8x128xf32>
    %194 = arith.mulf %193, %192 : vector<8x128xf32>
    %cst_70 = arith.constant 5.000000e-01 : f32
    %195 = vector.broadcast %cst_70 : f32 to vector<8x128xf32>
    %196 = arith.addf %194, %195 : vector<8x128xf32>
    %197 = arith.mulf %186, %161 : vector<8x128xf32>
    %198 = arith.mulf %178, %188 : vector<8x128xf32>
    %199 = arith.addf %197, %198 : vector<8x128xf32>
    %200 = math.tanh %199 : vector<8x128xf32>
    %201 = arith.mulf %196, %200 : vector<8x128xf32>
    %c5_i32 = arith.constant 5 : i32
    %c8_i32_71 = arith.constant 8 : i32
    %202 = arith.muli %c5_i32, %c8_i32_71 : i32
    %203 = tpu.assume_multiple %202, 8 : i32
    %204 = arith.index_cast %203 : i32 to index
    %c0_72 = arith.constant 0 : index
    %205 = vector.load %arg11[%204, %c0_72] : memref<64x512xf32, #tpu.memory_space<vmem>>, vector<8x512xf32>
    %206 = arith.truncf %201 : vector<8x128xf32> to vector<8x128xbf16>
    %cst_73 = arith.constant dense<0.000000e+00> : vector<8x512xf32>
    %207 = tpu.matmul %206, %9, %cst_73 {dimension_numbers = #tpu.dot_dimension_numbers<[1], [0], [0], [1], [0, 0, 1, 1], [], []>} : vector<8x128xbf16>, vector<128x512xbf16>, vector<8x512xf32> -> vector<8x512xf32>
    %208 = arith.addf %205, %207 : vector<8x512xf32>
    %209 = vector.extract_strided_slice %208 {offsets = [0, 0], sizes = [8, 128], strides = [1, 1]} : vector<8x512xf32> to vector<8x128xf32>
    %cst_74 = arith.constant 5.000000e-01 : f32
    %210 = vector.broadcast %cst_74 : f32 to vector<8x128xf32>
    %211 = arith.mulf %210, %209 : vector<8x128xf32>
    %212 = math.tanh %211 : vector<8x128xf32>
    %cst_75 = arith.constant 5.000000e-01 : f32
    %213 = vector.broadcast %cst_75 : f32 to vector<8x128xf32>
    %214 = arith.mulf %213, %212 : vector<8x128xf32>
    %cst_76 = arith.constant 5.000000e-01 : f32
    %215 = vector.broadcast %cst_76 : f32 to vector<8x128xf32>
    %216 = arith.addf %214, %215 : vector<8x128xf32>
    %217 = vector.extract_strided_slice %208 {offsets = [0, 128], sizes = [8, 128], strides = [1, 1]} : vector<8x512xf32> to vector<8x128xf32>
    %cst_77 = arith.constant 5.000000e-01 : f32
    %218 = vector.broadcast %cst_77 : f32 to vector<8x128xf32>
    %219 = arith.mulf %218, %217 : vector<8x128xf32>
    %220 = math.tanh %219 : vector<8x128xf32>
    %cst_78 = arith.constant 5.000000e-01 : f32
    %221 = vector.broadcast %cst_78 : f32 to vector<8x128xf32>
    %222 = arith.mulf %221, %220 : vector<8x128xf32>
    %cst_79 = arith.constant 5.000000e-01 : f32
    %223 = vector.broadcast %cst_79 : f32 to vector<8x128xf32>
    %224 = arith.addf %222, %223 : vector<8x128xf32>
    %225 = vector.extract_strided_slice %208 {offsets = [0, 256], sizes = [8, 128], strides = [1, 1]} : vector<8x512xf32> to vector<8x128xf32>
    %226 = math.tanh %225 : vector<8x128xf32>
    %227 = vector.extract_strided_slice %208 {offsets = [0, 384], sizes = [8, 128], strides = [1, 1]} : vector<8x512xf32> to vector<8x128xf32>
    %cst_80 = arith.constant 5.000000e-01 : f32
    %228 = vector.broadcast %cst_80 : f32 to vector<8x128xf32>
    %229 = arith.mulf %228, %227 : vector<8x128xf32>
    %230 = math.tanh %229 : vector<8x128xf32>
    %cst_81 = arith.constant 5.000000e-01 : f32
    %231 = vector.broadcast %cst_81 : f32 to vector<8x128xf32>
    %232 = arith.mulf %231, %230 : vector<8x128xf32>
    %cst_82 = arith.constant 5.000000e-01 : f32
    %233 = vector.broadcast %cst_82 : f32 to vector<8x128xf32>
    %234 = arith.addf %232, %233 : vector<8x128xf32>
    %235 = arith.mulf %224, %199 : vector<8x128xf32>
    %236 = arith.mulf %216, %226 : vector<8x128xf32>
    %237 = arith.addf %235, %236 : vector<8x128xf32>
    %238 = math.tanh %237 : vector<8x128xf32>
    %239 = arith.mulf %234, %238 : vector<8x128xf32>
    %c6_i32 = arith.constant 6 : i32
    %c8_i32_83 = arith.constant 8 : i32
    %240 = arith.muli %c6_i32, %c8_i32_83 : i32
    %241 = tpu.assume_multiple %240, 8 : i32
    %242 = arith.index_cast %241 : i32 to index
    %c0_84 = arith.constant 0 : index
    %243 = vector.load %arg11[%242, %c0_84] : memref<64x512xf32, #tpu.memory_space<vmem>>, vector<8x512xf32>
    %244 = arith.truncf %239 : vector<8x128xf32> to vector<8x128xbf16>
    %cst_85 = arith.constant dense<0.000000e+00> : vector<8x512xf32>
    %245 = tpu.matmul %244, %9, %cst_85 {dimension_numbers = #tpu.dot_dimension_numbers<[1], [0], [0], [1], [0, 0, 1, 1], [], []>} : vector<8x128xbf16>, vector<128x512xbf16>, vector<8x512xf32> -> vector<8x512xf32>
    %246 = arith.addf %243, %245 : vector<8x512xf32>
    %247 = vector.extract_strided_slice %246 {offsets = [0, 0], sizes = [8, 128], strides = [1, 1]} : vector<8x512xf32> to vector<8x128xf32>
    %cst_86 = arith.constant 5.000000e-01 : f32
    %248 = vector.broadcast %cst_86 : f32 to vector<8x128xf32>
    %249 = arith.mulf %248, %247 : vector<8x128xf32>
    %250 = math.tanh %249 : vector<8x128xf32>
    %cst_87 = arith.constant 5.000000e-01 : f32
    %251 = vector.broadcast %cst_87 : f32 to vector<8x128xf32>
    %252 = arith.mulf %251, %250 : vector<8x128xf32>
    %cst_88 = arith.constant 5.000000e-01 : f32
    %253 = vector.broadcast %cst_88 : f32 to vector<8x128xf32>
    %254 = arith.addf %252, %253 : vector<8x128xf32>
    %255 = vector.extract_strided_slice %246 {offsets = [0, 128], sizes = [8, 128], strides = [1, 1]} : vector<8x512xf32> to vector<8x128xf32>
    %cst_89 = arith.constant 5.000000e-01 : f32
    %256 = vector.broadcast %cst_89 : f32 to vector<8x128xf32>
    %257 = arith.mulf %256, %255 : vector<8x128xf32>
    %258 = math.tanh %257 : vector<8x128xf32>
    %cst_90 = arith.constant 5.000000e-01 : f32
    %259 = vector.broadcast %cst_90 : f32 to vector<8x128xf32>
    %260 = arith.mulf %259, %258 : vector<8x128xf32>
    %cst_91 = arith.constant 5.000000e-01 : f32
    %261 = vector.broadcast %cst_91 : f32 to vector<8x128xf32>
    %262 = arith.addf %260, %261 : vector<8x128xf32>
    %263 = vector.extract_strided_slice %246 {offsets = [0, 256], sizes = [8, 128], strides = [1, 1]} : vector<8x512xf32> to vector<8x128xf32>
    %264 = math.tanh %263 : vector<8x128xf32>
    %265 = vector.extract_strided_slice %246 {offsets = [0, 384], sizes = [8, 128], strides = [1, 1]} : vector<8x512xf32> to vector<8x128xf32>
    %cst_92 = arith.constant 5.000000e-01 : f32
    %266 = vector.broadcast %cst_92 : f32 to vector<8x128xf32>
    %267 = arith.mulf %266, %265 : vector<8x128xf32>
    %268 = math.tanh %267 : vector<8x128xf32>
    %cst_93 = arith.constant 5.000000e-01 : f32
    %269 = vector.broadcast %cst_93 : f32 to vector<8x128xf32>
    %270 = arith.mulf %269, %268 : vector<8x128xf32>
    %cst_94 = arith.constant 5.000000e-01 : f32
    %271 = vector.broadcast %cst_94 : f32 to vector<8x128xf32>
    %272 = arith.addf %270, %271 : vector<8x128xf32>
    %273 = arith.mulf %262, %237 : vector<8x128xf32>
    %274 = arith.mulf %254, %264 : vector<8x128xf32>
    %275 = arith.addf %273, %274 : vector<8x128xf32>
    %276 = math.tanh %275 : vector<8x128xf32>
    %277 = arith.mulf %272, %276 : vector<8x128xf32>
    %c7_i32 = arith.constant 7 : i32
    %c8_i32_95 = arith.constant 8 : i32
    %278 = arith.muli %c7_i32, %c8_i32_95 : i32
    %279 = tpu.assume_multiple %278, 8 : i32
    %280 = arith.index_cast %279 : i32 to index
    %c0_96 = arith.constant 0 : index
    %281 = vector.load %arg11[%280, %c0_96] : memref<64x512xf32, #tpu.memory_space<vmem>>, vector<8x512xf32>
    %282 = arith.truncf %277 : vector<8x128xf32> to vector<8x128xbf16>
    %cst_97 = arith.constant dense<0.000000e+00> : vector<8x512xf32>
    %283 = tpu.matmul %282, %9, %cst_97 {dimension_numbers = #tpu.dot_dimension_numbers<[1], [0], [0], [1], [0, 0, 1, 1], [], []>} : vector<8x128xbf16>, vector<128x512xbf16>, vector<8x512xf32> -> vector<8x512xf32>
    %284 = arith.addf %281, %283 : vector<8x512xf32>
    %285 = vector.extract_strided_slice %284 {offsets = [0, 0], sizes = [8, 128], strides = [1, 1]} : vector<8x512xf32> to vector<8x128xf32>
    %cst_98 = arith.constant 5.000000e-01 : f32
    %286 = vector.broadcast %cst_98 : f32 to vector<8x128xf32>
    %287 = arith.mulf %286, %285 : vector<8x128xf32>
    %288 = math.tanh %287 : vector<8x128xf32>
    %cst_99 = arith.constant 5.000000e-01 : f32
    %289 = vector.broadcast %cst_99 : f32 to vector<8x128xf32>
    %290 = arith.mulf %289, %288 : vector<8x128xf32>
    %cst_100 = arith.constant 5.000000e-01 : f32
    %291 = vector.broadcast %cst_100 : f32 to vector<8x128xf32>
    %292 = arith.addf %290, %291 : vector<8x128xf32>
    %293 = vector.extract_strided_slice %284 {offsets = [0, 128], sizes = [8, 128], strides = [1, 1]} : vector<8x512xf32> to vector<8x128xf32>
    %cst_101 = arith.constant 5.000000e-01 : f32
    %294 = vector.broadcast %cst_101 : f32 to vector<8x128xf32>
    %295 = arith.mulf %294, %293 : vector<8x128xf32>
    %296 = math.tanh %295 : vector<8x128xf32>
    %cst_102 = arith.constant 5.000000e-01 : f32
    %297 = vector.broadcast %cst_102 : f32 to vector<8x128xf32>
    %298 = arith.mulf %297, %296 : vector<8x128xf32>
    %cst_103 = arith.constant 5.000000e-01 : f32
    %299 = vector.broadcast %cst_103 : f32 to vector<8x128xf32>
    %300 = arith.addf %298, %299 : vector<8x128xf32>
    %301 = vector.extract_strided_slice %284 {offsets = [0, 256], sizes = [8, 128], strides = [1, 1]} : vector<8x512xf32> to vector<8x128xf32>
    %302 = math.tanh %301 : vector<8x128xf32>
    %303 = vector.extract_strided_slice %284 {offsets = [0, 384], sizes = [8, 128], strides = [1, 1]} : vector<8x512xf32> to vector<8x128xf32>
    %cst_104 = arith.constant 5.000000e-01 : f32
    %304 = vector.broadcast %cst_104 : f32 to vector<8x128xf32>
    %305 = arith.mulf %304, %303 : vector<8x128xf32>
    %306 = math.tanh %305 : vector<8x128xf32>
    %cst_105 = arith.constant 5.000000e-01 : f32
    %307 = vector.broadcast %cst_105 : f32 to vector<8x128xf32>
    %308 = arith.mulf %307, %306 : vector<8x128xf32>
    %cst_106 = arith.constant 5.000000e-01 : f32
    %309 = vector.broadcast %cst_106 : f32 to vector<8x128xf32>
    %310 = arith.addf %308, %309 : vector<8x128xf32>
    %311 = arith.mulf %300, %275 : vector<8x128xf32>
    %312 = arith.mulf %292, %302 : vector<8x128xf32>
    %313 = arith.addf %311, %312 : vector<8x128xf32>
    %314 = math.tanh %313 : vector<8x128xf32>
    %315 = arith.mulf %310, %314 : vector<8x128xf32>
    %c8_i32_107 = arith.constant 8 : i32
    %316 = arith.truncf %315 : vector<8x128xf32> to vector<8x128xbf16>
    %c0_108 = arith.constant 0 : index
    %c0_109 = arith.constant 0 : index
    %317 = vector.load %arg5[%c0_108, %c0_109] : memref<128x512xbf16, #tpu.memory_space<vmem>>, vector<128x512xbf16>
    %cst_110 = arith.constant dense<0.000000e+00> : vector<8x512xf32>
    %318 = tpu.matmul %316, %317, %cst_110 {dimension_numbers = #tpu.dot_dimension_numbers<[1], [0], [0], [1], [0, 0, 1, 1], [], []>} : vector<8x128xbf16>, vector<128x512xbf16>, vector<8x512xf32> -> vector<8x512xf32>
    %c0_111 = arith.constant 0 : index
    %c0_112 = arith.constant 0 : index
    %319 = vector.load %arg6[%c0_111, %c0_112] : memref<1x512xf32, #tpu.memory_space<vmem>>, vector<1x512xf32>
    %320 = vector.broadcast %319 : vector<1x512xf32> to vector<8x512xf32>
    %321 = arith.addf %318, %320 : vector<8x512xf32>
    %c0_113 = arith.constant 0 : index
    %c0_114 = arith.constant 0 : index
    %322 = vector.load %arg7[%c0_113, %c0_114] : memref<128x512xbf16, #tpu.memory_space<vmem>>, vector<128x512xbf16>
    %c0_i32_115 = arith.constant 0 : i32
    %323 = arith.truncf %10 : vector<8x128xf32> to vector<8x128xbf16>
    %cst_116 = arith.constant dense<0.000000e+00> : vector<8x512xf32>
    %324 = tpu.matmul %323, %322, %cst_116 {dimension_numbers = #tpu.dot_dimension_numbers<[1], [0], [0], [1], [0, 0, 1, 1], [], []>} : vector<8x128xbf16>, vector<128x512xbf16>, vector<8x512xf32> -> vector<8x512xf32>
    %325 = arith.addf %321, %324 : vector<8x512xf32>
    %326 = vector.extract_strided_slice %325 {offsets = [0, 0], sizes = [8, 128], strides = [1, 1]} : vector<8x512xf32> to vector<8x128xf32>
    %cst_117 = arith.constant 5.000000e-01 : f32
    %327 = vector.broadcast %cst_117 : f32 to vector<8x128xf32>
    %328 = arith.mulf %327, %326 : vector<8x128xf32>
    %329 = math.tanh %328 : vector<8x128xf32>
    %cst_118 = arith.constant 5.000000e-01 : f32
    %330 = vector.broadcast %cst_118 : f32 to vector<8x128xf32>
    %331 = arith.mulf %330, %329 : vector<8x128xf32>
    %cst_119 = arith.constant 5.000000e-01 : f32
    %332 = vector.broadcast %cst_119 : f32 to vector<8x128xf32>
    %333 = arith.addf %331, %332 : vector<8x128xf32>
    %334 = vector.extract_strided_slice %325 {offsets = [0, 128], sizes = [8, 128], strides = [1, 1]} : vector<8x512xf32> to vector<8x128xf32>
    %cst_120 = arith.constant 5.000000e-01 : f32
    %335 = vector.broadcast %cst_120 : f32 to vector<8x128xf32>
    %336 = arith.mulf %335, %334 : vector<8x128xf32>
    %337 = math.tanh %336 : vector<8x128xf32>
    %cst_121 = arith.constant 5.000000e-01 : f32
    %338 = vector.broadcast %cst_121 : f32 to vector<8x128xf32>
    %339 = arith.mulf %338, %337 : vector<8x128xf32>
    %cst_122 = arith.constant 5.000000e-01 : f32
    %340 = vector.broadcast %cst_122 : f32 to vector<8x128xf32>
    %341 = arith.addf %339, %340 : vector<8x128xf32>
    %342 = vector.extract_strided_slice %325 {offsets = [0, 256], sizes = [8, 128], strides = [1, 1]} : vector<8x512xf32> to vector<8x128xf32>
    %343 = math.tanh %342 : vector<8x128xf32>
    %344 = vector.extract_strided_slice %325 {offsets = [0, 384], sizes = [8, 128], strides = [1, 1]} : vector<8x512xf32> to vector<8x128xf32>
    %cst_123 = arith.constant 5.000000e-01 : f32
    %345 = vector.broadcast %cst_123 : f32 to vector<8x128xf32>
    %346 = arith.mulf %345, %344 : vector<8x128xf32>
    %347 = math.tanh %346 : vector<8x128xf32>
    %cst_124 = arith.constant 5.000000e-01 : f32
    %348 = vector.broadcast %cst_124 : f32 to vector<8x128xf32>
    %349 = arith.mulf %348, %347 : vector<8x128xf32>
    %cst_125 = arith.constant 5.000000e-01 : f32
    %350 = vector.broadcast %cst_125 : f32 to vector<8x128xf32>
    %351 = arith.addf %349, %350 : vector<8x128xf32>
    %352 = arith.mulf %341, %11 : vector<8x128xf32>
    %353 = arith.mulf %333, %343 : vector<8x128xf32>
    %354 = arith.addf %352, %353 : vector<8x128xf32>
    %355 = math.tanh %354 : vector<8x128xf32>
    %356 = arith.mulf %351, %355 : vector<8x128xf32>
    %c8_i32_126 = arith.constant 8 : i32
    %357 = arith.muli %c0_i32_115, %c8_i32_126 : i32
    %358 = tpu.assume_multiple %357, 8 : i32
    %359 = arith.index_cast %358 : i32 to index
    %c0_127 = arith.constant 0 : index
    %360 = vector.load %arg12[%359, %c0_127] : memref<64x128xf32, #tpu.memory_space<vmem>>, vector<8x128xf32>
    tpu.vector_store %arg12[%359, %c0_127], %356 {strides = array<i32>} : memref<64x128xf32, #tpu.memory_space<vmem>>, vector<8x128xf32>,
    %c1_i32_128 = arith.constant 1 : i32
    %361 = arith.truncf %356 : vector<8x128xf32> to vector<8x128xbf16>
    %cst_129 = arith.constant dense<0.000000e+00> : vector<8x512xf32>
    %362 = tpu.matmul %361, %322, %cst_129 {dimension_numbers = #tpu.dot_dimension_numbers<[1], [0], [0], [1], [0, 0, 1, 1], [], []>} : vector<8x128xbf16>, vector<128x512xbf16>, vector<8x512xf32> -> vector<8x512xf32>
    %363 = arith.addf %321, %362 : vector<8x512xf32>
    %364 = vector.extract_strided_slice %363 {offsets = [0, 0], sizes = [8, 128], strides = [1, 1]} : vector<8x512xf32> to vector<8x128xf32>
    %cst_130 = arith.constant 5.000000e-01 : f32
    %365 = vector.broadcast %cst_130 : f32 to vector<8x128xf32>
    %366 = arith.mulf %365, %364 : vector<8x128xf32>
    %367 = math.tanh %366 : vector<8x128xf32>
    %cst_131 = arith.constant 5.000000e-01 : f32
    %368 = vector.broadcast %cst_131 : f32 to vector<8x128xf32>
    %369 = arith.mulf %368, %367 : vector<8x128xf32>
    %cst_132 = arith.constant 5.000000e-01 : f32
    %370 = vector.broadcast %cst_132 : f32 to vector<8x128xf32>
    %371 = arith.addf %369, %370 : vector<8x128xf32>
    %372 = vector.extract_strided_slice %363 {offsets = [0, 128], sizes = [8, 128], strides = [1, 1]} : vector<8x512xf32> to vector<8x128xf32>
    %cst_133 = arith.constant 5.000000e-01 : f32
    %373 = vector.broadcast %cst_133 : f32 to vector<8x128xf32>
    %374 = arith.mulf %373, %372 : vector<8x128xf32>
    %375 = math.tanh %374 : vector<8x128xf32>
    %cst_134 = arith.constant 5.000000e-01 : f32
    %376 = vector.broadcast %cst_134 : f32 to vector<8x128xf32>
    %377 = arith.mulf %376, %375 : vector<8x128xf32>
    %cst_135 = arith.constant 5.000000e-01 : f32
    %378 = vector.broadcast %cst_135 : f32 to vector<8x128xf32>
    %379 = arith.addf %377, %378 : vector<8x128xf32>
    %380 = vector.extract_strided_slice %363 {offsets = [0, 256], sizes = [8, 128], strides = [1, 1]} : vector<8x512xf32> to vector<8x128xf32>
    %381 = math.tanh %380 : vector<8x128xf32>
    %382 = vector.extract_strided_slice %363 {offsets = [0, 384], sizes = [8, 128], strides = [1, 1]} : vector<8x512xf32> to vector<8x128xf32>
    %cst_136 = arith.constant 5.000000e-01 : f32
    %383 = vector.broadcast %cst_136 : f32 to vector<8x128xf32>
    %384 = arith.mulf %383, %382 : vector<8x128xf32>
    %385 = math.tanh %384 : vector<8x128xf32>
    %cst_137 = arith.constant 5.000000e-01 : f32
    %386 = vector.broadcast %cst_137 : f32 to vector<8x128xf32>
    %387 = arith.mulf %386, %385 : vector<8x128xf32>
    %cst_138 = arith.constant 5.000000e-01 : f32
    %388 = vector.broadcast %cst_138 : f32 to vector<8x128xf32>
    %389 = arith.addf %387, %388 : vector<8x128xf32>
    %390 = arith.mulf %379, %354 : vector<8x128xf32>
    %391 = arith.mulf %371, %381 : vector<8x128xf32>
    %392 = arith.addf %390, %391 : vector<8x128xf32>
    %393 = math.tanh %392 : vector<8x128xf32>
    %394 = arith.mulf %389, %393 : vector<8x128xf32>
    %c8_i32_139 = arith.constant 8 : i32
    %395 = arith.muli %c1_i32_128, %c8_i32_139 : i32
    %396 = tpu.assume_multiple %395, 8 : i32
    %397 = arith.index_cast %396 : i32 to index
    %c0_140 = arith.constant 0 : index
    %398 = vector.load %arg12[%397, %c0_140] : memref<64x128xf32, #tpu.memory_space<vmem>>, vector<8x128xf32>
    tpu.vector_store %arg12[%397, %c0_140], %394 {strides = array<i32>} : memref<64x128xf32, #tpu.memory_space<vmem>>, vector<8x128xf32>,
    %c2_i32_141 = arith.constant 2 : i32
    %399 = arith.truncf %394 : vector<8x128xf32> to vector<8x128xbf16>
    %cst_142 = arith.constant dense<0.000000e+00> : vector<8x512xf32>
    %400 = tpu.matmul %399, %322, %cst_142 {dimension_numbers = #tpu.dot_dimension_numbers<[1], [0], [0], [1], [0, 0, 1, 1], [], []>} : vector<8x128xbf16>, vector<128x512xbf16>, vector<8x512xf32> -> vector<8x512xf32>
    %401 = arith.addf %321, %400 : vector<8x512xf32>
    %402 = vector.extract_strided_slice %401 {offsets = [0, 0], sizes = [8, 128], strides = [1, 1]} : vector<8x512xf32> to vector<8x128xf32>
    %cst_143 = arith.constant 5.000000e-01 : f32
    %403 = vector.broadcast %cst_143 : f32 to vector<8x128xf32>
    %404 = arith.mulf %403, %402 : vector<8x128xf32>
    %405 = math.tanh %404 : vector<8x128xf32>
    %cst_144 = arith.constant 5.000000e-01 : f32
    %406 = vector.broadcast %cst_144 : f32 to vector<8x128xf32>
    %407 = arith.mulf %406, %405 : vector<8x128xf32>
    %cst_145 = arith.constant 5.000000e-01 : f32
    %408 = vector.broadcast %cst_145 : f32 to vector<8x128xf32>
    %409 = arith.addf %407, %408 : vector<8x128xf32>
    %410 = vector.extract_strided_slice %401 {offsets = [0, 128], sizes = [8, 128], strides = [1, 1]} : vector<8x512xf32> to vector<8x128xf32>
    %cst_146 = arith.constant 5.000000e-01 : f32
    %411 = vector.broadcast %cst_146 : f32 to vector<8x128xf32>
    %412 = arith.mulf %411, %410 : vector<8x128xf32>
    %413 = math.tanh %412 : vector<8x128xf32>
    %cst_147 = arith.constant 5.000000e-01 : f32
    %414 = vector.broadcast %cst_147 : f32 to vector<8x128xf32>
    %415 = arith.mulf %414, %413 : vector<8x128xf32>
    %cst_148 = arith.constant 5.000000e-01 : f32
    %416 = vector.broadcast %cst_148 : f32 to vector<8x128xf32>
    %417 = arith.addf %415, %416 : vector<8x128xf32>
    %418 = vector.extract_strided_slice %401 {offsets = [0, 256], sizes = [8, 128], strides = [1, 1]} : vector<8x512xf32> to vector<8x128xf32>
    %419 = math.tanh %418 : vector<8x128xf32>
    %420 = vector.extract_strided_slice %401 {offsets = [0, 384], sizes = [8, 128], strides = [1, 1]} : vector<8x512xf32> to vector<8x128xf32>
    %cst_149 = arith.constant 5.000000e-01 : f32
    %421 = vector.broadcast %cst_149 : f32 to vector<8x128xf32>
    %422 = arith.mulf %421, %420 : vector<8x128xf32>
    %423 = math.tanh %422 : vector<8x128xf32>
    %cst_150 = arith.constant 5.000000e-01 : f32
    %424 = vector.broadcast %cst_150 : f32 to vector<8x128xf32>
    %425 = arith.mulf %424, %423 : vector<8x128xf32>
    %cst_151 = arith.constant 5.000000e-01 : f32
    %426 = vector.broadcast %cst_151 : f32 to vector<8x128xf32>
    %427 = arith.addf %425, %426 : vector<8x128xf32>
    %428 = arith.mulf %417, %392 : vector<8x128xf32>
    %429 = arith.mulf %409, %419 : vector<8x128xf32>
    %430 = arith.addf %428, %429 : vector<8x128xf32>
    %431 = math.tanh %430 : vector<8x128xf32>
    %432 = arith.mulf %427, %431 : vector<8x128xf32>
    %c8_i32_152 = arith.constant 8 : i32
    %433 = arith.muli %c2_i32_141, %c8_i32_152 : i32
    %434 = tpu.assume_multiple %433, 8 : i32
    %435 = arith.index_cast %434 : i32 to index
    %c0_153 = arith.constant 0 : index
    %436 = vector.load %arg12[%435, %c0_153] : memref<64x128xf32, #tpu.memory_space<vmem>>, vector<8x128xf32>
    tpu.vector_store %arg12[%435, %c0_153], %432 {strides = array<i32>} : memref<64x128xf32, #tpu.memory_space<vmem>>, vector<8x128xf32>,
    %c3_i32_154 = arith.constant 3 : i32
    %437 = arith.truncf %432 : vector<8x128xf32> to vector<8x128xbf16>
    %cst_155 = arith.constant dense<0.000000e+00> : vector<8x512xf32>
    %438 = tpu.matmul %437, %322, %cst_155 {dimension_numbers = #tpu.dot_dimension_numbers<[1], [0], [0], [1], [0, 0, 1, 1], [], []>} : vector<8x128xbf16>, vector<128x512xbf16>, vector<8x512xf32> -> vector<8x512xf32>
    %439 = arith.addf %321, %438 : vector<8x512xf32>
    %440 = vector.extract_strided_slice %439 {offsets = [0, 0], sizes = [8, 128], strides = [1, 1]} : vector<8x512xf32> to vector<8x128xf32>
    %cst_156 = arith.constant 5.000000e-01 : f32
    %441 = vector.broadcast %cst_156 : f32 to vector<8x128xf32>
    %442 = arith.mulf %441, %440 : vector<8x128xf32>
    %443 = math.tanh %442 : vector<8x128xf32>
    %cst_157 = arith.constant 5.000000e-01 : f32
    %444 = vector.broadcast %cst_157 : f32 to vector<8x128xf32>
    %445 = arith.mulf %444, %443 : vector<8x128xf32>
    %cst_158 = arith.constant 5.000000e-01 : f32
    %446 = vector.broadcast %cst_158 : f32 to vector<8x128xf32>
    %447 = arith.addf %445, %446 : vector<8x128xf32>
    %448 = vector.extract_strided_slice %439 {offsets = [0, 128], sizes = [8, 128], strides = [1, 1]} : vector<8x512xf32> to vector<8x128xf32>
    %cst_159 = arith.constant 5.000000e-01 : f32
    %449 = vector.broadcast %cst_159 : f32 to vector<8x128xf32>
    %450 = arith.mulf %449, %448 : vector<8x128xf32>
    %451 = math.tanh %450 : vector<8x128xf32>
    %cst_160 = arith.constant 5.000000e-01 : f32
    %452 = vector.broadcast %cst_160 : f32 to vector<8x128xf32>
    %453 = arith.mulf %452, %451 : vector<8x128xf32>
    %cst_161 = arith.constant 5.000000e-01 : f32
    %454 = vector.broadcast %cst_161 : f32 to vector<8x128xf32>
    %455 = arith.addf %453, %454 : vector<8x128xf32>
    %456 = vector.extract_strided_slice %439 {offsets = [0, 256], sizes = [8, 128], strides = [1, 1]} : vector<8x512xf32> to vector<8x128xf32>
    %457 = math.tanh %456 : vector<8x128xf32>
    %458 = vector.extract_strided_slice %439 {offsets = [0, 384], sizes = [8, 128], strides = [1, 1]} : vector<8x512xf32> to vector<8x128xf32>
    %cst_162 = arith.constant 5.000000e-01 : f32
    %459 = vector.broadcast %cst_162 : f32 to vector<8x128xf32>
    %460 = arith.mulf %459, %458 : vector<8x128xf32>
    %461 = math.tanh %460 : vector<8x128xf32>
    %cst_163 = arith.constant 5.000000e-01 : f32
    %462 = vector.broadcast %cst_163 : f32 to vector<8x128xf32>
    %463 = arith.mulf %462, %461 : vector<8x128xf32>
    %cst_164 = arith.constant 5.000000e-01 : f32
    %464 = vector.broadcast %cst_164 : f32 to vector<8x128xf32>
    %465 = arith.addf %463, %464 : vector<8x128xf32>
    %466 = arith.mulf %455, %430 : vector<8x128xf32>
    %467 = arith.mulf %447, %457 : vector<8x128xf32>
    %468 = arith.addf %466, %467 : vector<8x128xf32>
    %469 = math.tanh %468 : vector<8x128xf32>
    %470 = arith.mulf %465, %469 : vector<8x128xf32>
    %c8_i32_165 = arith.constant 8 : i32
    %471 = arith.muli %c3_i32_154, %c8_i32_165 : i32
    %472 = tpu.assume_multiple %471, 8 : i32
    %473 = arith.index_cast %472 : i32 to index
    %c0_166 = arith.constant 0 : index
    %474 = vector.load %arg12[%473, %c0_166] : memref<64x128xf32, #tpu.memory_space<vmem>>, vector<8x128xf32>
    tpu.vector_store %arg12[%473, %c0_166], %470 {strides = array<i32>} : memref<64x128xf32, #tpu.memory_space<vmem>>, vector<8x128xf32>,
    %c4_i32_167 = arith.constant 4 : i32
    %475 = arith.truncf %470 : vector<8x128xf32> to vector<8x128xbf16>
    %cst_168 = arith.constant dense<0.000000e+00> : vector<8x512xf32>
    %476 = tpu.matmul %475, %322, %cst_168 {dimension_numbers = #tpu.dot_dimension_numbers<[1], [0], [0], [1], [0, 0, 1, 1], [], []>} : vector<8x128xbf16>, vector<128x512xbf16>, vector<8x512xf32> -> vector<8x512xf32>
    %477 = arith.addf %321, %476 : vector<8x512xf32>
    %478 = vector.extract_strided_slice %477 {offsets = [0, 0], sizes = [8, 128], strides = [1, 1]} : vector<8x512xf32> to vector<8x128xf32>
    %cst_169 = arith.constant 5.000000e-01 : f32
    %479 = vector.broadcast %cst_169 : f32 to vector<8x128xf32>
    %480 = arith.mulf %479, %478 : vector<8x128xf32>
    %481 = math.tanh %480 : vector<8x128xf32>
    %cst_170 = arith.constant 5.000000e-01 : f32
    %482 = vector.broadcast %cst_170 : f32 to vector<8x128xf32>
    %483 = arith.mulf %482, %481 : vector<8x128xf32>
    %cst_171 = arith.constant 5.000000e-01 : f32
    %484 = vector.broadcast %cst_171 : f32 to vector<8x128xf32>
    %485 = arith.addf %483, %484 : vector<8x128xf32>
    %486 = vector.extract_strided_slice %477 {offsets = [0, 128], sizes = [8, 128], strides = [1, 1]} : vector<8x512xf32> to vector<8x128xf32>
    %cst_172 = arith.constant 5.000000e-01 : f32
    %487 = vector.broadcast %cst_172 : f32 to vector<8x128xf32>
    %488 = arith.mulf %487, %486 : vector<8x128xf32>
    %489 = math.tanh %488 : vector<8x128xf32>
    %cst_173 = arith.constant 5.000000e-01 : f32
    %490 = vector.broadcast %cst_173 : f32 to vector<8x128xf32>
    %491 = arith.mulf %490, %489 : vector<8x128xf32>
    %cst_174 = arith.constant 5.000000e-01 : f32
    %492 = vector.broadcast %cst_174 : f32 to vector<8x128xf32>
    %493 = arith.addf %491, %492 : vector<8x128xf32>
    %494 = vector.extract_strided_slice %477 {offsets = [0, 256], sizes = [8, 128], strides = [1, 1]} : vector<8x512xf32> to vector<8x128xf32>
    %495 = math.tanh %494 : vector<8x128xf32>
    %496 = vector.extract_strided_slice %477 {offsets = [0, 384], sizes = [8, 128], strides = [1, 1]} : vector<8x512xf32> to vector<8x128xf32>
    %cst_175 = arith.constant 5.000000e-01 : f32
    %497 = vector.broadcast %cst_175 : f32 to vector<8x128xf32>
    %498 = arith.mulf %497, %496 : vector<8x128xf32>
    %499 = math.tanh %498 : vector<8x128xf32>
    %cst_176 = arith.constant 5.000000e-01 : f32
    %500 = vector.broadcast %cst_176 : f32 to vector<8x128xf32>
    %501 = arith.mulf %500, %499 : vector<8x128xf32>
    %cst_177 = arith.constant 5.000000e-01 : f32
    %502 = vector.broadcast %cst_177 : f32 to vector<8x128xf32>
    %503 = arith.addf %501, %502 : vector<8x128xf32>
    %504 = arith.mulf %493, %468 : vector<8x128xf32>
    %505 = arith.mulf %485, %495 : vector<8x128xf32>
    %506 = arith.addf %504, %505 : vector<8x128xf32>
    %507 = math.tanh %506 : vector<8x128xf32>
    %508 = arith.mulf %503, %507 : vector<8x128xf32>
    %c8_i32_178 = arith.constant 8 : i32
    %509 = arith.muli %c4_i32_167, %c8_i32_178 : i32
    %510 = tpu.assume_multiple %509, 8 : i32
    %511 = arith.index_cast %510 : i32 to index
    %c0_179 = arith.constant 0 : index
    %512 = vector.load %arg12[%511, %c0_179] : memref<64x128xf32, #tpu.memory_space<vmem>>, vector<8x128xf32>
    tpu.vector_store %arg12[%511, %c0_179], %508 {strides = array<i32>} : memref<64x128xf32, #tpu.memory_space<vmem>>, vector<8x128xf32>,
    %c5_i32_180 = arith.constant 5 : i32
    %513 = arith.truncf %508 : vector<8x128xf32> to vector<8x128xbf16>
    %cst_181 = arith.constant dense<0.000000e+00> : vector<8x512xf32>
    %514 = tpu.matmul %513, %322, %cst_181 {dimension_numbers = #tpu.dot_dimension_numbers<[1], [0], [0], [1], [0, 0, 1, 1], [], []>} : vector<8x128xbf16>, vector<128x512xbf16>, vector<8x512xf32> -> vector<8x512xf32>
    %515 = arith.addf %321, %514 : vector<8x512xf32>
    %516 = vector.extract_strided_slice %515 {offsets = [0, 0], sizes = [8, 128], strides = [1, 1]} : vector<8x512xf32> to vector<8x128xf32>
    %cst_182 = arith.constant 5.000000e-01 : f32
    %517 = vector.broadcast %cst_182 : f32 to vector<8x128xf32>
    %518 = arith.mulf %517, %516 : vector<8x128xf32>
    %519 = math.tanh %518 : vector<8x128xf32>
    %cst_183 = arith.constant 5.000000e-01 : f32
    %520 = vector.broadcast %cst_183 : f32 to vector<8x128xf32>
    %521 = arith.mulf %520, %519 : vector<8x128xf32>
    %cst_184 = arith.constant 5.000000e-01 : f32
    %522 = vector.broadcast %cst_184 : f32 to vector<8x128xf32>
    %523 = arith.addf %521, %522 : vector<8x128xf32>
    %524 = vector.extract_strided_slice %515 {offsets = [0, 128], sizes = [8, 128], strides = [1, 1]} : vector<8x512xf32> to vector<8x128xf32>
    %cst_185 = arith.constant 5.000000e-01 : f32
    %525 = vector.broadcast %cst_185 : f32 to vector<8x128xf32>
    %526 = arith.mulf %525, %524 : vector<8x128xf32>
    %527 = math.tanh %526 : vector<8x128xf32>
    %cst_186 = arith.constant 5.000000e-01 : f32
    %528 = vector.broadcast %cst_186 : f32 to vector<8x128xf32>
    %529 = arith.mulf %528, %527 : vector<8x128xf32>
    %cst_187 = arith.constant 5.000000e-01 : f32
    %530 = vector.broadcast %cst_187 : f32 to vector<8x128xf32>
    %531 = arith.addf %529, %530 : vector<8x128xf32>
    %532 = vector.extract_strided_slice %515 {offsets = [0, 256], sizes = [8, 128], strides = [1, 1]} : vector<8x512xf32> to vector<8x128xf32>
    %533 = math.tanh %532 : vector<8x128xf32>
    %534 = vector.extract_strided_slice %515 {offsets = [0, 384], sizes = [8, 128], strides = [1, 1]} : vector<8x512xf32> to vector<8x128xf32>
    %cst_188 = arith.constant 5.000000e-01 : f32
    %535 = vector.broadcast %cst_188 : f32 to vector<8x128xf32>
    %536 = arith.mulf %535, %534 : vector<8x128xf32>
    %537 = math.tanh %536 : vector<8x128xf32>
    %cst_189 = arith.constant 5.000000e-01 : f32
    %538 = vector.broadcast %cst_189 : f32 to vector<8x128xf32>
    %539 = arith.mulf %538, %537 : vector<8x128xf32>
    %cst_190 = arith.constant 5.000000e-01 : f32
    %540 = vector.broadcast %cst_190 : f32 to vector<8x128xf32>
    %541 = arith.addf %539, %540 : vector<8x128xf32>
    %542 = arith.mulf %531, %506 : vector<8x128xf32>
    %543 = arith.mulf %523, %533 : vector<8x128xf32>
    %544 = arith.addf %542, %543 : vector<8x128xf32>
    %545 = math.tanh %544 : vector<8x128xf32>
    %546 = arith.mulf %541, %545 : vector<8x128xf32>
    %c8_i32_191 = arith.constant 8 : i32
    %547 = arith.muli %c5_i32_180, %c8_i32_191 : i32
    %548 = tpu.assume_multiple %547, 8 : i32
    %549 = arith.index_cast %548 : i32 to index
    %c0_192 = arith.constant 0 : index
    %550 = vector.load %arg12[%549, %c0_192] : memref<64x128xf32, #tpu.memory_space<vmem>>, vector<8x128xf32>
    tpu.vector_store %arg12[%549, %c0_192], %546 {strides = array<i32>} : memref<64x128xf32, #tpu.memory_space<vmem>>, vector<8x128xf32>,
    %c6_i32_193 = arith.constant 6 : i32
    %551 = arith.truncf %546 : vector<8x128xf32> to vector<8x128xbf16>
    %cst_194 = arith.constant dense<0.000000e+00> : vector<8x512xf32>
    %552 = tpu.matmul %551, %322, %cst_194 {dimension_numbers = #tpu.dot_dimension_numbers<[1], [0], [0], [1], [0, 0, 1, 1], [], []>} : vector<8x128xbf16>, vector<128x512xbf16>, vector<8x512xf32> -> vector<8x512xf32>
    %553 = arith.addf %321, %552 : vector<8x512xf32>
    %554 = vector.extract_strided_slice %553 {offsets = [0, 0], sizes = [8, 128], strides = [1, 1]} : vector<8x512xf32> to vector<8x128xf32>
    %cst_195 = arith.constant 5.000000e-01 : f32
    %555 = vector.broadcast %cst_195 : f32 to vector<8x128xf32>
    %556 = arith.mulf %555, %554 : vector<8x128xf32>
    %557 = math.tanh %556 : vector<8x128xf32>
    %cst_196 = arith.constant 5.000000e-01 : f32
    %558 = vector.broadcast %cst_196 : f32 to vector<8x128xf32>
    %559 = arith.mulf %558, %557 : vector<8x128xf32>
    %cst_197 = arith.constant 5.000000e-01 : f32
    %560 = vector.broadcast %cst_197 : f32 to vector<8x128xf32>
    %561 = arith.addf %559, %560 : vector<8x128xf32>
    %562 = vector.extract_strided_slice %553 {offsets = [0, 128], sizes = [8, 128], strides = [1, 1]} : vector<8x512xf32> to vector<8x128xf32>
    %cst_198 = arith.constant 5.000000e-01 : f32
    %563 = vector.broadcast %cst_198 : f32 to vector<8x128xf32>
    %564 = arith.mulf %563, %562 : vector<8x128xf32>
    %565 = math.tanh %564 : vector<8x128xf32>
    %cst_199 = arith.constant 5.000000e-01 : f32
    %566 = vector.broadcast %cst_199 : f32 to vector<8x128xf32>
    %567 = arith.mulf %566, %565 : vector<8x128xf32>
    %cst_200 = arith.constant 5.000000e-01 : f32
    %568 = vector.broadcast %cst_200 : f32 to vector<8x128xf32>
    %569 = arith.addf %567, %568 : vector<8x128xf32>
    %570 = vector.extract_strided_slice %553 {offsets = [0, 256], sizes = [8, 128], strides = [1, 1]} : vector<8x512xf32> to vector<8x128xf32>
    %571 = math.tanh %570 : vector<8x128xf32>
    %572 = vector.extract_strided_slice %553 {offsets = [0, 384], sizes = [8, 128], strides = [1, 1]} : vector<8x512xf32> to vector<8x128xf32>
    %cst_201 = arith.constant 5.000000e-01 : f32
    %573 = vector.broadcast %cst_201 : f32 to vector<8x128xf32>
    %574 = arith.mulf %573, %572 : vector<8x128xf32>
    %575 = math.tanh %574 : vector<8x128xf32>
    %cst_202 = arith.constant 5.000000e-01 : f32
    %576 = vector.broadcast %cst_202 : f32 to vector<8x128xf32>
    %577 = arith.mulf %576, %575 : vector<8x128xf32>
    %cst_203 = arith.constant 5.000000e-01 : f32
    %578 = vector.broadcast %cst_203 : f32 to vector<8x128xf32>
    %579 = arith.addf %577, %578 : vector<8x128xf32>
    %580 = arith.mulf %569, %544 : vector<8x128xf32>
    %581 = arith.mulf %561, %571 : vector<8x128xf32>
    %582 = arith.addf %580, %581 : vector<8x128xf32>
    %583 = math.tanh %582 : vector<8x128xf32>
    %584 = arith.mulf %579, %583 : vector<8x128xf32>
    %c8_i32_204 = arith.constant 8 : i32
    %585 = arith.muli %c6_i32_193, %c8_i32_204 : i32
    %586 = tpu.assume_multiple %585, 8 : i32
    %587 = arith.index_cast %586 : i32 to index
    %c0_205 = arith.constant 0 : index
    %588 = vector.load %arg12[%587, %c0_205] : memref<64x128xf32, #tpu.memory_space<vmem>>, vector<8x128xf32>
    tpu.vector_store %arg12[%587, %c0_205], %584 {strides = array<i32>} : memref<64x128xf32, #tpu.memory_space<vmem>>, vector<8x128xf32>,
    %c7_i32_206 = arith.constant 7 : i32
    %589 = arith.truncf %584 : vector<8x128xf32> to vector<8x128xbf16>
    %cst_207 = arith.constant dense<0.000000e+00> : vector<8x512xf32>
    %590 = tpu.matmul %589, %322, %cst_207 {dimension_numbers = #tpu.dot_dimension_numbers<[1], [0], [0], [1], [0, 0, 1, 1], [], []>} : vector<8x128xbf16>, vector<128x512xbf16>, vector<8x512xf32> -> vector<8x512xf32>
    %591 = arith.addf %321, %590 : vector<8x512xf32>
    %592 = vector.extract_strided_slice %591 {offsets = [0, 0], sizes = [8, 128], strides = [1, 1]} : vector<8x512xf32> to vector<8x128xf32>
    %cst_208 = arith.constant 5.000000e-01 : f32
    %593 = vector.broadcast %cst_208 : f32 to vector<8x128xf32>
    %594 = arith.mulf %593, %592 : vector<8x128xf32>
    %595 = math.tanh %594 : vector<8x128xf32>
    %cst_209 = arith.constant 5.000000e-01 : f32
    %596 = vector.broadcast %cst_209 : f32 to vector<8x128xf32>
    %597 = arith.mulf %596, %595 : vector<8x128xf32>
    %cst_210 = arith.constant 5.000000e-01 : f32
    %598 = vector.broadcast %cst_210 : f32 to vector<8x128xf32>
    %599 = arith.addf %597, %598 : vector<8x128xf32>
    %600 = vector.extract_strided_slice %591 {offsets = [0, 128], sizes = [8, 128], strides = [1, 1]} : vector<8x512xf32> to vector<8x128xf32>
    %cst_211 = arith.constant 5.000000e-01 : f32
    %601 = vector.broadcast %cst_211 : f32 to vector<8x128xf32>
    %602 = arith.mulf %601, %600 : vector<8x128xf32>
    %603 = math.tanh %602 : vector<8x128xf32>
    %cst_212 = arith.constant 5.000000e-01 : f32
    %604 = vector.broadcast %cst_212 : f32 to vector<8x128xf32>
    %605 = arith.mulf %604, %603 : vector<8x128xf32>
    %cst_213 = arith.constant 5.000000e-01 : f32
    %606 = vector.broadcast %cst_213 : f32 to vector<8x128xf32>
    %607 = arith.addf %605, %606 : vector<8x128xf32>
    %608 = vector.extract_strided_slice %591 {offsets = [0, 256], sizes = [8, 128], strides = [1, 1]} : vector<8x512xf32> to vector<8x128xf32>
    %609 = math.tanh %608 : vector<8x128xf32>
    %610 = vector.extract_strided_slice %591 {offsets = [0, 384], sizes = [8, 128], strides = [1, 1]} : vector<8x512xf32> to vector<8x128xf32>
    %cst_214 = arith.constant 5.000000e-01 : f32
    %611 = vector.broadcast %cst_214 : f32 to vector<8x128xf32>
    %612 = arith.mulf %611, %610 : vector<8x128xf32>
    %613 = math.tanh %612 : vector<8x128xf32>
    %cst_215 = arith.constant 5.000000e-01 : f32
    %614 = vector.broadcast %cst_215 : f32 to vector<8x128xf32>
    %615 = arith.mulf %614, %613 : vector<8x128xf32>
    %cst_216 = arith.constant 5.000000e-01 : f32
    %616 = vector.broadcast %cst_216 : f32 to vector<8x128xf32>
    %617 = arith.addf %615, %616 : vector<8x128xf32>
    %618 = arith.mulf %607, %582 : vector<8x128xf32>
    %619 = arith.mulf %599, %609 : vector<8x128xf32>
    %620 = arith.addf %618, %619 : vector<8x128xf32>
    %621 = math.tanh %620 : vector<8x128xf32>
    %622 = arith.mulf %617, %621 : vector<8x128xf32>
    %c8_i32_217 = arith.constant 8 : i32
    %623 = arith.muli %c7_i32_206, %c8_i32_217 : i32
    %624 = tpu.assume_multiple %623, 8 : i32
    %625 = arith.index_cast %624 : i32 to index
    %c0_218 = arith.constant 0 : index
    %626 = vector.load %arg12[%625, %c0_218] : memref<64x128xf32, #tpu.memory_space<vmem>>, vector<8x128xf32>
    tpu.vector_store %arg12[%625, %c0_218], %622 {strides = array<i32>} : memref<64x128xf32, #tpu.memory_space<vmem>>, vector<8x128xf32>,
    %c8_i32_219 = arith.constant 8 : i32
    %c0_220 = arith.constant 0 : index
    %c0_221 = arith.constant 0 : index
    %627 = vector.load %arg12[%c0_220, %c0_221] : memref<64x128xf32, #tpu.memory_space<vmem>>, vector<64x128xf32>
    %628 = arith.truncf %627 : vector<64x128xf32> to vector<64x128xbf16>
    %c0_222 = arith.constant 0 : index
    %c0_223 = arith.constant 0 : index
    %629 = vector.load %arg8[%c0_222, %c0_223] : memref<128x128xbf16, #tpu.memory_space<vmem>>, vector<128x128xbf16>
    %cst_224 = arith.constant dense<0.000000e+00> : vector<64x128xf32>
    %630 = tpu.matmul %628, %629, %cst_224 {dimension_numbers = #tpu.dot_dimension_numbers<[1], [0], [0], [1], [0, 0, 1, 1], [], []>} : vector<64x128xbf16>, vector<128x128xbf16>, vector<64x128xf32> -> vector<64x128xf32>
    %c0_225 = arith.constant 0 : index
    %c0_226 = arith.constant 0 : index
    %631 = vector.load %arg9[%c0_225, %c0_226] : memref<1x128xf32, #tpu.memory_space<vmem>>, vector<1x128xf32>
    %632 = vector.broadcast %631 : vector<1x128xf32> to vector<64x128xf32>
    %633 = arith.addf %630, %632 : vector<64x128xf32>
    %c0_227 = arith.constant 0 : index
    %c0_228 = arith.constant 0 : index
    %c0_229 = arith.constant 0 : index
    %634 = vector.load %arg10[%c0_227, %c0_228, %c0_229] : memref<1x64x128xf32, #tpu.memory_space<vmem>>, vector<1x64x128xf32>
    %635 = vector.shape_cast %634 : vector<1x64x128xf32> to vector<64x128xf32>
    %636 = vector.shape_cast %633 : vector<64x128xf32> to vector<1x64x128xf32>
    tpu.vector_store %arg10[%c0_227, %c0_228, %c0_229], %636 {strides = array<i32>} : memref<1x64x128xf32, #tpu.memory_space<vmem>>, vector<1x64x128xf32>,
    return
  }
  func.func @transform_0(%arg0: i32) -> (i32, i32, i32) {
    %c0_i32 = arith.constant 0 : i32
    %c0_i32_0 = arith.constant 0 : i32
    %c0_i32_1 = arith.constant 0 : i32
    return %arg0, %c0_i32, %c0_i32_0 : i32, i32, i32
  }
  func.func @transform_1(%arg0: i32) -> (i32, i32) {
    %c0_i32 = arith.constant 0 : i32
    %c0_i32_0 = arith.constant 0 : i32
    %c0_i32_1 = arith.constant 0 : i32
    return %c0_i32, %c0_i32_0 : i32, i32
  }
  func.func @transform_2(%arg0: i32) -> (i32, i32) {
    %c0_i32 = arith.constant 0 : i32
    %c0_i32_0 = arith.constant 0 : i32
    %c0_i32_1 = arith.constant 0 : i32
    return %c0_i32, %c0_i32_0 : i32, i32
  }
  func.func @transform_3(%arg0: i32) -> (i32, i32) {
    %c0_i32 = arith.constant 0 : i32
    %c0_i32_0 = arith.constant 0 : i32
    %c0_i32_1 = arith.constant 0 : i32
    return %c0_i32, %c0_i32_0 : i32, i32
  }
  func.func @transform_4(%arg0: i32) -> (i32, i32) {
    %c0_i32 = arith.constant 0 : i32
    %c0_i32_0 = arith.constant 0 : i32
    %c0_i32_1 = arith.constant 0 : i32
    return %c0_i32, %c0_i32_0 : i32, i32
  }
  func.func @transform_5(%arg0: i32) -> (i32, i32) {
    %c0_i32 = arith.constant 0 : i32
    %c0_i32_0 = arith.constant 0 : i32
    %c0_i32_1 = arith.constant 0 : i32
    return %c0_i32, %c0_i32_0 : i32, i32
  }
  func.func @transform_6(%arg0: i32) -> (i32, i32) {
    %c0_i32 = arith.constant 0 : i32
    %c0_i32_0 = arith.constant 0 : i32
    %c0_i32_1 = arith.constant 0 : i32
    return %c0_i32, %c0_i32_0 : i32, i32
  }
  func.func @transform_7(%arg0: i32) -> (i32, i32) {
    %c0_i32 = arith.constant 0 : i32
    %c0_i32_0 = arith.constant 0 : i32
    %c0_i32_1 = arith.constant 0 : i32
    return %c0_i32, %c0_i32_0 : i32, i32
  }
  func.func @transform_8(%arg0: i32) -> (i32, i32) {
    %c0_i32 = arith.constant 0 : i32
    %c0_i32_0 = arith.constant 0 : i32
    %c0_i32_1 = arith.constant 0 : i32
    return %c0_i32, %c0_i32_0 : i32, i32
  }
  func.func @transform_9(%arg0: i32) -> (i32, i32, i32) {
    %c0_i32 = arith.constant 0 : i32
    %c0_i32_0 = arith.constant 0 : i32
    %c0_i32_1 = arith.constant 0 : i32
    return %arg0, %c0_i32, %c0_i32_0 : i32, i32, i32
  }
}

</mosaic_0001>

<bundles_post_ra>
// kernel: lstm_autoencoder.1
= control target key start
LH: loop header
LB: loop body
LE: loop exit
PB: predicated region body
PF: predicated region fallthrough
CT: control target
= control target key end

     0   :  { %vm92_vm0 = vcmask 1043456   ;;  %v4931_v1 = vmov 0   ;;  %vm79_vm1 = vcmask 64512   ;;  %v49_v53 = vlaneseq  ;;  %s4918_s1 = inlined_call_operand.vmem [shape: bf16[8,512], index: 1, kind: input, shape index: {}]   ;;  %s4919_s0 = inlined_call_operand.vmem [shape: f32[1,64,8], index: 0, kind: input, shape index: {}]   ;;  %s4920_s2 = inlined_call_operand.vmem [shape: bf16[128,512], index: 2, kind: input, shape index: {}]   ;;  %s4921_s3 = inlined_call_operand.vmem [shape: f32[1,512], index: 3, kind: input, shape index: {}]   ;;  %s4922_s4 = inlined_call_operand.vmem [shape: bf16[128,512], index: 4, kind: input, shape index: {}]   ;;  %s4923_s6 = inlined_call_operand.vmem [shape: bf16[128,512], index: 6, kind: input, shape index: {}]   ;;  %s4924_s5 = inlined_call_operand.vmem [shape: f32[1,512], index: 5, kind: input, shape index: {}]   ;;  %s4925_s7 = inlined_call_operand.vmem [shape: bf16[128,128], index: 7, kind: input, shape index: {}]   ;;  %s4926_s8 = inlined_call_operand.vmem [shape: f32[1,128], index: 8, kind: input, shape index: {}]   ;;  %s4927_s9 = inlined_call_operand.vmem [shape: f32[1,64,128], index: 9, kind: output, shape index: {}]  }
   0x1   :  { %v46_v0 = vld [vmem:[%s4918_s1 + $0x8] sm:$0xff]  ;;  %210 = vmatprep.mubr.bf16.mxu1 %v4931_v1  ;;  %v33_v2 = vld [vmem:[%s4919_s0] sm:$0xff]  ;;  %137 = vmatprep.mubr.bf16.mxu0 %v4931_v1  ;;  %v35_v12 = vld [vmem:[%s4919_s0 + $0x10] sm:$0xff] }
   0x2   :  { %v34_v3 = vld [vmem:[%s4919_s0 + $0x8] sm:$0xff]  ;;  %v2883_v4 = vcombine.high %v46_v0, %v46_v0  ;;  %v2882_v5 = vcombine.low %v46_v0, %v46_v0  ;;  %v3458_v6 = vld [vmem:[%s4920_s2 + $0xe4] ss:$16 sps:$4 sm:$0xff]   ;;  %v3465_v9 = vld [vmem:[%s4920_s2 + $0xe0] ss:$16 sps:$4 sm:$0xff]   ;;  %v3726_v54 = vshrl.u32 %v49_v53, 7 }
   0x3   :  { %v41_v8 = vpack.c.bf16 %v34_v3, %v33_v2  ;;  %v3471_v10 = vld [vmem:[%s4920_s2 + $0xc4] ss:$16 sps:$4 sm:$0xff]   ;;  %v3477_v11 = vld [vmem:[%s4920_s2 + $0xc0] ss:$16 sps:$4 sm:$0xff]   ;;  %v36_v13 = vld [vmem:[%s4919_s0 + $0x18] sm:$0xff] }
   0x4   :  { %2889 = vmatprep.subr.msk.bf16.mxu1 %vm92_vm0, %v2883_v4  ;;  %v100_v7 = vsel %vm92_vm0, %v2882_v5, 0  ;;  %v3491_v14 = vld [vmem:[%s4920_s2 + $0xa4] ss:$16 sps:$4 sm:$0xff]   ;;  %v42_v15 = vpack.c.bf16 %v36_v13, %v35_v12  ;;  %v3497_v16 = vld [vmem:[%s4920_s2 + $0xa0] ss:$16 sps:$4 sm:$0xff]   ;;  %v38_v24 = vld [vmem:[%s4919_s0 + $0x28] sm:$0xff] }
   0x5   :  { %193 = vmatpush1.bf16.msra.mxu1 %v100_v7  ;;  %v45_v17 = vld [vmem:[%s4918_s1] sm:$0xff]  ;;  %v39_v30 = vld [vmem:[%s4919_s0 + $0x30] sm:$0xff]  ;;  %v40_v31 = vld [vmem:[%s4919_s0 + $0x38] sm:$0xff]  ;;  %4936 = vst [vmem:[#allocation4_spill] sm:$0xff] %v3726_v54  ;;  %v4929_v55 = vsub.s32 2, %v3726_v54  ;;  %v4928_v58 = vsub.s32 3, %v3726_v54 }
   0x6   :  { %482 = vmatprep.subr.bf16.mxu1 %v3458_v6  ;;  %v3506_v18 = vld [vmem:[%s4920_s2 + $0x84] ss:$16 sps:$4 sm:$0xff]   ;;  %v2881_v19 = vcombine.high %v45_v17, %v45_v17  ;;  %v2880_v20 = vcombine.low %v45_v17, %v45_v17  ;;  %v3512_v21 = vld [vmem:[%s4920_s2 + $0x80] ss:$16 sps:$4 sm:$0xff]   ;;  %v44_v33 = vpack.c.bf16 %v40_v31, %v39_v30  ;;  %v3597_v37 = vld [vmem:[%s4920_s2 + $0xec] ss:$16 sps:$4 sm:$0xff]  }
   0x7   :  { %v37_v23 = vld [vmem:[%s4919_s0 + $0x20] sm:$0xff]  ;;  %v3605_v38 = vld [vmem:[%s4920_s2 + $0xe8] ss:$16 sps:$4 sm:$0xff]   ;;  %v3612_v39 = vld [vmem:[%s4920_s2 + $0xcc] ss:$16 sps:$4 sm:$0xff]   ;;  %v4935_v30 = vsub.s32 1, %v3726_v54 }
   0x8   :  { %2890 = vmatmul.mubr.msk.bf16.vlgmr.msra.gmra.mxu1 %vm79_vm1, %v41_v8  ;;  %2884 = vmatprep.subr.msk.bf16.mxu0 %vm92_vm0, %v2881_v19  ;;  %v94_v22 = vsel %vm92_vm0, %v2880_v20, 0  ;;  %v3528_v25 = vld [vmem:[%s4920_s2 + $0x64] ss:$16 sps:$4 sm:$0xff]   ;;  %v43_v26 = vpack.c.bf16 %v38_v24, %v37_v23  ;;  %v3535_v27 = vld [vmem:[%s4920_s2 + $0x60] ss:$16 sps:$4 sm:$0xff]  }
   0x9   :  { %483 = vmatpush1.bf16.msra.mxu1 %v3465_v9  ;;  %220 = vmatprep.mubr.bf16.mxu1 %v4931_v1  ;;  %v3542_v28 = vld [vmem:[%s4920_s2 + $0x44] ss:$16 sps:$4 sm:$0xff]   ;;  %v3552_v29 = vld [vmem:[%s4920_s2 + $0x40] ss:$16 sps:$4 sm:$0xff]   ;;  %v3622_v40 = vld [vmem:[%s4920_s2 + $0xc8] ss:$16 sps:$4 sm:$0xff]  }
   0xa   :  { %484 = vmatprep.subr.bf16.mxu1 %v3471_v10  ;;  %120 = vmatpush1.bf16.msra.mxu0 %v94_v22  ;;  %v3565_v32 = vld [vmem:[%s4920_s2 + $0x24] ss:$16 sps:$4 sm:$0xff]   ;;  %v3573_v34 = vld [vmem:[%s4920_s2 + $0x20] ss:$16 sps:$4 sm:$0xff]   ;;  %v3629_v41 = vld [vmem:[%s4920_s2 + $0xac] ss:$16 sps:$4 sm:$0xff]  }
   0xb   :  { %594 = vmatprep.subr.bf16.mxu0 %v3458_v6  ;;  %v3580_v35 = vld [vmem:[%s4920_s2 + $0x4] ss:$16 sps:$4 sm:$0xff]   ;;  %v3590_v36 = vld [vmem:[%s4920_s2] ss:$16 sps:$4 sm:$0xff]   ;;  %v3637_v42 = vld [vmem:[%s4920_s2 + $0xa8] ss:$16 sps:$4 sm:$0xff]  }
   0xc   :  { %v3644_v43 = vld [vmem:[%s4920_s2 + $0x8c] ss:$16 sps:$4 sm:$0xff]   ;;  %v3653_v44 = vld [vmem:[%s4920_s2 + $0x88] ss:$16 sps:$4 sm:$0xff]   ;;  %v47_v56 = vld [vmem:[%s4921_s3] sm:$0xf] }
   0xd   :  { %485 = vmatpush1.bf16.msra.mxu1 %v3477_v11  ;;  %2885 = vmatmul.mubr.msk.bf16.vlgmr.msra.gmra.mxu0 %vm79_vm1, %v41_v8  ;;  %v3659_v45 = vld [vmem:[%s4920_s2 + $0x6c] ss:$16 sps:$4 sm:$0xff]   ;;  %v3667_v46 = vld [vmem:[%s4920_s2 + $0x68] ss:$16 sps:$4 sm:$0xff]   ;;  %v3739_v60 = vrot.slane %v47_v56, %v4929_v55  ;;  %v3743_v62 = vrot.slane %v47_v56, %v4928_v58  ;;  %v4930_v22 = vsub.s32 0, %v3726_v54 }
   0xe   :  { %486 = vmatprep.subr.bf16.mxu1 %v3491_v14  ;;  %595 = vmatpush1.bf16.msra.mxu0 %v3465_v9  ;;  %v3673_v47 = vld [vmem:[%s4920_s2 + $0x4c] ss:$16 sps:$4 sm:$0xff]   ;;  %v3679_v48 = vld [vmem:[%s4920_s2 + $0x48] ss:$16 sps:$4 sm:$0xff]  }
   0xf   :  { %147 = vmatprep.mubr.bf16.mxu0 %v4931_v1  ;;  %596 = vmatprep.subr.bf16.mxu0 %v3471_v10  ;;  %v3685_v49 = vld [vmem:[%s4920_s2 + $0x2c] ss:$16 sps:$4 sm:$0xff]   ;;  %v3691_v50 = vld [vmem:[%s4920_s2 + $0x28] ss:$16 sps:$4 sm:$0xff]  }
  0x10   :  { %2891 = vmatmul.mubr.msk.bf16.gmra.mxu1 %vm79_vm1, %v42_v15  ;;  %v3697_v51 = vld [vmem:[%s4920_s2 + $0xc] ss:$16 sps:$4 sm:$0xff]   ;;  %v3703_v52 = vld [vmem:[%s4920_s2 + $0x8] ss:$16 sps:$4 sm:$0xff]  }
  0x11   :  { %487 = vmatpush1.bf16.msra.mxu1 %v3497_v16  ;;  %230 = vmatprep.mubr.bf16.mxu1 %v4931_v1 }
  0x12   :  { %488 = vmatprep.subr.bf16.mxu1 %v3506_v18  ;;  %597 = vmatpush1.bf16.msra.mxu0 %v3477_v11 }
  0x13   :  { %598 = vmatprep.subr.bf16.mxu0 %v3491_v14 }
  0x15   :  { %489 = vmatpush1.bf16.msra.mxu1 %v3512_v21  ;;  %2886 = vmatmul.mubr.msk.bf16.gmra.mxu0 %vm79_vm1, %v42_v15 }
  0x16   :  { %490 = vmatprep.subr.bf16.mxu1 %v3528_v25  ;;  %599 = vmatpush1.bf16.msra.mxu0 %v3497_v16 }
  0x17   :  { %157 = vmatprep.mubr.bf16.mxu0 %v4931_v1  ;;  %600 = vmatprep.subr.bf16.mxu0 %v3506_v18 }
  0x18   :  { %2892 = vmatmul.mubr.msk.bf16.gmra.mxu1 %vm79_vm1, %v43_v26 }
  0x19   :  { %491 = vmatpush1.bf16.msra.mxu1 %v3535_v27  ;;  %240 = vmatprep.mubr.bf16.mxu1 %v4931_v1 }
  0x1a   :  { %492 = vmatprep.subr.bf16.mxu1 %v3542_v28  ;;  %601 = vmatpush1.bf16.msra.mxu0 %v3512_v21 }
  0x1b   :  { %602 = vmatprep.subr.bf16.mxu0 %v3528_v25 }
  0x1d   :  { %493 = vmatpush1.bf16.msra.mxu1 %v3552_v29  ;;  %2887 = vmatmul.mubr.msk.bf16.gmra.mxu0 %vm79_vm1, %v43_v26 }
  0x1e   :  { %494 = vmatprep.subr.bf16.mxu1 %v3565_v32  ;;  %603 = vmatpush1.bf16.msra.mxu0 %v3535_v27 }
  0x1f   :  { %167 = vmatprep.mubr.bf16.mxu0 %v4931_v1  ;;  %604 = vmatprep.subr.bf16.mxu0 %v3542_v28 }
  0x20   :  { %2893 = vmatmul.mubr.msk.bf16.gmra.mxu1 %vm79_vm1, %v44_v33 }
  0x21   :  { %495 = vmatpush1.bf16.msra.mxu1 %v3573_v34  ;;  %514 = vmatprep.mubr.bf16.mxu1 %v4931_v1 }
  0x22   :  { %496 = vmatprep.subr.bf16.mxu1 %v3580_v35  ;;  %605 = vmatpush1.bf16.msra.mxu0 %v3552_v29 }
  0x23   :  { %606 = vmatprep.subr.bf16.mxu0 %v3565_v32 }
  0x25   :  { %497 = vmatpush1.bf16.msra.mxu1 %v3590_v36  ;;  %2888 = vmatmul.mubr.msk.bf16.gmra.mxu0 %vm79_vm1, %v44_v33 }
  0x26   :  { %523 = vmatprep.subr.bf16.mxu1 %v3597_v37  ;;  %607 = vmatpush1.bf16.msra.mxu0 %v3573_v34 }
  0x27   :  { %608 = vmatprep.subr.bf16.mxu0 %v3580_v35  ;;  %626 = vmatprep.mubr.bf16.mxu0 %v4931_v1 }
  0x28   :  { %515 = vmatmul.mubr.bf16.vlgmr.msra.gmra.mxu1 %v4931_v1 }
  0x29   :  { %524 = vmatpush1.bf16.msra.mxu1 %v3605_v38  ;;  %555 = vmatprep.mubr.bf16.mxu1 %v4931_v1 }
  0x2a   :  { %525 = vmatprep.subr.bf16.mxu1 %v3612_v39  ;;  %609 = vmatpush1.bf16.msra.mxu0 %v3590_v36 }
  0x2b   :  { %706 = vmatprep.subr.bf16.mxu0 %v3458_v6 }
  0x2d   :  { %526 = vmatpush1.bf16.msra.mxu1 %v3622_v40 }
  0x2e   :  { %527 = vmatprep.subr.bf16.mxu1 %v3629_v41 }
  0x31   :  { %528 = vmatpush1.bf16.msra.mxu1 %v3637_v42 }
  0x32   :  { %529 = vmatprep.subr.bf16.mxu1 %v3644_v43 }
  0x35   :  { %530 = vmatpush1.bf16.msra.mxu1 %v3653_v44 }
  0x36   :  { %531 = vmatprep.subr.bf16.mxu1 %v3659_v45 }
  0x39   :  { %532 = vmatpush1.bf16.msra.mxu1 %v3667_v46 }
  0x3a   :  { %533 = vmatprep.subr.bf16.mxu1 %v3673_v47 }
  0x3d   :  { %534 = vmatpush1.bf16.msra.mxu1 %v3679_v48 }
  0x3e   :  { %535 = vmatprep.subr.bf16.mxu1 %v3685_v49 }
  0x41   :  { %536 = vmatpush1.bf16.msra.mxu1 %v3691_v50 }
  0x42   :  { %537 = vmatprep.subr.bf16.mxu1 %v3697_v51 }
  0x45   :  { %538 = vmatpush1.bf16.msra.mxu1 %v3703_v52 }
  0x46   :  { %635 = vmatprep.subr.bf16.mxu1 %v3597_v37 }
  0x48   :  { %556 = vmatmul.mubr.bf16.vlgmr.msra.gmra.mxu1 %v4931_v1 }
  0x49   :  { %636 = vmatpush1.bf16.msra.mxu1 %v3605_v38  ;;  %667 = vmatprep.mubr.bf16.mxu1 %v4931_v1 }
  0x4a   :  { %637 = vmatprep.subr.bf16.mxu1 %v3612_v39 }
  0x4d   :  { %638 = vmatpush1.bf16.msra.mxu1 %v3622_v40 }
  0x4e   :  { %639 = vmatprep.subr.bf16.mxu1 %v3629_v41 }
  0x51   :  { %640 = vmatpush1.bf16.msra.mxu1 %v3637_v42 }
  0x52   :  { %641 = vmatprep.subr.bf16.mxu1 %v3644_v43 }
  0x55   :  { %642 = vmatpush1.bf16.msra.mxu1 %v3653_v44 }
  0x56   :  { %643 = vmatprep.subr.bf16.mxu1 %v3659_v45 }
  0x59   :  { %644 = vmatpush1.bf16.msra.mxu1 %v3667_v46 }
  0x5a   :  { %645 = vmatprep.subr.bf16.mxu1 %v3673_v47 }
  0x5d   :  { %646 = vmatpush1.bf16.msra.mxu1 %v3679_v48 }
  0x5e   :  { %647 = vmatprep.subr.bf16.mxu1 %v3685_v49 }
  0x61   :  { %648 = vmatpush1.bf16.msra.mxu1 %v3691_v50 }
  0x62   :  { %649 = vmatprep.subr.bf16.mxu1 %v3697_v51 }
  0x65   :  { %650 = vmatpush1.bf16.msra.mxu1 %v3703_v52 }
  0x66   :  { %747 = vmatprep.subr.bf16.mxu1 %v3597_v37 }
  0xc8   :  { %v3732_v57 = vpop.f32.mrf.mxu1 }
  0xca   :  { %v3735_v59 = vpop.f32.mrf.mxu1 }
  0xcc   :  { %v216_v61 = vpop.f32.mrf.mxu1 }
  0xcd   :  { %v3746_v63 = vadd.f32 %v216_v61, %v3739_v60  ;;  %v139_v13 = vpop.f32.mrf.mxu0  ;;  %v3777_v61 = vrot.slane %v47_v56, %v4930_v22 }
  0xce   :  { %v218_v0 = vpop.f32.mrf.mxu1 }
  0xcf   :  { %v3749_v2 = vadd.f32 %v218_v0, %v3743_v62  ;;  %v141_v19 = vpop.f32.mrf.mxu0 }
  0xd0   :  { %v222_v3 = vpop.f32.mrf.mxu1 }
  0xd1   :  { %v3752_v4 = vadd.f32 %v222_v3, %v3739_v60  ;;  %v3767_v24 = vpop.f32.mrf.mxu0 }
  0xd2   :  { %v224_v5 = vpop.f32.mrf.mxu1 }
  0xd3   :  { %v3755_v7 = vadd.f32 %v224_v5, %v3743_v62  ;;  %v3773_v33 = vpop.f32.mrf.mxu0 }
  0xd4   :  { %v226_v8 = vpop.f32.mrf.mxu1 }
  0xd5   :  { %v3758_v12 = vadd.f32 %v226_v8, %v3739_v60  ;;  %v149_v3 = vpop.f32.mrf.mxu0  ;;  %v3784_v8 = vrot.slane %v47_v56, %v4935_v30 }
  0xd6   :  { %v228_v15 = vpop.f32.mrf.mxu1 }
  0xd7   :  { %4937 = vst [vmem:[#allocation5_spill] sm:$0xff] %v3758_v12  ;;  %v3761_v17 = vadd.f32 %v228_v15, %v3743_v62  ;;  %v3787_v15 = vadd.f32 %v149_v3, %v3777_v61 }
  0xd8   :  { %v232_v20 = vpop.f32.mrf.mxu1 }
  0xd9   :  { %4938 = vst [vmem:[#allocation6_spill] sm:$0xff] %v3761_v17  ;;  %v3765_v23 = vadd.f32 %v232_v20, %v3739_v60 }
  0xda   :  { %v234_v26 = vpop.f32.mrf.mxu1 }
  0xdb   :  { %4939 = vst [vmem:[#allocation7_spill] sm:$0xff] %v3765_v23  ;;  %v3771_v31 = vadd.f32 %v234_v26, %v3743_v62  ;;  %v151_v26 = vpop.f32.mrf.mxu0 }
  0xdc   :  { %v236_v53 = vpop.f32.mrf.mxu1  ;;  %v3793_v55 = vadd.f32 %v151_v26, %v3784_v8 }
  0xdd   :  { %4940 = vst [vmem:[#allocation8_spill] sm:$0xff] %v3771_v31  ;;  %v3780_v0 = vadd.f32 %v236_v53, %v3739_v60  ;;  %v153_v22 = vpop.f32.mrf.mxu0 }
  0xde   :  { %v238_v5 = vpop.f32.mrf.mxu1  ;;  %v3799_v54 = vadd.f32 %v153_v22, %v3777_v61 }
  0xdf   :  { %4941 = vst [vmem:[#allocation9_spill] sm:$0xff] %v3780_v0  ;;  %v3790_v20 = vadd.f32 %v238_v5, %v3743_v62  ;;  %v155_v3 = vpop.f32.mrf.mxu0 }
  0xe0   :  { %v242_v58 = vpop.f32.mrf.mxu1  ;;  %v3805_v5 = vadd.f32 %v155_v3, %v3784_v8 }
  0xe1   :  { %4942 = vst [vmem:[#allocation10_spill] sm:$0xff] %v3790_v20  ;;  %v3796_v53 = vadd.f32 %v242_v58, %v3739_v60  ;;  %v159_v26 = vpop.f32.mrf.mxu0 }
  0xe2   :  { %v244_v1 = vpop.f32.mrf.mxu1  ;;  %4945 = vst [vmem:[#allocation13_spill] sm:$0xff] %v3805_v5  ;;  %v3811_v58 = vadd.f32 %v159_v26, %v3777_v61 }
  0xe3   :  { %4943 = vst [vmem:[#allocation11_spill] sm:$0xff] %v3796_v53  ;;  %v3802_v56 = vadd.f32 %v244_v1, %v3743_v62  ;;  %v161_v22 = vpop.f32.mrf.mxu0 }
  0xe4   :  { %v246_v30 = vpop.f32.mrf.mxu1  ;;  %4947 = vst [vmem:[#allocation15_spill] sm:$0xff] %v3811_v58  ;;  %v3817_v1 = vadd.f32 %v161_v22, %v3784_v8 }
  0xe5   :  { %4944 = vst [vmem:[#allocation12_spill] sm:$0xff] %v3802_v56  ;;  %v3808_v20 = vadd.f32 %v246_v30, %v3739_v60  ;;  %v163_v56 = vpop.f32.mrf.mxu0 }
  0xe6   :  { %v248_v0 = vpop.f32.mrf.mxu1  ;;  %4949 = vst [vmem:[#allocation17_spill] sm:$0xff] %v3817_v1  ;;  %v3820_v3 = vadd.f32 %v163_v56, %v3777_v61  ;;  %v142_v56 = vadd.f32 %v141_v19, %v3784_v8 }
  0xe7   :  { %4946 = vst [vmem:[#allocation14_spill] sm:$0xff] %v3808_v20  ;;  %v3814_v53 = vadd.f32 %v248_v0, %v3743_v62  ;;  %v165_v30 = vpop.f32.mrf.mxu0 }
  0xe8   :  { %v516_v31 = vpop.f32.mrf.mxu1  ;;  %4950 = vst [vmem:[#allocation18_spill] sm:$0xff] %v3820_v3  ;;  %v3823_v17 = vadd.f32 %v165_v30, %v3784_v8 }
  0xe9   :  { %4948 = vst [vmem:[#allocation16_spill] sm:$0xff] %v3814_v53  ;;  %v169_v26 = vpop.f32.mrf.mxu0 }
  0xea   :  { %v518_v23 = vpop.f32.mrf.mxu1  ;;  %4951 = vst [vmem:[#allocation19_spill] sm:$0xff] %v3823_v17  ;;  %v3826_v0 = vadd.f32 %v169_v26, %v3777_v61 }
  0xeb   :  { %v171_v53 = vpop.f32.mrf.mxu0  ;;  %v565_v3 = vadd.f32 %v518_v23, %v142_v56 }
  0xec   :  { %v520_v20 = vpop.f32.mrf.mxu1  ;;  %4952 = vst [vmem:[#allocation20_spill] sm:$0xff] %v3826_v0  ;;  %v3829_v12 = vadd.f32 %v171_v53, %v3784_v8 }
  0xed   :  { %v173_v22 = vpop.f32.mrf.mxu0  ;;  %v140_v20 = vadd.f32 %v139_v13, %v3777_v61  ;;  %v572_v17 = vmul.f32 0.5, %v565_v3 }
  0xee   :  { %v521_v58 = vpop.f32.mrf.mxu1  ;;  %4953 = vst [vmem:[#allocation21_spill] sm:$0xff] %v3829_v12  ;;  %v3832_v1 = vadd.f32 %v173_v22, %v3777_v61  ;;  %v215_v22 = vadd.f32 %v3735_v59, %v3743_v62 }
  0xef   :  { %v564_v30 = vadd.f32 %v516_v31, %v140_v20  ;;  %3192 = vtanh.f32 %v572_v17  ;;  %v213_v58 = vadd.f32 %v3732_v57, %v3739_v60 }
  0xf0   :  { %4954 = vst [vmem:[#allocation22_spill] sm:$0xff] %v3832_v1 }
  0xf1   :  { %v568_v5 = vmul.f32 0.5, %v564_v30 }
  0xf3   :  { %3194 = vtanh.f32 %v568_v5 }
  0xfc   :  { %v3193_v0 = vpop.eup %3192 }
  0xfd   :  { %v574_v31 = vmul.f32 0.5, %v3193_v0  ;;  %v4955_v0 = vmov 0  }
  0xff   :  { %v575_v17 = vadd.f32 0.5, %v574_v31 }
 0x100   :  { %v3195_v23 = vpop.eup %3194 }
 0x101   :  { %v570_v56 = vmul.f32 0.5, %v3195_v23  ;;  %v581_v57 = vmul.f32 0.0, %v575_v17  ;;  %v146_v23 = vadd.f32 %v3773_v33, %v3784_v8 }
 0x103   :  { %v571_v5 = vadd.f32 0.5, %v570_v56 }
 0x108   :  { %v557_v26 = vpop.f32.mrf.mxu1 }
 0x109   :  { %v566_v53 = vadd.f32 %v557_v26, %v213_v58 }
 0x10a   :  { %v559_v12 = vpop.f32.mrf.mxu1 }
 0x10b   :  { %3196 = vtanh.f32 %v566_v53  ;;  %v567_v19 = vadd.f32 %v559_v12, %v215_v22  ;;  %v3877_v53 = vpop.f32.mrf.mxu0  ;;  %v144_v22 = vadd.f32 %v3767_v24, %v3777_v61 }
 0x10c   :  { %v561_v1 = vpop.f32.mrf.mxu1 }
 0x10d   :  { %v577_v3 = vmul.f32 0.5, %v567_v19 }
 0x10e   :  { %v562_v13 = vpop.f32.mrf.mxu1 }
 0x10f   :  { %3198 = vtanh.f32 %v577_v3 }
 0x118   :  { %v3197_v20 = vpop.eup %3196 }
 0x119   :  { %v582_v60 = vmul.f32 %v3197_v20, %v571_v5 }
 0x11b   :  { %v3840_v30 = vadd.f32 %v582_v60, %v581_v57 }
 0x11c   :  { %v3199_v59 = vpop.eup %3198 }
 0x11d   :  { %3200 = vtanh.f32 %v3840_v30  ;;  %v579_v62 = vmul.f32 0.5, %v3199_v59 }
 0x11f   :  { %v580_v1 = vadd.f32 0.5, %v579_v62 }
 0x12a   :  { %v3201_v12 = vpop.eup %3200 }
 0x12b   :  { %v585_v58 = vmul.f32 %v3201_v12, %v580_v1 }
 0x12d   :  { %v593_v26 = vpack.c.bf16 %v585_v58, %v585_v58 }
 0x12f   :  { %627 = vmatmul.mubr.bf16.vlgmr.msra.gmra.mxu0 %v593_v26  ;;  %668 = vmatmul.mubr.bf16.vlgmr.msra.gmra.mxu1 %v593_v26 }
 0x130   :  { %707 = vmatpush1.bf16.msra.mxu0 %v3465_v9  ;;  %748 = vmatpush1.bf16.msra.mxu1 %v3605_v38 }
 0x131   :  { %708 = vmatprep.subr.bf16.mxu0 %v3471_v10  ;;  %749 = vmatprep.subr.bf16.mxu1 %v3612_v39 }
 0x132   :  { %738 = vmatprep.mubr.bf16.mxu0 %v4955_v0  ;;  %779 = vmatprep.mubr.bf16.mxu1 %v4955_v0 }
 0x134   :  { %709 = vmatpush1.bf16.msra.mxu0 %v3477_v11  ;;  %750 = vmatpush1.bf16.msra.mxu1 %v3622_v40 }
 0x135   :  { %710 = vmatprep.subr.bf16.mxu0 %v3491_v14  ;;  %751 = vmatprep.subr.bf16.mxu1 %v3629_v41 }
 0x138   :  { %711 = vmatpush1.bf16.msra.mxu0 %v3497_v16  ;;  %752 = vmatpush1.bf16.msra.mxu1 %v3637_v42 }
 0x139   :  { %712 = vmatprep.subr.bf16.mxu0 %v3506_v18  ;;  %753 = vmatprep.subr.bf16.mxu1 %v3644_v43 }
 0x13c   :  { %713 = vmatpush1.bf16.msra.mxu0 %v3512_v21  ;;  %754 = vmatpush1.bf16.msra.mxu1 %v3653_v44 }
 0x13d   :  { %714 = vmatprep.subr.bf16.mxu0 %v3528_v25  ;;  %755 = vmatprep.subr.bf16.mxu1 %v3659_v45 }
 0x140   :  { %715 = vmatpush1.bf16.msra.mxu0 %v3535_v27  ;;  %756 = vmatpush1.bf16.msra.mxu1 %v3667_v46 }
 0x141   :  { %716 = vmatprep.subr.bf16.mxu0 %v3542_v28  ;;  %757 = vmatprep.subr.bf16.mxu1 %v3673_v47 }
 0x144   :  { %717 = vmatpush1.bf16.msra.mxu0 %v3552_v29  ;;  %758 = vmatpush1.bf16.msra.mxu1 %v3679_v48 }
 0x145   :  { %718 = vmatprep.subr.bf16.mxu0 %v3565_v32  ;;  %759 = vmatprep.subr.bf16.mxu1 %v3685_v49 }
 0x148   :  { %719 = vmatpush1.bf16.msra.mxu0 %v3573_v34  ;;  %760 = vmatpush1.bf16.msra.mxu1 %v3691_v50 }
 0x149   :  { %720 = vmatprep.subr.bf16.mxu0 %v3580_v35  ;;  %761 = vmatprep.subr.bf16.mxu1 %v3697_v51 }
 0x14c   :  { %721 = vmatpush1.bf16.msra.mxu0 %v3590_v36  ;;  %762 = vmatpush1.bf16.msra.mxu1 %v3703_v52 }
 0x14d   :  { %818 = vmatprep.subr.bf16.mxu0 %v3458_v6  ;;  %859 = vmatprep.subr.bf16.mxu1 %v3597_v37 }
 0x1ef   :  { %v628_v19 = vpop.f32.mrf.mxu0  ;;  %v669_v13 = vpop.f32.mrf.mxu1 }
 0x1f0   :  { %v676_v31 = vadd.f32 %v628_v19, %v144_v22  ;;  %v678_v60 = vadd.f32 %v669_v13, %v3746_v63 }
 0x1f1   :  { %v630_v3 = vpop.f32.mrf.mxu0  ;;  %v671_v56 = vpop.f32.mrf.mxu1 }
 0x1f2   :  { %v680_v17 = vmul.f32 0.5, %v676_v31  ;;  %v677_v5 = vadd.f32 %v630_v3, %v146_v23  ;;  %v679_v24 = vadd.f32 %v671_v56, %v3749_v2 }
 0x1f3   :  { %v632_v20 = vpop.f32.mrf.mxu0  ;;  %v673_v57 = vpop.f32.mrf.mxu1 }
 0x1f4   :  { %3202 = vtanh.f32 %v680_v17  ;;  %v684_v59 = vmul.f32 0.5, %v677_v5  ;;  %v689_v61 = vmul.f32 0.5, %v679_v24 }
 0x1f5   :  { %v633_v62 = vpop.f32.mrf.mxu0  ;;  %v674_v1 = vpop.f32.mrf.mxu1 }
 0x1f6   :  { %3204 = vtanh.f32 %v684_v59 }
 0x1f7   :  { %3206 = vtanh.f32 %v678_v60 }
 0x1f8   :  { %3208 = vtanh.f32 %v689_v61 }
 0x201   :  { %v3203_v12 = vpop.eup %3202 }
 0x202   :  { %v682_v33 = vmul.f32 0.5, %v3203_v12 }
 0x203   :  { %v3205_v58 = vpop.eup %3204 }
 0x204   :  { %v683_v26 = vadd.f32 0.5, %v682_v33  ;;  %v686_v22 = vmul.f32 0.5, %v3205_v58  ;;  %v3207_v19 = vpop.eup %3206 }
 0x205   :  { %v3209_v13 = vpop.eup %3208 }
 0x206   :  { %v687_v23 = vadd.f32 0.5, %v686_v22  ;;  %v694_v31 = vmul.f32 %v3207_v19, %v683_v26  ;;  %v691_v17 = vmul.f32 0.5, %v3209_v13 }
 0x208   :  { %v693_v3 = vmul.f32 %v687_v23, %v3840_v30  ;;  %v692_v5 = vadd.f32 0.5, %v691_v17 }
 0x20a   :  { %v3886_v63 = vadd.f32 %v694_v31, %v693_v3 }
 0x20c   :  { %3210 = vtanh.f32 %v3886_v63 }
 0x219   :  { %v3211_v2 = vpop.eup %3210 }
 0x21a   :  { %v697_v56 = vmul.f32 %v3211_v2, %v692_v5 }
 0x21c   :  { %v705_v20 = vpack.c.bf16 %v697_v56, %v697_v56 }
 0x21e   :  { %739 = vmatmul.mubr.bf16.vlgmr.msra.gmra.mxu0 %v705_v20  ;;  %780 = vmatmul.mubr.bf16.vlgmr.msra.gmra.mxu1 %v705_v20 }
 0x21f   :  { %819 = vmatpush1.bf16.msra.mxu0 %v3465_v9  ;;  %860 = vmatpush1.bf16.msra.mxu1 %v3605_v38 }
 0x220   :  { %820 = vmatprep.subr.bf16.mxu0 %v3471_v10  ;;  %861 = vmatprep.subr.bf16.mxu1 %v3612_v39 }
 0x221   :  { %850 = vmatprep.mubr.bf16.mxu0 %v4955_v0  ;;  %891 = vmatprep.mubr.bf16.mxu1 %v4955_v0 }
 0x223   :  { %821 = vmatpush1.bf16.msra.mxu0 %v3477_v11  ;;  %862 = vmatpush1.bf16.msra.mxu1 %v3622_v40 }
 0x224   :  { %822 = vmatprep.subr.bf16.mxu0 %v3491_v14  ;;  %863 = vmatprep.subr.bf16.mxu1 %v3629_v41 }
 0x227   :  { %823 = vmatpush1.bf16.msra.mxu0 %v3497_v16  ;;  %864 = vmatpush1.bf16.msra.mxu1 %v3637_v42 }
 0x228   :  { %824 = vmatprep.subr.bf16.mxu0 %v3506_v18  ;;  %865 = vmatprep.subr.bf16.mxu1 %v3644_v43 }
 0x22b   :  { %825 = vmatpush1.bf16.msra.mxu0 %v3512_v21  ;;  %866 = vmatpush1.bf16.msra.mxu1 %v3653_v44 }
 0x22c   :  { %826 = vmatprep.subr.bf16.mxu0 %v3528_v25  ;;  %867 = vmatprep.subr.bf16.mxu1 %v3659_v45 }
 0x22f   :  { %827 = vmatpush1.bf16.msra.mxu0 %v3535_v27  ;;  %868 = vmatpush1.bf16.msra.mxu1 %v3667_v46 }
 0x230   :  { %828 = vmatprep.subr.bf16.mxu0 %v3542_v28  ;;  %869 = vmatprep.subr.bf16.mxu1 %v3673_v47 }
 0x233   :  { %829 = vmatpush1.bf16.msra.mxu0 %v3552_v29  ;;  %870 = vmatpush1.bf16.msra.mxu1 %v3679_v48 }
 0x234   :  { %830 = vmatprep.subr.bf16.mxu0 %v3565_v32  ;;  %871 = vmatprep.subr.bf16.mxu1 %v3685_v49 }
 0x237   :  { %831 = vmatpush1.bf16.msra.mxu0 %v3573_v34  ;;  %872 = vmatpush1.bf16.msra.mxu1 %v3691_v50 }
 0x238   :  { %832 = vmatprep.subr.bf16.mxu0 %v3580_v35  ;;  %873 = vmatprep.subr.bf16.mxu1 %v3697_v51 }
 0x23b   :  { %833 = vmatpush1.bf16.msra.mxu0 %v3590_v36  ;;  %874 = vmatpush1.bf16.msra.mxu1 %v3703_v52 }
 0x23c   :  { %930 = vmatprep.subr.bf16.mxu0 %v3458_v6  ;;  %971 = vmatprep.subr.bf16.mxu1 %v3597_v37 }
 0x2de   :  { %v740_v30 = vpop.f32.mrf.mxu0  ;;  %v781_v57 = vpop.f32.mrf.mxu1 }
 0x2df   :  { %v788_v60 = vadd.f32 %v740_v30, %v3787_v15  ;;  %v790_v33 = vadd.f32 %v781_v57, %v3752_v4 }
 0x2e0   :  { %v742_v59 = vpop.f32.mrf.mxu0  ;;  %v783_v62 = vpop.f32.mrf.mxu1 }
 0x2e1   :  { %v792_v1 = vmul.f32 0.5, %v788_v60  ;;  %v789_v24 = vadd.f32 %v742_v59, %v3793_v55  ;;  %v791_v19 = vadd.f32 %v783_v62, %v3755_v7 }
 0x2e2   :  { %v744_v61 = vpop.f32.mrf.mxu0  ;;  %v785_v12 = vpop.f32.mrf.mxu1 }
 0x2e3   :  { %3212 = vtanh.f32 %v792_v1  ;;  %v796_v58 = vmul.f32 0.5, %v789_v24  ;;  %v801_v23 = vmul.f32 0.5, %v791_v19  ;;  %v4957_v19 = vld [vmem:[#allocation5_spill] sm:$0xff] }
 0x2e4   :  { %v745_v26 = vpop.f32.mrf.mxu0  ;;  %v786_v22 = vpop.f32.mrf.mxu1 }
 0x2e5   :  { %3214 = vtanh.f32 %v796_v58 }
 0x2e6   :  { %3216 = vtanh.f32 %v790_v33  ;;  %v4956_v33 = vld [vmem:[#allocation13_spill] sm:$0xff] }
 0x2e7   :  { %3218 = vtanh.f32 %v801_v23 }
 0x2f0   :  { %v3213_v31 = vpop.eup %3212 }
 0x2f1   :  { %v794_v15 = vmul.f32 0.5, %v3213_v31 }
 0x2f2   :  { %v3215_v3 = vpop.eup %3214 }
 0x2f3   :  { %v795_v13 = vadd.f32 0.5, %v794_v15  ;;  %v798_v17 = vmul.f32 0.5, %v3215_v3  ;;  %v3217_v55 = vpop.eup %3216 }
 0x2f4   :  { %v3219_v20 = vpop.eup %3218 }
 0x2f5   :  { %v799_v5 = vadd.f32 0.5, %v798_v17  ;;  %v806_v2 = vmul.f32 %v3217_v55, %v795_v13  ;;  %v803_v30 = vmul.f32 0.5, %v3219_v20 }
 0x2f7   :  { %v805_v56 = vmul.f32 %v799_v5, %v3886_v63  ;;  %v804_v57 = vadd.f32 0.5, %v803_v30 }
 0x2f9   :  { %v3928_v4 = vadd.f32 %v806_v2, %v805_v56 }
 0x2fb   :  { %3220 = vtanh.f32 %v3928_v4 }
 0x308   :  { %v3221_v7 = vpop.eup %3220 }
 0x309   :  { %v809_v60 = vmul.f32 %v3221_v7, %v804_v57 }
 0x30b   :  { %v817_v59 = vpack.c.bf16 %v809_v60, %v809_v60 }
 0x30d   :  { %851 = vmatmul.mubr.bf16.vlgmr.msra.gmra.mxu0 %v817_v59  ;;  %892 = vmatmul.mubr.bf16.vlgmr.msra.gmra.mxu1 %v817_v59 }
 0x30e   :  { %931 = vmatpush1.bf16.msra.mxu0 %v3465_v9  ;;  %972 = vmatpush1.bf16.msra.mxu1 %v3605_v38 }
 0x30f   :  { %932 = vmatprep.subr.bf16.mxu0 %v3471_v10  ;;  %973 = vmatprep.subr.bf16.mxu1 %v3612_v39 }
 0x310   :  { %962 = vmatprep.mubr.bf16.mxu0 %v4955_v0  ;;  %1003 = vmatprep.mubr.bf16.mxu1 %v4955_v0 }
 0x312   :  { %933 = vmatpush1.bf16.msra.mxu0 %v3477_v11  ;;  %974 = vmatpush1.bf16.msra.mxu1 %v3622_v40 }
 0x313   :  { %934 = vmatprep.subr.bf16.mxu0 %v3491_v14  ;;  %975 = vmatprep.subr.bf16.mxu1 %v3629_v41 }
 0x316   :  { %935 = vmatpush1.bf16.msra.mxu0 %v3497_v16  ;;  %976 = vmatpush1.bf16.msra.mxu1 %v3637_v42 }
 0x317   :  { %936 = vmatprep.subr.bf16.mxu0 %v3506_v18  ;;  %977 = vmatprep.subr.bf16.mxu1 %v3644_v43 }
 0x31a   :  { %937 = vmatpush1.bf16.msra.mxu0 %v3512_v21  ;;  %978 = vmatpush1.bf16.msra.mxu1 %v3653_v44 }
 0x31b   :  { %938 = vmatprep.subr.bf16.mxu0 %v3528_v25  ;;  %979 = vmatprep.subr.bf16.mxu1 %v3659_v45 }
 0x31e   :  { %939 = vmatpush1.bf16.msra.mxu0 %v3535_v27  ;;  %980 = vmatpush1.bf16.msra.mxu1 %v3667_v46 }
 0x31f   :  { %940 = vmatprep.subr.bf16.mxu0 %v3542_v28  ;;  %981 = vmatprep.subr.bf16.mxu1 %v3673_v47 }
 0x322   :  { %941 = vmatpush1.bf16.msra.mxu0 %v3552_v29  ;;  %982 = vmatpush1.bf16.msra.mxu1 %v3679_v48 }
 0x323   :  { %942 = vmatprep.subr.bf16.mxu0 %v3565_v32  ;;  %983 = vmatprep.subr.bf16.mxu1 %v3685_v49 }
 0x326   :  { %943 = vmatpush1.bf16.msra.mxu0 %v3573_v34  ;;  %984 = vmatpush1.bf16.msra.mxu1 %v3691_v50 }
 0x327   :  { %944 = vmatprep.subr.bf16.mxu0 %v3580_v35  ;;  %985 = vmatprep.subr.bf16.mxu1 %v3697_v51 }
 0x32a   :  { %945 = vmatpush1.bf16.msra.mxu0 %v3590_v36  ;;  %986 = vmatpush1.bf16.msra.mxu1 %v3703_v52 }
 0x32b   :  { %1042 = vmatprep.subr.bf16.mxu0 %v3458_v6  ;;  %1083 = vmatprep.subr.bf16.mxu1 %v3597_v37  ;;  %v4958_v6 = vld [vmem:[#allocation6_spill] sm:$0xff] }
 0x3cd   :  { %v852_v63 = vpop.f32.mrf.mxu0  ;;  %v893_v62 = vpop.f32.mrf.mxu1 }
 0x3ce   :  { %v900_v1 = vadd.f32 %v852_v63, %v3799_v54  ;;  %v902_v23 = vadd.f32 %v893_v62, %v4957_v19  ;;  %v4962_v19 = vld [vmem:[#allocation8_spill] sm:$0xff] }
 0x3cf   :  { %v854_v24 = vpop.f32.mrf.mxu0  ;;  %v895_v61 = vpop.f32.mrf.mxu1 }
 0x3d0   :  { %v904_v12 = vmul.f32 0.5, %v900_v1  ;;  %v901_v58 = vadd.f32 %v854_v24, %v4956_v33  ;;  %v903_v13 = vadd.f32 %v895_v61, %v4958_v6 }
 0x3d1   :  { %v856_v26 = vpop.f32.mrf.mxu0  ;;  %v897_v22 = vpop.f32.mrf.mxu1 }
 0x3d2   :  { %3222 = vtanh.f32 %v904_v12  ;;  %v908_v31 = vmul.f32 0.5, %v901_v58  ;;  %v913_v17 = vmul.f32 0.5, %v903_v13  ;;  %v4961_v12 = vld [vmem:[#allocation7_spill] sm:$0xff] }
 0x3d3   :  { %v857_v15 = vpop.f32.mrf.mxu0  ;;  %v898_v3 = vpop.f32.mrf.mxu1 }
 0x3d4   :  { %3224 = vtanh.f32 %v908_v31 }
 0x3d5   :  { %3226 = vtanh.f32 %v902_v23 }
 0x3d6   :  { %3228 = vtanh.f32 %v913_v17 }
 0x3df   :  { %v3223_v55 = vpop.eup %3222 }
 0x3e0   :  { %v906_v54 = vmul.f32 0.5, %v3223_v55 }
 0x3e1   :  { %v3225_v5 = vpop.eup %3224 }
 0x3e2   :  { %v907_v2 = vadd.f32 0.5, %v906_v54  ;;  %v910_v56 = vmul.f32 0.5, %v3225_v5  ;;  %v3227_v20 = vpop.eup %3226 }
 0x3e3   :  { %v3229_v59 = vpop.eup %3228 }
 0x3e4   :  { %v911_v30 = vadd.f32 0.5, %v910_v56  ;;  %v918_v57 = vmul.f32 %v3227_v20, %v907_v2  ;;  %v915_v63 = vmul.f32 0.5, %v3229_v59 }
 0x3e6   :  { %v917_v7 = vmul.f32 %v911_v30, %v3928_v4  ;;  %v916_v62 = vadd.f32 0.5, %v915_v63 }
 0x3e8   :  { %v3970_v60 = vadd.f32 %v918_v57, %v917_v7 }
 0x3ea   :  { %3230 = vtanh.f32 %v3970_v60 }
 0x3f7   :  { %v3231_v1 = vpop.eup %3230 }
 0x3f8   :  { %v921_v24 = vmul.f32 %v3231_v1, %v916_v62  ;;  %v4023_v62 = vld [vmem:[%s4920_s2 + $0xe0] ss:$16 sps:$4 sm:$0xff]  }
 0x3f9   :  { %v4039_v1 = vld [vmem:[%s4920_s2 + $0xc0] ss:$16 sps:$4 sm:$0xff]  }
 0x3fa   :  { %v929_v61 = vpack.c.bf16 %v921_v24, %v921_v24 }
 0x3fc   :  { %963 = vmatmul.mubr.bf16.vlgmr.msra.gmra.mxu0 %v929_v61  ;;  %1004 = vmatmul.mubr.bf16.vlgmr.msra.gmra.mxu1 %v929_v61 }
 0x3fd   :  { %1043 = vmatpush1.bf16.msra.mxu0 %v3465_v9  ;;  %1084 = vmatpush1.bf16.msra.mxu1 %v3605_v38  ;;  %v4008_v9 = vld [vmem:[%s4920_s2 + $0xe4] ss:$16 sps:$4 sm:$0xff]  }
 0x3fe   :  { %1044 = vmatprep.subr.bf16.mxu0 %v3471_v10  ;;  %1085 = vmatprep.subr.bf16.mxu1 %v3612_v39 }
 0x3ff   :  { %1074 = vmatprep.mubr.bf16.mxu0 %v4955_v0  ;;  %1115 = vmatprep.mubr.bf16.mxu1 %v4955_v0 }
 0x401   :  { %1045 = vmatpush1.bf16.msra.mxu0 %v3477_v11  ;;  %1086 = vmatpush1.bf16.msra.mxu1 %v3622_v40 }
 0x402   :  { %1046 = vmatprep.subr.bf16.mxu0 %v3491_v14  ;;  %1087 = vmatprep.subr.bf16.mxu1 %v3629_v41  ;;  %v4959_v14 = vld [vmem:[#allocation15_spill] sm:$0xff] }
 0x405   :  { %1047 = vmatpush1.bf16.msra.mxu0 %v3497_v16  ;;  %1088 = vmatpush1.bf16.msra.mxu1 %v3637_v42 }
 0x406   :  { %1048 = vmatprep.subr.bf16.mxu0 %v3506_v18  ;;  %1089 = vmatprep.subr.bf16.mxu1 %v3644_v43 }
 0x409   :  { %1049 = vmatpush1.bf16.msra.mxu0 %v3512_v21  ;;  %1090 = vmatpush1.bf16.msra.mxu1 %v3653_v44 }
 0x40a   :  { %1050 = vmatprep.subr.bf16.mxu0 %v3528_v25  ;;  %1091 = vmatprep.subr.bf16.mxu1 %v3659_v45 }
 0x40d   :  { %1051 = vmatpush1.bf16.msra.mxu0 %v3535_v27  ;;  %1092 = vmatpush1.bf16.msra.mxu1 %v3667_v46  ;;  %v4960_v27 = vld [vmem:[#allocation17_spill] sm:$0xff] }
 0x40e   :  { %1052 = vmatprep.subr.bf16.mxu0 %v3542_v28  ;;  %1093 = vmatprep.subr.bf16.mxu1 %v3673_v47 }
 0x411   :  { %1053 = vmatpush1.bf16.msra.mxu0 %v3552_v29  ;;  %1094 = vmatpush1.bf16.msra.mxu1 %v3679_v48 }
 0x412   :  { %1054 = vmatprep.subr.bf16.mxu0 %v3565_v32  ;;  %1095 = vmatprep.subr.bf16.mxu1 %v3685_v49 }
 0x415   :  { %1055 = vmatpush1.bf16.msra.mxu0 %v3573_v34  ;;  %1096 = vmatpush1.bf16.msra.mxu1 %v3691_v50 }
 0x416   :  { %1056 = vmatprep.subr.bf16.mxu0 %v3580_v35  ;;  %1097 = vmatprep.subr.bf16.mxu1 %v3697_v51 }
 0x419   :  { %1057 = vmatpush1.bf16.msra.mxu0 %v3590_v36  ;;  %1098 = vmatpush1.bf16.msra.mxu1 %v3703_v52 }
 0x41a   :  { %1154 = vmatprep.subr.bf16.mxu0 %v4008_v9  ;;  %1195 = vmatprep.subr.bf16.mxu1 %v3597_v37 }
 0x4bc   :  { %v964_v10 = vpop.f32.mrf.mxu0  ;;  %v1005_v11 = vpop.f32.mrf.mxu1 }
 0x4bd   :  { %v1012_v16 = vadd.f32 %v964_v10, %v4959_v14  ;;  %v1014_v33 = vadd.f32 %v1005_v11, %v4961_v12 }
 0x4be   :  { %v966_v18 = vpop.f32.mrf.mxu0  ;;  %v1007_v21 = vpop.f32.mrf.mxu1 }
 0x4bf   :  { %v1016_v25 = vmul.f32 0.5, %v1012_v16  ;;  %v1013_v28 = vadd.f32 %v966_v18, %v4960_v27  ;;  %v1015_v23 = vadd.f32 %v1007_v21, %v4962_v19 }
 0x4c0   :  { %v968_v29 = vpop.f32.mrf.mxu0  ;;  %v1009_v4 = vpop.f32.mrf.mxu1 }
 0x4c1   :  { %3232 = vtanh.f32 %v1016_v25  ;;  %v1020_v58 = vmul.f32 0.5, %v1013_v28  ;;  %v1025_v31 = vmul.f32 0.5, %v1015_v23 }
 0x4c2   :  { %v969_v26 = vpop.f32.mrf.mxu0  ;;  %v1010_v22 = vpop.f32.mrf.mxu1 }
 0x4c3   :  { %3234 = vtanh.f32 %v1020_v58 }
 0x4c4   :  { %3236 = vtanh.f32 %v1014_v33 }
 0x4c5   :  { %3238 = vtanh.f32 %v1025_v31 }
 0x4ce   :  { %v3233_v15 = vpop.eup %3232 }
 0x4cf   :  { %v1018_v3 = vmul.f32 0.5, %v3233_v15 }
 0x4d0   :  { %v3235_v6 = vpop.eup %3234 }
 0x4d1   :  { %v1019_v13 = vadd.f32 0.5, %v1018_v3  ;;  %v1022_v17 = vmul.f32 0.5, %v3235_v6  ;;  %v3237_v55 = vpop.eup %3236  ;;  %v3364_v3 = vld [vmem:[%s4920_s2 + $0xe8] ss:$16 sps:$4 sm:$0xff]   ;;  %v3365_v6 = vld [vmem:[%s4920_s2 + $0xcc] ss:$16 sps:$4 sm:$0xff]  }
 0x4d2   :  { %v3239_v20 = vpop.eup %3238 }
 0x4d3   :  { %v1023_v54 = vadd.f32 0.5, %v1022_v17  ;;  %v1030_v5 = vmul.f32 %v3237_v55, %v1019_v13  ;;  %v1027_v30 = vmul.f32 0.5, %v3239_v20  ;;  %v3366_v13 = vld [vmem:[%s4920_s2 + $0xc8] ss:$16 sps:$4 sm:$0xff]   ;;  %v3367_v17 = vld [vmem:[%s4920_s2 + $0xac] ss:$16 sps:$4 sm:$0xff]  }
 0x4d4   :  { %v3368_v55 = vld [vmem:[%s4920_s2 + $0xa8] ss:$16 sps:$4 sm:$0xff]   ;;  %v3373_v20 = vld [vmem:[%s4920_s2 + $0x4c] ss:$16 sps:$4 sm:$0xff]  }
 0x4d5   :  { %v1029_v2 = vmul.f32 %v1023_v54, %v3970_v60  ;;  %v1028_v57 = vadd.f32 0.5, %v1027_v30  ;;  %v4030_v60 = vld [vmem:[%s4920_s2 + $0xc4] ss:$16 sps:$4 sm:$0xff]   ;;  %v3369_v54 = vld [vmem:[%s4920_s2 + $0x8c] ss:$16 sps:$4 sm:$0xff]  }
 0x4d6   :  { %v3374_v30 = vld [vmem:[%s4920_s2 + $0x48] ss:$16 sps:$4 sm:$0xff]  }
 0x4d7   :  { %v4017_v56 = vadd.f32 %v1030_v5, %v1029_v2  ;;  %v3370_v5 = vld [vmem:[%s4920_s2 + $0x88] ss:$16 sps:$4 sm:$0xff]   ;;  %v3371_v2 = vld [vmem:[%s4920_s2 + $0x6c] ss:$16 sps:$4 sm:$0xff]  }
 0x4d9   :  { %3240 = vtanh.f32 %v4017_v56 }
 0x4e6   :  { %v3241_v7 = vpop.eup %3240 }
 0x4e7   :  { %v1033_v59 = vmul.f32 %v3241_v7, %v1028_v57  ;;  %v3375_v57 = vld [vmem:[%s4920_s2 + $0x24] ss:$16 sps:$4 sm:$0xff]   ;;  %v3376_v7 = vld [vmem:[%s4920_s2 + $0x2c] ss:$16 sps:$4 sm:$0xff]  }
 0x4e9   :  { %v1041_v63 = vpack.c.bf16 %v1033_v59, %v1033_v59  ;;  %v3377_v59 = vld [vmem:[%s4920_s2 + $0x20] ss:$16 sps:$4 sm:$0xff]  }
 0x4eb   :  { %1075 = vmatmul.mubr.bf16.vlgmr.msra.gmra.mxu0 %v1041_v63  ;;  %1116 = vmatmul.mubr.bf16.vlgmr.msra.gmra.mxu1 %v1041_v63  ;;  %v3378_v63 = vld [vmem:[%s4920_s2 + $0x28] ss:$16 sps:$4 sm:$0xff]  }
 0x4ec   :  { %1155 = vmatpush1.bf16.msra.mxu0 %v4023_v62  ;;  %1196 = vmatpush1.bf16.msra.mxu1 %v3605_v38  ;;  %v4046_v38 = vld [vmem:[%s4920_s2 + $0xa4] ss:$16 sps:$4 sm:$0xff]  }
 0x4ed   :  { %1156 = vmatprep.subr.bf16.mxu0 %v4030_v60  ;;  %1197 = vmatprep.subr.bf16.mxu1 %v3612_v39  ;;  %v4053_v39 = vld [vmem:[%s4920_s2 + $0xa0] ss:$16 sps:$4 sm:$0xff]  }
 0x4ee   :  { %1186 = vmatprep.mubr.bf16.mxu0 %v4955_v0  ;;  %1227 = vmatprep.mubr.bf16.mxu1 %v4955_v0 }
 0x4f0   :  { %1157 = vmatpush1.bf16.msra.mxu0 %v4039_v1  ;;  %1198 = vmatpush1.bf16.msra.mxu1 %v3622_v40  ;;  %v4060_v40 = vld [vmem:[%s4920_s2 + $0x84] ss:$16 sps:$4 sm:$0xff]  }
 0x4f1   :  { %1158 = vmatprep.subr.bf16.mxu0 %v4046_v38  ;;  %1199 = vmatprep.subr.bf16.mxu1 %v3629_v41  ;;  %v4067_v41 = vld [vmem:[%s4920_s2 + $0x80] ss:$16 sps:$4 sm:$0xff]  }
 0x4f4   :  { %1159 = vmatpush1.bf16.msra.mxu0 %v4053_v39  ;;  %1200 = vmatpush1.bf16.msra.mxu1 %v3637_v42  ;;  %v4074_v42 = vld [vmem:[%s4920_s2 + $0x64] ss:$16 sps:$4 sm:$0xff]  }
 0x4f5   :  { %1160 = vmatprep.subr.bf16.mxu0 %v4060_v40  ;;  %1201 = vmatprep.subr.bf16.mxu1 %v3644_v43  ;;  %v4081_v43 = vld [vmem:[%s4920_s2 + $0x60] ss:$16 sps:$4 sm:$0xff]  }
 0x4f8   :  { %1161 = vmatpush1.bf16.msra.mxu0 %v4067_v41  ;;  %1202 = vmatpush1.bf16.msra.mxu1 %v3653_v44  ;;  %v4088_v44 = vld [vmem:[%s4920_s2 + $0x44] ss:$16 sps:$4 sm:$0xff]  }
 0x4f9   :  { %1162 = vmatprep.subr.bf16.mxu0 %v4074_v42  ;;  %1203 = vmatprep.subr.bf16.mxu1 %v3659_v45  ;;  %v4095_v45 = vld [vmem:[%s4920_s2 + $0x40] ss:$16 sps:$4 sm:$0xff]  }
 0x4fc   :  { %1163 = vmatpush1.bf16.msra.mxu0 %v4081_v43  ;;  %1204 = vmatpush1.bf16.msra.mxu1 %v3667_v46 }
 0x4fd   :  { %1164 = vmatprep.subr.bf16.mxu0 %v4088_v44  ;;  %1205 = vmatprep.subr.bf16.mxu1 %v3673_v47  ;;  %v4963_v47 = vld [vmem:[#allocation18_spill] sm:$0xff] }
 0x500   :  { %1165 = vmatpush1.bf16.msra.mxu0 %v4095_v45  ;;  %1206 = vmatpush1.bf16.msra.mxu1 %v3679_v48 }
 0x501   :  { %1166 = vmatprep.subr.bf16.mxu0 %v3565_v32  ;;  %1207 = vmatprep.subr.bf16.mxu1 %v3685_v49 }
 0x504   :  { %1167 = vmatpush1.bf16.msra.mxu0 %v3573_v34  ;;  %1208 = vmatpush1.bf16.msra.mxu1 %v3691_v50  ;;  %v4964_v50 = vld [vmem:[#allocation19_spill] sm:$0xff] }
 0x505   :  { %1168 = vmatprep.subr.bf16.mxu0 %v3580_v35  ;;  %1209 = vmatprep.subr.bf16.mxu1 %v3697_v51  ;;  %v4965_v51 = vld [vmem:[#allocation9_spill] sm:$0xff] }
 0x508   :  { %1169 = vmatpush1.bf16.msra.mxu0 %v3590_v36  ;;  %1210 = vmatpush1.bf16.msra.mxu1 %v3703_v52 }
 0x509   :  { %1266 = vmatprep.subr.bf16.mxu0 %v4008_v9  ;;  %1307 = vmatprep.subr.bf16.mxu1 %v3597_v37  ;;  %v4966_v37 = vld [vmem:[#allocation10_spill] sm:$0xff] }
 0x5ab   :  { %v1076_v46 = vpop.f32.mrf.mxu0  ;;  %v1117_v32 = vpop.f32.mrf.mxu1 }
 0x5ac   :  { %v1124_v48 = vadd.f32 %v1076_v46, %v4963_v47  ;;  %v1126_v36 = vadd.f32 %v1117_v32, %v4965_v51  ;;  %v4968_v46 = vld [vmem:[#allocation21_spill] sm:$0xff] }
 0x5ad   :  { %v1078_v49 = vpop.f32.mrf.mxu0  ;;  %v1119_v34 = vpop.f32.mrf.mxu1 }
 0x5ae   :  { %v1128_v24 = vmul.f32 0.5, %v1124_v48  ;;  %v1125_v61 = vadd.f32 %v1078_v49, %v4964_v50  ;;  %v1127_v9 = vadd.f32 %v1119_v34, %v4966_v37  ;;  %v4969_v49 = vld [vmem:[#allocation11_spill] sm:$0xff] }
 0x5af   :  { %v1080_v35 = vpop.f32.mrf.mxu0  ;;  %v1121_v10 = vpop.f32.mrf.mxu1 }
 0x5b0   :  { %3242 = vtanh.f32 %v1128_v24  ;;  %v1132_v11 = vmul.f32 0.5, %v1125_v61  ;;  %v1137_v16 = vmul.f32 0.5, %v1127_v9  ;;  %v4970_v35 = vld [vmem:[#allocation12_spill] sm:$0xff] }
 0x5b1   :  { %v1081_v52 = vpop.f32.mrf.mxu0  ;;  %v1122_v14 = vpop.f32.mrf.mxu1 }
 0x5b2   :  { %3244 = vtanh.f32 %v1132_v11 }
 0x5b3   :  { %3246 = vtanh.f32 %v1126_v36 }
 0x5b4   :  { %3248 = vtanh.f32 %v1137_v16 }
 0x5bd   :  { %v3243_v18 = vpop.eup %3242 }
 0x5be   :  { %v1130_v21 = vmul.f32 0.5, %v3243_v18 }
 0x5bf   :  { %v3245_v25 = vpop.eup %3244 }
 0x5c0   :  { %v1131_v27 = vadd.f32 0.5, %v1130_v21  ;;  %v1134_v28 = vmul.f32 0.5, %v3245_v25  ;;  %v3247_v29 = vpop.eup %3246 }
 0x5c1   :  { %v3249_v26 = vpop.eup %3248 }
 0x5c2   :  { %v1135_v4 = vadd.f32 0.5, %v1134_v28  ;;  %v1142_v12 = vmul.f32 %v3247_v29, %v1131_v27  ;;  %v1139_v22 = vmul.f32 0.5, %v3249_v26  ;;  %v3088_v26 = vld [vmem:[%s4922_s4 + $0xe0] ss:$16 sps:$4 sm:$0xff]  }
 0x5c4   :  { %v1141_v33 = vmul.f32 %v1135_v4, %v4017_v56  ;;  %v1140_v19 = vadd.f32 0.5, %v1139_v22  ;;  %v3372_v56 = vld [vmem:[%s4920_s2 + $0x68] ss:$16 sps:$4 sm:$0xff]  }
 0x5c5   :  { %v3091_v22 = vld [vmem:[%s4922_s4 + $0xe8] ss:$16 sps:$4 sm:$0xff]  }
 0x5c6   :  { %v4114_v58 = vadd.f32 %v1142_v12, %v1141_v33 }
 0x5c8   :  { %3250 = vtanh.f32 %v4114_v58 }
 0x5d5   :  { %v3251_v23 = vpop.eup %3250 }
 0x5d6   :  { %v1145_v31 = vmul.f32 %v3251_v23, %v1140_v19  ;;  %v3093_v19 = vld [vmem:[%s4922_s4 + $0xec] ss:$16 sps:$4 sm:$0xff]   ;;  %v3096_v23 = vld [vmem:[%s4922_s4 + $0xc4] ss:$16 sps:$4 sm:$0xff]  }
 0x5d8   :  { %v1153_v15 = vpack.c.bf16 %v1145_v31, %v1145_v31  ;;  %v3099_v31 = vld [vmem:[%s4922_s4 + $0xcc] ss:$16 sps:$4 sm:$0xff]  }
 0x5da   :  { %1187 = vmatmul.mubr.bf16.vlgmr.msra.gmra.mxu0 %v1153_v15  ;;  %1228 = vmatmul.mubr.bf16.vlgmr.msra.gmra.mxu1 %v1153_v15  ;;  %v3094_v15 = vld [vmem:[%s4922_s4 + $0xc0] ss:$16 sps:$4 sm:$0xff]  }
 0x5db   :  { %1267 = vmatpush1.bf16.msra.mxu0 %v4023_v62  ;;  %1308 = vmatpush1.bf16.msra.mxu1 %v3364_v3  ;;  %v3379_v62 = vld [vmem:[%s4920_s2 + $0x4] ss:$16 sps:$4 sm:$0xff]   ;;  %v3097_v3 = vld [vmem:[%s4922_s4 + $0xc8] ss:$16 sps:$4 sm:$0xff]  }
 0x5dc   :  { %1268 = vmatprep.subr.bf16.mxu0 %v4030_v60  ;;  %1309 = vmatprep.subr.bf16.mxu1 %v3365_v6  ;;  %v3380_v60 = vld [vmem:[%s4920_s2 + $0xc] ss:$16 sps:$4 sm:$0xff]   ;;  %v3102_v6 = vld [vmem:[%s4922_s4 + $0xa4] ss:$16 sps:$4 sm:$0xff]  }
 0x5dd   :  { %1298 = vmatprep.mubr.bf16.mxu0 %v4955_v0  ;;  %1339 = vmatprep.mubr.bf16.mxu1 %v4955_v0 }
 0x5df   :  { %1269 = vmatpush1.bf16.msra.mxu0 %v4039_v1  ;;  %1310 = vmatpush1.bf16.msra.mxu1 %v3366_v13  ;;  %v3381_v1 = vld [vmem:[%s4920_s2] ss:$16 sps:$4 sm:$0xff]   ;;  %v3105_v13 = vld [vmem:[%s4922_s4 + $0xac] ss:$16 sps:$4 sm:$0xff]  }
 0x5e0   :  { %1270 = vmatprep.subr.bf16.mxu0 %v4046_v38  ;;  %1311 = vmatprep.subr.bf16.mxu1 %v3367_v17  ;;  %v3382_v38 = vld [vmem:[%s4920_s2 + $0x8] ss:$16 sps:$4 sm:$0xff]   ;;  %v3100_v17 = vld [vmem:[%s4922_s4 + $0xa0] ss:$16 sps:$4 sm:$0xff]  }
 0x5e3   :  { %1271 = vmatpush1.bf16.msra.mxu0 %v4053_v39  ;;  %1312 = vmatpush1.bf16.msra.mxu1 %v3368_v55  ;;  %v3103_v55 = vld [vmem:[%s4922_s4 + $0xa8] ss:$16 sps:$4 sm:$0xff]  }
 0x5e4   :  { %1272 = vmatprep.subr.bf16.mxu0 %v4060_v40  ;;  %1313 = vmatprep.subr.bf16.mxu1 %v3369_v54  ;;  %v3108_v54 = vld [vmem:[%s4922_s4 + $0x84] ss:$16 sps:$4 sm:$0xff]  }
 0x5e7   :  { %1273 = vmatpush1.bf16.msra.mxu0 %v4067_v41  ;;  %1314 = vmatpush1.bf16.msra.mxu1 %v3370_v5  ;;  %v4967_v41 = vld [vmem:[#allocation20_spill] sm:$0xff]  ;;  %v3111_v5 = vld [vmem:[%s4922_s4 + $0x8c] ss:$16 sps:$4 sm:$0xff]  }
 0x5e8   :  { %1274 = vmatprep.subr.bf16.mxu0 %v4074_v42  ;;  %1315 = vmatprep.subr.bf16.mxu1 %v3371_v2  ;;  %v3106_v2 = vld [vmem:[%s4922_s4 + $0x80] ss:$16 sps:$4 sm:$0xff]  }
 0x5eb   :  { %1275 = vmatpush1.bf16.msra.mxu0 %v4081_v43  ;;  %1316 = vmatpush1.bf16.msra.mxu1 %v3372_v56  ;;  %v3109_v56 = vld [vmem:[%s4922_s4 + $0x88] ss:$16 sps:$4 sm:$0xff]  }
 0x5ec   :  { %1276 = vmatprep.subr.bf16.mxu0 %v4088_v44  ;;  %1317 = vmatprep.subr.bf16.mxu1 %v3373_v20  ;;  %v3114_v20 = vld [vmem:[%s4922_s4 + $0x64] ss:$16 sps:$4 sm:$0xff]  }
 0x5ef   :  { %1277 = vmatpush1.bf16.msra.mxu0 %v4095_v45  ;;  %1318 = vmatpush1.bf16.msra.mxu1 %v3374_v30  ;;  %v3117_v30 = vld [vmem:[%s4922_s4 + $0x6c] ss:$16 sps:$4 sm:$0xff]  }
 0x5f0   :  { %1278 = vmatprep.subr.bf16.mxu0 %v3375_v57  ;;  %1319 = vmatprep.subr.bf16.mxu1 %v3376_v7  ;;  %v3112_v57 = vld [vmem:[%s4922_s4 + $0x60] ss:$16 sps:$4 sm:$0xff]   ;;  %v3115_v7 = vld [vmem:[%s4922_s4 + $0x68] ss:$16 sps:$4 sm:$0xff]  }
 0x5f3   :  { %1279 = vmatpush1.bf16.msra.mxu0 %v3377_v59  ;;  %1320 = vmatpush1.bf16.msra.mxu1 %v3378_v63  ;;  %v3120_v59 = vld [vmem:[%s4922_s4 + $0x44] ss:$16 sps:$4 sm:$0xff]   ;;  %v3123_v63 = vld [vmem:[%s4922_s4 + $0x4c] ss:$16 sps:$4 sm:$0xff]  }
 0x5f4   :  { %1280 = vmatprep.subr.bf16.mxu0 %v3379_v62  ;;  %1321 = vmatprep.subr.bf16.mxu1 %v3380_v60  ;;  %v3118_v62 = vld [vmem:[%s4922_s4 + $0x40] ss:$16 sps:$4 sm:$0xff]   ;;  %v3121_v60 = vld [vmem:[%s4922_s4 + $0x48] ss:$16 sps:$4 sm:$0xff]  }
 0x5f7   :  { %1281 = vmatpush1.bf16.msra.mxu0 %v3381_v1  ;;  %1322 = vmatpush1.bf16.msra.mxu1 %v3382_v38  ;;  %v3126_v1 = vld [vmem:[%s4922_s4 + $0x24] ss:$16 sps:$4 sm:$0xff]   ;;  %v3129_v38 = vld [vmem:[%s4922_s4 + $0x2c] ss:$16 sps:$4 sm:$0xff]  }
 0x5f8   :  { %1626 = vmatprep.subr.bf16.mxu1 %v3093_v19 }
 0x69a   :  { %v1188_v39 = vpop.f32.mrf.mxu0  ;;  %v1229_v40 = vpop.f32.mrf.mxu1 }
 0x69b   :  { %v1236_v42 = vadd.f32 %v1188_v39, %v4967_v41  ;;  %v1238_v34 = vadd.f32 %v1229_v40, %v4969_v49  ;;  %v3124_v39 = vld [vmem:[%s4922_s4 + $0x20] ss:$16 sps:$4 sm:$0xff]   ;;  %v3127_v40 = vld [vmem:[%s4922_s4 + $0x28] ss:$16 sps:$4 sm:$0xff]   ;;  %v3132_v41 = vld [vmem:[%s4922_s4 + $0x4] ss:$16 sps:$4 sm:$0xff]  }
 0x69c   :  { %v1190_v43 = vpop.f32.mrf.mxu0  ;;  %v1231_v44 = vpop.f32.mrf.mxu1  ;;  %v4971_v49 = vld [vmem:[#allocation22_spill] sm:$0xff] }
 0x69d   :  { %v1240_v45 = vmul.f32 0.5, %v1236_v42  ;;  %v1237_v32 = vadd.f32 %v1190_v43, %v4968_v46  ;;  %v1239_v10 = vadd.f32 %v1231_v44, %v4970_v35  ;;  %v3135_v42 = vld [vmem:[%s4922_s4 + $0xc] ss:$16 sps:$4 sm:$0xff]   ;;  %v3130_v43 = vld [vmem:[%s4922_s4] ss:$16 sps:$4 sm:$0xff]  }
 0x69e   :  { %v1192_v47 = vpop.f32.mrf.mxu0  ;;  %v1233_v48 = vpop.f32.mrf.mxu1  ;;  %v3133_v44 = vld [vmem:[%s4922_s4 + $0x8] ss:$16 sps:$4 sm:$0xff]   ;;  %v4301_v46 = vld [vmem:[%s4923_s6 + $0xec] ss:$16 sps:$4 sm:$0xff]  }
 0x69f   :  { %3252 = vtanh.f32 %v1240_v45  ;;  %v1244_v24 = vmul.f32 0.5, %v1237_v32  ;;  %v1249_v51 = vmul.f32 0.5, %v1239_v10  ;;  %v4296_v45 = vld [vmem:[%s4923_s6 + $0xe4] ss:$16 sps:$4 sm:$0xff]   ;;  %v176_v48 = vadd.f32 %v3877_v53, %v3784_v8 }
 0x6a0   :  { %v1193_v50 = vpop.f32.mrf.mxu0  ;;  %v1234_v61 = vpop.f32.mrf.mxu1 }
 0x6a1   :  { %3254 = vtanh.f32 %v1244_v24 }
 0x6a2   :  { %3256 = vtanh.f32 %v1238_v34 }
 0x6a3   :  { %3258 = vtanh.f32 %v1249_v51 }
 0x6ac   :  { %v3253_v36 = vpop.eup %3252 }
 0x6ad   :  { %v1242_v11 = vmul.f32 0.5, %v3253_v36  ;;  %v4972_v36 = vld [vmem:[#allocation14_spill] sm:$0xff] }
 0x6ae   :  { %v3255_v52 = vpop.eup %3254 }
 0x6af   :  { %v1243_v14 = vadd.f32 0.5, %v1242_v11  ;;  %v1246_v37 = vmul.f32 0.5, %v3255_v52  ;;  %v3257_v9 = vpop.eup %3256 }
 0x6b0   :  { %v3259_v27 = vpop.eup %3258 }
 0x6b1   :  { %v1247_v16 = vadd.f32 0.5, %v1246_v37  ;;  %v1254_v18 = vmul.f32 %v3257_v9, %v1243_v14  ;;  %v1251_v28 = vmul.f32 0.5, %v3259_v27  ;;  %v4973_v9 = vld [vmem:[#allocation16_spill] sm:$0xff] }
 0x6b3   :  { %v1253_v21 = vmul.f32 %v1247_v16, %v4114_v58  ;;  %v1252_v29 = vadd.f32 0.5, %v1251_v28  ;;  %v3090_v58 = vld [vmem:[%s4922_s4 + $0xe4] ss:$16 sps:$4 sm:$0xff]  }
 0x6b4   :  { %1585 = vmatprep.subr.bf16.mxu0 %v3090_v58 }
 0x6b5   :  { %v4192_v25 = vadd.f32 %v1254_v18, %v1253_v21 }
 0x6b7   :  { %3260 = vtanh.f32 %v4192_v25 }
 0x6c4   :  { %v3261_v4 = vpop.eup %3260 }
 0x6c5   :  { %v1257_v12 = vmul.f32 %v3261_v4, %v1252_v29 }
 0x6c7   :  { %v1265_v33 = vpack.c.bf16 %v1257_v12, %v1257_v12 }
 0x6c9   :  { %1299 = vmatmul.mubr.bf16.vlgmr.msra.gmra.mxu0 %v1265_v33  ;;  %1340 = vmatmul.mubr.bf16.vlgmr.msra.gmra.mxu1 %v1265_v33 }
 0x6ca   :  { %1617 = vmatprep.mubr.bf16.mxu0 %v4955_v0  ;;  %1658 = vmatprep.mubr.bf16.mxu1 %v4955_v0 }
 0x6cb   :  { %1586 = vmatpush1.bf16.msra.mxu0 %v3088_v26  ;;  %1627 = vmatpush1.bf16.msra.mxu1 %v3091_v22 }
 0x6cc   :  { %1587 = vmatprep.subr.bf16.mxu0 %v3096_v23  ;;  %1628 = vmatprep.subr.bf16.mxu1 %v3099_v31 }
 0x6cf   :  { %1588 = vmatpush1.bf16.msra.mxu0 %v3094_v15  ;;  %1629 = vmatpush1.bf16.msra.mxu1 %v3097_v3  ;;  %v4314_v15 = vld [vmem:[%s4923_s6 + $0xe0] ss:$16 sps:$4 sm:$0xff]   ;;  %v4319_v3 = vld [vmem:[%s4923_s6 + $0xe8] ss:$16 sps:$4 sm:$0xff]  }
 0x6d0   :  { %1589 = vmatprep.subr.bf16.mxu0 %v3102_v6  ;;  %1630 = vmatprep.subr.bf16.mxu1 %v3105_v13  ;;  %v4329_v13 = vld [vmem:[%s4923_s6 + $0xcc] ss:$16 sps:$4 sm:$0xff]  }
 0x6d3   :  { %1590 = vmatpush1.bf16.msra.mxu0 %v3100_v17  ;;  %1631 = vmatpush1.bf16.msra.mxu1 %v3103_v55  ;;  %v4336_v17 = vld [vmem:[%s4923_s6 + $0xc0] ss:$16 sps:$4 sm:$0xff]   ;;  %v4341_v55 = vld [vmem:[%s4923_s6 + $0xc8] ss:$16 sps:$4 sm:$0xff]  }
 0x6d4   :  { %1591 = vmatprep.subr.bf16.mxu0 %v3108_v54  ;;  %1632 = vmatprep.subr.bf16.mxu1 %v3111_v5  ;;  %v4348_v54 = vld [vmem:[%s4923_s6 + $0xa4] ss:$16 sps:$4 sm:$0xff]   ;;  %v4353_v5 = vld [vmem:[%s4923_s6 + $0xac] ss:$16 sps:$4 sm:$0xff]  }
 0x6d7   :  { %1592 = vmatpush1.bf16.msra.mxu0 %v3106_v2  ;;  %1633 = vmatpush1.bf16.msra.mxu1 %v3109_v56  ;;  %v4362_v2 = vld [vmem:[%s4923_s6 + $0xa0] ss:$16 sps:$4 sm:$0xff]   ;;  %v4367_v56 = vld [vmem:[%s4923_s6 + $0xa8] ss:$16 sps:$4 sm:$0xff]  }
 0x6d8   :  { %1593 = vmatprep.subr.bf16.mxu0 %v3114_v20  ;;  %1634 = vmatprep.subr.bf16.mxu1 %v3117_v30  ;;  %v4374_v20 = vld [vmem:[%s4923_s6 + $0x84] ss:$16 sps:$4 sm:$0xff]   ;;  %v4379_v30 = vld [vmem:[%s4923_s6 + $0x8c] ss:$16 sps:$4 sm:$0xff]  }
 0x6db   :  { %1594 = vmatpush1.bf16.msra.mxu0 %v3112_v57  ;;  %1635 = vmatpush1.bf16.msra.mxu1 %v3115_v7  ;;  %v4386_v57 = vld [vmem:[%s4923_s6 + $0x80] ss:$16 sps:$4 sm:$0xff]   ;;  %v4391_v7 = vld [vmem:[%s4923_s6 + $0x88] ss:$16 sps:$4 sm:$0xff]  }
 0x6dc   :  { %1595 = vmatprep.subr.bf16.mxu0 %v3120_v59  ;;  %1636 = vmatprep.subr.bf16.mxu1 %v3123_v63  ;;  %v4398_v59 = vld [vmem:[%s4923_s6 + $0x64] ss:$16 sps:$4 sm:$0xff]   ;;  %v4403_v63 = vld [vmem:[%s4923_s6 + $0x6c] ss:$16 sps:$4 sm:$0xff]  }
 0x6df   :  { %1596 = vmatpush1.bf16.msra.mxu0 %v3118_v62  ;;  %1637 = vmatpush1.bf16.msra.mxu1 %v3121_v60  ;;  %v4410_v62 = vld [vmem:[%s4923_s6 + $0x60] ss:$16 sps:$4 sm:$0xff]   ;;  %v4415_v60 = vld [vmem:[%s4923_s6 + $0x68] ss:$16 sps:$4 sm:$0xff]  }
 0x6e0   :  { %1597 = vmatprep.subr.bf16.mxu0 %v3126_v1  ;;  %1638 = vmatprep.subr.bf16.mxu1 %v3129_v38  ;;  %v4422_v1 = vld [vmem:[%s4923_s6 + $0x44] ss:$16 sps:$4 sm:$0xff]   ;;  %v4427_v38 = vld [vmem:[%s4923_s6 + $0x4c] ss:$16 sps:$4 sm:$0xff]  }
 0x6e3   :  { %1598 = vmatpush1.bf16.msra.mxu0 %v3124_v39  ;;  %1639 = vmatpush1.bf16.msra.mxu1 %v3127_v40  ;;  %v4434_v39 = vld [vmem:[%s4923_s6 + $0x40] ss:$16 sps:$4 sm:$0xff]   ;;  %v4439_v40 = vld [vmem:[%s4923_s6 + $0x48] ss:$16 sps:$4 sm:$0xff]  }
 0x6e4   :  { %1599 = vmatprep.subr.bf16.mxu0 %v3132_v41  ;;  %1640 = vmatprep.subr.bf16.mxu1 %v3135_v42  ;;  %v4446_v41 = vld [vmem:[%s4923_s6 + $0x24] ss:$16 sps:$4 sm:$0xff]   ;;  %v4451_v42 = vld [vmem:[%s4923_s6 + $0x2c] ss:$16 sps:$4 sm:$0xff]  }
 0x6e7   :  { %1600 = vmatpush1.bf16.msra.mxu0 %v3130_v43  ;;  %1641 = vmatpush1.bf16.msra.mxu1 %v3133_v44  ;;  %v4458_v43 = vld [vmem:[%s4923_s6 + $0x20] ss:$16 sps:$4 sm:$0xff]   ;;  %v4463_v44 = vld [vmem:[%s4923_s6 + $0x28] ss:$16 sps:$4 sm:$0xff]  }
 0x6e8   :  { %1859 = vmatprep.subr.bf16.mxu0 %v4296_v45  ;;  %1900 = vmatprep.subr.bf16.mxu1 %v4301_v46 }
 0x789   :  { %v1300_v32 = vpop.f32.mrf.mxu0  ;;  %v1341_v47 = vpop.f32.mrf.mxu1 }
 0x78a   :  { %v1348_v34 = vadd.f32 %v1300_v32, %v4971_v49  ;;  %v1350_v11 = vadd.f32 %v1341_v47, %v4972_v36  ;;  %v4470_v32 = vld [vmem:[%s4923_s6 + $0x4] ss:$16 sps:$4 sm:$0xff]   ;;  %v4475_v47 = vld [vmem:[%s4923_s6 + $0xc] ss:$16 sps:$4 sm:$0xff]   ;;  %v4487_v49 = vld [vmem:[%s4923_s6 + $0x8] ss:$16 sps:$4 sm:$0xff]  }
 0x78b   :  { %v1302_v24 = vpop.f32.mrf.mxu0  ;;  %v1343_v50 = vpop.f32.mrf.mxu1 }
 0x78c   :  { %v1352_v61 = vmul.f32 0.5, %v1348_v34  ;;  %v1349_v35 = vadd.f32 %v1302_v24, %v176_v48  ;;  %v1351_v16 = vadd.f32 %v1343_v50, %v4973_v9  ;;  %v4482_v48 = vld [vmem:[%s4923_s6] ss:$16 sps:$4 sm:$0xff]  }
 0x78d   :  { %v1304_v10 = vpop.f32.mrf.mxu0  ;;  %v1345_v51 = vpop.f32.mrf.mxu1 }
 0x78e   :  { %3262 = vtanh.f32 %v1352_v61  ;;  %v1356_v52 = vmul.f32 0.5, %v1349_v35  ;;  %v1361_v18 = vmul.f32 0.5, %v1351_v16 }
 0x78f   :  { %v1305_v14 = vpop.f32.mrf.mxu0  ;;  %v1346_v37 = vpop.f32.mrf.mxu1 }
 0x790   :  { %3264 = vtanh.f32 %v1356_v52  ;;  %v4974_v52 = vld [vmem:[#allocation4_spill] sm:$0xff] }
 0x791   :  { %3266 = vtanh.f32 %v1350_v11  ;;  %v1403_v11 = vld [vmem:[%s4924_s5] sm:$0xf]  ;;  %v4975_v14 = vsub.s32 0, %v4974_v52  ;;  %v4976_v9 = vsub.s32 1, %v4974_v52 }
 0x792   :  { %3268 = vtanh.f32 %v1361_v18 }
 0x793   :  { %v1408_v37 = vrot.slane %v1403_v11, %v4975_v14  ;;  %v1412_v16 = vrot.slane %v1403_v11, %v4976_v9 }
 0x79b   :  { %v3263_v8 = vpop.eup %3262 }
 0x79c   :  { %v1354_v53 = vmul.f32 0.5, %v3263_v8 }
 0x79d   :  { %v3265_v21 = vpop.eup %3264 }
 0x79e   :  { %v1355_v27 = vadd.f32 0.5, %v1354_v53  ;;  %v1358_v28 = vmul.f32 0.5, %v3265_v21  ;;  %v3267_v29 = vpop.eup %3266  ;;  %v4977_v21 = vsub.s32 2, %v4974_v52 }
 0x79f   :  { %v3269_v26 = vpop.eup %3268 }
 0x7a0   :  { %v1359_v4 = vadd.f32 0.5, %v1358_v28  ;;  %v1366_v12 = vmul.f32 %v3267_v29, %v1355_v27  ;;  %v1363_v22 = vmul.f32 0.5, %v3269_v26  ;;  %v1416_v27 = vrot.slane %v1403_v11, %v4977_v21 }
 0x7a2   :  { %v1365_v33 = vmul.f32 %v1359_v4, %v4192_v25  ;;  %v1364_v19 = vadd.f32 0.5, %v1363_v22  ;;  %v4324_v25 = vld [vmem:[%s4923_s6 + $0xc4] ss:$16 sps:$4 sm:$0xff]  }
 0x7a4   :  { %v1367_v58 = vadd.f32 %v1366_v12, %v1365_v33 }
 0x7a6   :  { %3270 = vtanh.f32 %v1367_v58 }
 0x7b3   :  { %v3271_v23 = vpop.eup %3270 }
 0x7b4   :  { %v1369_v31 = vmul.f32 %v3271_v23, %v1364_v19 }
 0x7b6   :  { %v1370_v6 = vpack.c.bf16 %v1369_v31, %v1369_v31 }
 0x7b8   :  { %1618 = vmatmul.mubr.bf16.vlgmr.msra.gmra.mxu0 %v1370_v6  ;;  %1659 = vmatmul.mubr.bf16.vlgmr.msra.gmra.mxu1 %v1370_v6 }
 0x7b9   :  { %1860 = vmatpush1.bf16.msra.mxu0 %v4314_v15  ;;  %1901 = vmatpush1.bf16.msra.mxu1 %v4319_v3 }
 0x7ba   :  { %1861 = vmatprep.subr.bf16.mxu0 %v4324_v25  ;;  %1902 = vmatprep.subr.bf16.mxu1 %v4329_v13 }
 0x7bb   :  { %1891 = vmatprep.mubr.bf16.mxu0 %v4955_v0  ;;  %1932 = vmatprep.mubr.bf16.mxu1 %v4955_v0 }
 0x7bd   :  { %1862 = vmatpush1.bf16.msra.mxu0 %v4336_v17  ;;  %1903 = vmatpush1.bf16.msra.mxu1 %v4341_v55 }
 0x7be   :  { %1863 = vmatprep.subr.bf16.mxu0 %v4348_v54  ;;  %1904 = vmatprep.subr.bf16.mxu1 %v4353_v5 }
 0x7c1   :  { %1864 = vmatpush1.bf16.msra.mxu0 %v4362_v2  ;;  %1905 = vmatpush1.bf16.msra.mxu1 %v4367_v56 }
 0x7c2   :  { %1865 = vmatprep.subr.bf16.mxu0 %v4374_v20  ;;  %1906 = vmatprep.subr.bf16.mxu1 %v4379_v30 }
 0x7c5   :  { %1866 = vmatpush1.bf16.msra.mxu0 %v4386_v57  ;;  %1907 = vmatpush1.bf16.msra.mxu1 %v4391_v7 }
 0x7c6   :  { %1867 = vmatprep.subr.bf16.mxu0 %v4398_v59  ;;  %1908 = vmatprep.subr.bf16.mxu1 %v4403_v63 }
 0x7c9   :  { %1868 = vmatpush1.bf16.msra.mxu0 %v4410_v62  ;;  %1909 = vmatpush1.bf16.msra.mxu1 %v4415_v60 }
 0x7ca   :  { %1869 = vmatprep.subr.bf16.mxu0 %v4422_v1  ;;  %1910 = vmatprep.subr.bf16.mxu1 %v4427_v38 }
 0x7cd   :  { %1870 = vmatpush1.bf16.msra.mxu0 %v4434_v39  ;;  %1911 = vmatpush1.bf16.msra.mxu1 %v4439_v40 }
 0x7ce   :  { %1871 = vmatprep.subr.bf16.mxu0 %v4446_v41  ;;  %1912 = vmatprep.subr.bf16.mxu1 %v4451_v42 }
 0x7d1   :  { %1872 = vmatpush1.bf16.msra.mxu0 %v4458_v43  ;;  %1913 = vmatpush1.bf16.msra.mxu1 %v4463_v44 }
 0x7d2   :  { %1873 = vmatprep.subr.bf16.mxu0 %v4470_v32  ;;  %1914 = vmatprep.subr.bf16.mxu1 %v4475_v47 }
 0x7d5   :  { %1874 = vmatpush1.bf16.msra.mxu0 %v4482_v48  ;;  %1915 = vmatpush1.bf16.msra.mxu1 %v4487_v49 }
 0x7d6   :  { %1965 = vmatprep.subr.bf16.mxu0 %v4296_v45  ;;  %2006 = vmatprep.subr.bf16.mxu1 %v4301_v46 }
 0x7d8   :  { %1892 = vmatmul.mubr.bf16.vlgmr.msra.gmra.mxu0 %v4955_v0  ;;  %1933 = vmatmul.mubr.bf16.vlgmr.msra.gmra.mxu1 %v4955_v0 }
 0x7d9   :  { %1966 = vmatpush1.bf16.msra.mxu0 %v4314_v15  ;;  %2007 = vmatpush1.bf16.msra.mxu1 %v4319_v3 }
 0x7da   :  { %1967 = vmatprep.subr.bf16.mxu0 %v4324_v25  ;;  %2008 = vmatprep.subr.bf16.mxu1 %v4329_v13 }
 0x7db   :  { %1997 = vmatprep.mubr.bf16.mxu0 %v4955_v0  ;;  %2038 = vmatprep.mubr.bf16.mxu1 %v4955_v0 }
 0x7dd   :  { %1968 = vmatpush1.bf16.msra.mxu0 %v4336_v17  ;;  %2009 = vmatpush1.bf16.msra.mxu1 %v4341_v55 }
 0x7de   :  { %1969 = vmatprep.subr.bf16.mxu0 %v4348_v54  ;;  %2010 = vmatprep.subr.bf16.mxu1 %v4353_v5 }
 0x7e1   :  { %1970 = vmatpush1.bf16.msra.mxu0 %v4362_v2  ;;  %2011 = vmatpush1.bf16.msra.mxu1 %v4367_v56 }
 0x7e2   :  { %1971 = vmatprep.subr.bf16.mxu0 %v4374_v20  ;;  %2012 = vmatprep.subr.bf16.mxu1 %v4379_v30 }
 0x7e5   :  { %1972 = vmatpush1.bf16.msra.mxu0 %v4386_v57  ;;  %2013 = vmatpush1.bf16.msra.mxu1 %v4391_v7 }
 0x7e6   :  { %1973 = vmatprep.subr.bf16.mxu0 %v4398_v59  ;;  %2014 = vmatprep.subr.bf16.mxu1 %v4403_v63 }
 0x7e9   :  { %1974 = vmatpush1.bf16.msra.mxu0 %v4410_v62  ;;  %2015 = vmatpush1.bf16.msra.mxu1 %v4415_v60 }
 0x7ea   :  { %1975 = vmatprep.subr.bf16.mxu0 %v4422_v1  ;;  %2016 = vmatprep.subr.bf16.mxu1 %v4427_v38 }
 0x7ed   :  { %1976 = vmatpush1.bf16.msra.mxu0 %v4434_v39  ;;  %2017 = vmatpush1.bf16.msra.mxu1 %v4439_v40 }
 0x7ee   :  { %1977 = vmatprep.subr.bf16.mxu0 %v4446_v41  ;;  %2018 = vmatprep.subr.bf16.mxu1 %v4451_v42 }
 0x7f1   :  { %1978 = vmatpush1.bf16.msra.mxu0 %v4458_v43  ;;  %2019 = vmatpush1.bf16.msra.mxu1 %v4463_v44 }
 0x7f2   :  { %1979 = vmatprep.subr.bf16.mxu0 %v4470_v32  ;;  %2020 = vmatprep.subr.bf16.mxu1 %v4475_v47 }
 0x7f5   :  { %1980 = vmatpush1.bf16.msra.mxu0 %v4482_v48  ;;  %2021 = vmatpush1.bf16.msra.mxu1 %v4487_v49 }
 0x7f6   :  { %2072 = vmatprep.subr.bf16.mxu0 %v4296_v45  ;;  %2113 = vmatprep.subr.bf16.mxu1 %v4301_v46 }
 0x878   :  { %v1619_v34 = vpop.f32.mrf.mxu0  ;;  %v1660_v24 = vpop.f32.mrf.mxu1 }
 0x879   :  { %v4538_v18 = vadd.f32 %v1619_v34, %v1408_v37  ;;  %v4546_v19 = vadd.f32 %v1660_v24, %v1416_v27  ;;  %v4978_v34 = vsub.s32 3, %v4974_v52 }
 0x87a   :  { %v1621_v50 = vpop.f32.mrf.mxu0  ;;  %v1662_v61 = vpop.f32.mrf.mxu1 }
 0x87b   :  { %v4542_v28 = vadd.f32 %v1621_v50, %v1412_v16 }
 0x87c   :  { %v1623_v35 = vpop.f32.mrf.mxu0  ;;  %v1664_v10 = vpop.f32.mrf.mxu1 }
 0x87d   :  { %v1420_v35 = vrot.slane %v1403_v11, %v4978_v34 }
 0x87e   :  { %v1624_v51 = vpop.f32.mrf.mxu0  ;;  %v1665_v36 = vpop.f32.mrf.mxu1 }
 0x87f   :  { %v4551_v10 = vadd.f32 %v1662_v61, %v1420_v35 }
 0x898   :  { %v1893_v8 = vpop.f32.mrf.mxu0  ;;  %v1934_v53 = vpop.f32.mrf.mxu1 }
 0x899   :  { %v1941_v29 = vadd.f32 %v1893_v8, %v4538_v18  ;;  %v1943_v50 = vadd.f32 %v1934_v53, %v4546_v19 }
 0x89a   :  { %v1895_v4 = vpop.f32.mrf.mxu0  ;;  %v1936_v12 = vpop.f32.mrf.mxu1 }
 0x89b   :  { %v1945_v33 = vmul.f32 0.5, %v1941_v29  ;;  %v1942_v58 = vadd.f32 %v1895_v4, %v4542_v28  ;;  %v1944_v51 = vadd.f32 %v1936_v12, %v4551_v10 }
 0x89c   :  { %v1897_v26 = vpop.f32.mrf.mxu0  ;;  %v1938_v22 = vpop.f32.mrf.mxu1 }
 0x89d   :  { %3272 = vtanh.f32 %v1945_v33  ;;  %v1949_v23 = vmul.f32 0.5, %v1942_v58  ;;  %v1954_v36 = vmul.f32 0.5, %v1944_v51 }
 0x89e   :  { %v1898_v31 = vpop.f32.mrf.mxu0  ;;  %v1939_v6 = vpop.f32.mrf.mxu1 }
 0x89f   :  { %3274 = vtanh.f32 %v1949_v23 }
 0x8a0   :  { %3276 = vtanh.f32 %v1943_v50 }
 0x8a1   :  { %3278 = vtanh.f32 %v1954_v36 }
 0x8aa   :  { %v3273_v14 = vpop.eup %3272 }
 0x8ab   :  { %v1947_v37 = vmul.f32 0.5, %v3273_v14 }
 0x8ac   :  { %v3275_v24 = vpop.eup %3274 }
 0x8ad   :  { %v1948_v9 = vadd.f32 0.5, %v1947_v37  ;;  %v1951_v16 = vmul.f32 0.5, %v3275_v24  ;;  %v3277_v21 = vpop.eup %3276 }
 0x8ae   :  { %v3279_v61 = vpop.eup %3278 }
 0x8af   :  { %v1952_v8 = vadd.f32 0.5, %v1951_v16  ;;  %v1959_v52 = vmul.f32 %v3277_v21, %v1948_v9  ;;  %v1956_v53 = vmul.f32 0.5, %v3279_v61 }
 0x8b1   :  { %v1958_v27 = vmul.f32 0.0, %v1952_v8  ;;  %v1957_v29 = vadd.f32 0.5, %v1956_v53 }
 0x8b3   :  { %v4554_v11 = vadd.f32 %v1959_v52, %v1958_v27 }
 0x8b5   :  { %3280 = vtanh.f32 %v4554_v11 }
 0x8c2   :  { %v3281_v4 = vpop.eup %3280 }
 0x8c3   :  { %v4557_v12 = vmul.f32 %v3281_v4, %v1957_v29 }
 0x8c5   :  { %v1964_v33 = vpack.c.bf16 %v4557_v12, %v4557_v12 }
 0x8c7   :  { %1998 = vmatmul.mubr.bf16.vlgmr.msra.gmra.mxu0 %v1964_v33  ;;  %2039 = vmatmul.mubr.bf16.vlgmr.msra.gmra.mxu1 %v1964_v33 }
 0x8c8   :  { %2073 = vmatpush1.bf16.msra.mxu0 %v4314_v15  ;;  %2114 = vmatpush1.bf16.msra.mxu1 %v4319_v3 }
 0x8c9   :  { %2074 = vmatprep.subr.bf16.mxu0 %v4324_v25  ;;  %2115 = vmatprep.subr.bf16.mxu1 %v4329_v13 }
 0x8ca   :  { %2104 = vmatprep.mubr.bf16.mxu0 %v4955_v0  ;;  %2145 = vmatprep.mubr.bf16.mxu1 %v4955_v0 }
 0x8cc   :  { %2075 = vmatpush1.bf16.msra.mxu0 %v4336_v17  ;;  %2116 = vmatpush1.bf16.msra.mxu1 %v4341_v55 }
 0x8cd   :  { %2076 = vmatprep.subr.bf16.mxu0 %v4348_v54  ;;  %2117 = vmatprep.subr.bf16.mxu1 %v4353_v5 }
 0x8d0   :  { %2077 = vmatpush1.bf16.msra.mxu0 %v4362_v2  ;;  %2118 = vmatpush1.bf16.msra.mxu1 %v4367_v56 }
 0x8d1   :  { %2078 = vmatprep.subr.bf16.mxu0 %v4374_v20  ;;  %2119 = vmatprep.subr.bf16.mxu1 %v4379_v30 }
 0x8d4   :  { %2079 = vmatpush1.bf16.msra.mxu0 %v4386_v57  ;;  %2120 = vmatpush1.bf16.msra.mxu1 %v4391_v7 }
 0x8d5   :  { %2080 = vmatprep.subr.bf16.mxu0 %v4398_v59  ;;  %2121 = vmatprep.subr.bf16.mxu1 %v4403_v63 }
 0x8d8   :  { %2081 = vmatpush1.bf16.msra.mxu0 %v4410_v62  ;;  %2122 = vmatpush1.bf16.msra.mxu1 %v4415_v60 }
 0x8d9   :  { %2082 = vmatprep.subr.bf16.mxu0 %v4422_v1  ;;  %2123 = vmatprep.subr.bf16.mxu1 %v4427_v38 }
 0x8dc   :  { %2083 = vmatpush1.bf16.msra.mxu0 %v4434_v39  ;;  %2124 = vmatpush1.bf16.msra.mxu1 %v4439_v40 }
 0x8dd   :  { %2084 = vmatprep.subr.bf16.mxu0 %v4446_v41  ;;  %2125 = vmatprep.subr.bf16.mxu1 %v4451_v42 }
 0x8e0   :  { %2085 = vmatpush1.bf16.msra.mxu0 %v4458_v43  ;;  %2126 = vmatpush1.bf16.msra.mxu1 %v4463_v44 }
 0x8e1   :  { %2086 = vmatprep.subr.bf16.mxu0 %v4470_v32  ;;  %2127 = vmatprep.subr.bf16.mxu1 %v4475_v47 }
 0x8e4   :  { %2087 = vmatpush1.bf16.msra.mxu0 %v4482_v48  ;;  %2128 = vmatpush1.bf16.msra.mxu1 %v4487_v49 }
 0x8e5   :  { %2179 = vmatprep.subr.bf16.mxu0 %v4296_v45  ;;  %2220 = vmatprep.subr.bf16.mxu1 %v4301_v46 }
 0x987   :  { %v1999_v58 = vpop.f32.mrf.mxu0  ;;  %v2040_v26 = vpop.f32.mrf.mxu1 }
 0x988   :  { %v2047_v22 = vadd.f32 %v1999_v58, %v4538_v18  ;;  %v2049_v37 = vadd.f32 %v2040_v26, %v4546_v19 }
 0x989   :  { %v2001_v23 = vpop.f32.mrf.mxu0  ;;  %v2042_v31 = vpop.f32.mrf.mxu1 }
 0x98a   :  { %v2051_v6 = vmul.f32 0.5, %v2047_v22  ;;  %v2048_v34 = vadd.f32 %v2001_v23, %v4542_v28  ;;  %v2050_v24 = vadd.f32 %v2042_v31, %v4551_v10 }
 0x98b   :  { %v2003_v35 = vpop.f32.mrf.mxu0  ;;  %v2044_v50 = vpop.f32.mrf.mxu1 }
 0x98c   :  { %3282 = vtanh.f32 %v2051_v6  ;;  %v2055_v51 = vmul.f32 0.5, %v2048_v34  ;;  %v2060_v9 = vmul.f32 0.5, %v2050_v24 }
 0x98d   :  { %v2004_v36 = vpop.f32.mrf.mxu0  ;;  %v2045_v14 = vpop.f32.mrf.mxu1 }
 0x98e   :  { %3284 = vtanh.f32 %v2055_v51 }
 0x98f   :  { %3286 = vtanh.f32 %v2049_v37 }
 0x990   :  { %3288 = vtanh.f32 %v2060_v9 }
 0x999   :  { %v3283_v16 = vpop.eup %3282 }
 0x99a   :  { %v2053_v8 = vmul.f32 0.5, %v3283_v16 }
 0x99b   :  { %v3285_v21 = vpop.eup %3284 }
 0x99c   :  { %v2054_v27 = vadd.f32 0.5, %v2053_v8  ;;  %v2057_v52 = vmul.f32 0.5, %v3285_v21  ;;  %v3287_v53 = vpop.eup %3286 }
 0x99d   :  { %v3289_v58 = vpop.eup %3288 }
 0x99e   :  { %v2058_v61 = vadd.f32 0.5, %v2057_v52  ;;  %v2065_v4 = vmul.f32 %v3287_v53, %v2054_v27  ;;  %v2062_v26 = vmul.f32 0.5, %v3289_v58 }
 0x9a0   :  { %v2064_v29 = vmul.f32 %v2058_v61, %v4554_v11  ;;  %v2063_v22 = vadd.f32 0.5, %v2062_v26 }
 0x9a2   :  { %v4600_v33 = vadd.f32 %v2065_v4, %v2064_v29 }
 0x9a4   :  { %3290 = vtanh.f32 %v4600_v33 }
 0x9b1   :  { %v3291_v23 = vpop.eup %3290 }
 0x9b2   :  { %v4603_v31 = vmul.f32 %v3291_v23, %v2063_v22 }
 0x9b4   :  { %v2071_v6 = vpack.c.bf16 %v4603_v31, %v4603_v31 }
 0x9b6   :  { %2105 = vmatmul.mubr.bf16.vlgmr.msra.gmra.mxu0 %v2071_v6  ;;  %2146 = vmatmul.mubr.bf16.vlgmr.msra.gmra.mxu1 %v2071_v6 }
 0x9b7   :  { %2180 = vmatpush1.bf16.msra.mxu0 %v4314_v15  ;;  %2221 = vmatpush1.bf16.msra.mxu1 %v4319_v3 }
 0x9b8   :  { %2181 = vmatprep.subr.bf16.mxu0 %v4324_v25  ;;  %2222 = vmatprep.subr.bf16.mxu1 %v4329_v13 }
 0x9b9   :  { %2211 = vmatprep.mubr.bf16.mxu0 %v4955_v0  ;;  %2252 = vmatprep.mubr.bf16.mxu1 %v4955_v0 }
 0x9bb   :  { %2182 = vmatpush1.bf16.msra.mxu0 %v4336_v17  ;;  %2223 = vmatpush1.bf16.msra.mxu1 %v4341_v55 }
 0x9bc   :  { %2183 = vmatprep.subr.bf16.mxu0 %v4348_v54  ;;  %2224 = vmatprep.subr.bf16.mxu1 %v4353_v5 }
 0x9bf   :  { %2184 = vmatpush1.bf16.msra.mxu0 %v4362_v2  ;;  %2225 = vmatpush1.bf16.msra.mxu1 %v4367_v56 }
 0x9c0   :  { %2185 = vmatprep.subr.bf16.mxu0 %v4374_v20  ;;  %2226 = vmatprep.subr.bf16.mxu1 %v4379_v30 }
 0x9c3   :  { %2186 = vmatpush1.bf16.msra.mxu0 %v4386_v57  ;;  %2227 = vmatpush1.bf16.msra.mxu1 %v4391_v7 }
 0x9c4   :  { %2187 = vmatprep.subr.bf16.mxu0 %v4398_v59  ;;  %2228 = vmatprep.subr.bf16.mxu1 %v4403_v63 }
 0x9c7   :  { %2188 = vmatpush1.bf16.msra.mxu0 %v4410_v62  ;;  %2229 = vmatpush1.bf16.msra.mxu1 %v4415_v60 }
 0x9c8   :  { %2189 = vmatprep.subr.bf16.mxu0 %v4422_v1  ;;  %2230 = vmatprep.subr.bf16.mxu1 %v4427_v38 }
 0x9cb   :  { %2190 = vmatpush1.bf16.msra.mxu0 %v4434_v39  ;;  %2231 = vmatpush1.bf16.msra.mxu1 %v4439_v40 }
 0x9cc   :  { %2191 = vmatprep.subr.bf16.mxu0 %v4446_v41  ;;  %2232 = vmatprep.subr.bf16.mxu1 %v4451_v42 }
 0x9cf   :  { %2192 = vmatpush1.bf16.msra.mxu0 %v4458_v43  ;;  %2233 = vmatpush1.bf16.msra.mxu1 %v4463_v44 }
 0x9d0   :  { %2193 = vmatprep.subr.bf16.mxu0 %v4470_v32  ;;  %2234 = vmatprep.subr.bf16.mxu1 %v4475_v47 }
 0x9d3   :  { %2194 = vmatpush1.bf16.msra.mxu0 %v4482_v48  ;;  %2235 = vmatpush1.bf16.msra.mxu1 %v4487_v49 }
 0x9d4   :  { %2286 = vmatprep.subr.bf16.mxu0 %v4296_v45  ;;  %2327 = vmatprep.subr.bf16.mxu1 %v4301_v46 }
 0xa76   :  { %v2106_v11 = vpop.f32.mrf.mxu0  ;;  %v2147_v34 = vpop.f32.mrf.mxu1 }
 0xa77   :  { %v2154_v35 = vadd.f32 %v2106_v11, %v4538_v18  ;;  %v2156_v21 = vadd.f32 %v2147_v34, %v4546_v19 }
 0xa78   :  { %v2108_v50 = vpop.f32.mrf.mxu0  ;;  %v2149_v51 = vpop.f32.mrf.mxu1 }
 0xa79   :  { %v2158_v36 = vmul.f32 0.5, %v2154_v35  ;;  %v2155_v14 = vadd.f32 %v2108_v50, %v4542_v28  ;;  %v2157_v27 = vadd.f32 %v2149_v51, %v4551_v10 }
 0xa7a   :  { %v2110_v37 = vpop.f32.mrf.mxu0  ;;  %v2151_v24 = vpop.f32.mrf.mxu1 }
 0xa7b   :  { %3292 = vtanh.f32 %v2158_v36  ;;  %v2162_v9 = vmul.f32 0.5, %v2155_v14  ;;  %v2167_v52 = vmul.f32 0.5, %v2157_v27 }
 0xa7c   :  { %v2111_v16 = vpop.f32.mrf.mxu0  ;;  %v2152_v8 = vpop.f32.mrf.mxu1 }
 0xa7d   :  { %3294 = vtanh.f32 %v2162_v9 }
 0xa7e   :  { %3296 = vtanh.f32 %v2156_v21 }
 0xa7f   :  { %3298 = vtanh.f32 %v2167_v52 }
 0xa88   :  { %v3293_v61 = vpop.eup %3292 }
 0xa89   :  { %v2160_v53 = vmul.f32 0.5, %v3293_v61 }
 0xa8a   :  { %v3295_v29 = vpop.eup %3294 }
 0xa8b   :  { %v2161_v4 = vadd.f32 0.5, %v2160_v53  ;;  %v2164_v58 = vmul.f32 0.5, %v3295_v29  ;;  %v3297_v22 = vpop.eup %3296 }
 0xa8c   :  { %v3299_v34 = vpop.eup %3298 }
 0xa8d   :  { %v2165_v26 = vadd.f32 0.5, %v2164_v58  ;;  %v2172_v6 = vmul.f32 %v3297_v22, %v2161_v4  ;;  %v2169_v35 = vmul.f32 0.5, %v3299_v34 }
 0xa8f   :  { %v2171_v23 = vmul.f32 %v2165_v26, %v4600_v33  ;;  %v2170_v50 = vadd.f32 0.5, %v2169_v35 }
 0xa91   :  { %v4646_v11 = vadd.f32 %v2172_v6, %v2171_v23 }
 0xa93   :  { %3300 = vtanh.f32 %v4646_v11 }
 0xaa0   :  { %v3301_v51 = vpop.eup %3300 }
 0xaa1   :  { %v4649_v36 = vmul.f32 %v3301_v51, %v2170_v50 }
 0xaa3   :  { %v2178_v14 = vpack.c.bf16 %v4649_v36, %v4649_v36 }
 0xaa5   :  { %2212 = vmatmul.mubr.bf16.vlgmr.msra.gmra.mxu0 %v2178_v14  ;;  %2253 = vmatmul.mubr.bf16.vlgmr.msra.gmra.mxu1 %v2178_v14 }
 0xaa6   :  { %2287 = vmatpush1.bf16.msra.mxu0 %v4314_v15  ;;  %2328 = vmatpush1.bf16.msra.mxu1 %v4319_v3 }
 0xaa7   :  { %2288 = vmatprep.subr.bf16.mxu0 %v4324_v25  ;;  %2329 = vmatprep.subr.bf16.mxu1 %v4329_v13 }
 0xaa8   :  { %2318 = vmatprep.mubr.bf16.mxu0 %v4955_v0  ;;  %2359 = vmatprep.mubr.bf16.mxu1 %v4955_v0 }
 0xaaa   :  { %2289 = vmatpush1.bf16.msra.mxu0 %v4336_v17  ;;  %2330 = vmatpush1.bf16.msra.mxu1 %v4341_v55 }
 0xaab   :  { %2290 = vmatprep.subr.bf16.mxu0 %v4348_v54  ;;  %2331 = vmatprep.subr.bf16.mxu1 %v4353_v5 }
 0xaae   :  { %2291 = vmatpush1.bf16.msra.mxu0 %v4362_v2  ;;  %2332 = vmatpush1.bf16.msra.mxu1 %v4367_v56 }
 0xaaf   :  { %2292 = vmatprep.subr.bf16.mxu0 %v4374_v20  ;;  %2333 = vmatprep.subr.bf16.mxu1 %v4379_v30 }
 0xab2   :  { %2293 = vmatpush1.bf16.msra.mxu0 %v4386_v57  ;;  %2334 = vmatpush1.bf16.msra.mxu1 %v4391_v7 }
 0xab3   :  { %2294 = vmatprep.subr.bf16.mxu0 %v4398_v59  ;;  %2335 = vmatprep.subr.bf16.mxu1 %v4403_v63 }
 0xab6   :  { %2295 = vmatpush1.bf16.msra.mxu0 %v4410_v62  ;;  %2336 = vmatpush1.bf16.msra.mxu1 %v4415_v60 }
 0xab7   :  { %2296 = vmatprep.subr.bf16.mxu0 %v4422_v1  ;;  %2337 = vmatprep.subr.bf16.mxu1 %v4427_v38 }
 0xaba   :  { %2297 = vmatpush1.bf16.msra.mxu0 %v4434_v39  ;;  %2338 = vmatpush1.bf16.msra.mxu1 %v4439_v40 }
 0xabb   :  { %2298 = vmatprep.subr.bf16.mxu0 %v4446_v41  ;;  %2339 = vmatprep.subr.bf16.mxu1 %v4451_v42 }
 0xabe   :  { %2299 = vmatpush1.bf16.msra.mxu0 %v4458_v43  ;;  %2340 = vmatpush1.bf16.msra.mxu1 %v4463_v44 }
 0xabf   :  { %2300 = vmatprep.subr.bf16.mxu0 %v4470_v32  ;;  %2341 = vmatprep.subr.bf16.mxu1 %v4475_v47 }
 0xac2   :  { %2301 = vmatpush1.bf16.msra.mxu0 %v4482_v48  ;;  %2342 = vmatpush1.bf16.msra.mxu1 %v4487_v49 }
 0xac3   :  { %2393 = vmatprep.subr.bf16.mxu0 %v4296_v45  ;;  %2434 = vmatprep.subr.bf16.mxu1 %v4301_v46 }
 0xb65   :  { %v2213_v33 = vpop.f32.mrf.mxu0  ;;  %v2254_v37 = vpop.f32.mrf.mxu1 }
 0xb66   :  { %v2261_v24 = vadd.f32 %v2213_v33, %v4538_v18  ;;  %v2263_v4 = vadd.f32 %v2254_v37, %v4546_v19 }
 0xb67   :  { %v2215_v9 = vpop.f32.mrf.mxu0  ;;  %v2256_v16 = vpop.f32.mrf.mxu1 }
 0xb68   :  { %v2265_v8 = vmul.f32 0.5, %v2261_v24  ;;  %v2262_v21 = vadd.f32 %v2215_v9, %v4542_v28  ;;  %v2264_v58 = vadd.f32 %v2256_v16, %v4551_v10 }
 0xb69   :  { %v2217_v27 = vpop.f32.mrf.mxu0  ;;  %v2258_v52 = vpop.f32.mrf.mxu1 }
 0xb6a   :  { %3302 = vtanh.f32 %v2265_v8  ;;  %v2269_v61 = vmul.f32 0.5, %v2262_v21  ;;  %v2274_v26 = vmul.f32 0.5, %v2264_v58 }
 0xb6b   :  { %v2218_v53 = vpop.f32.mrf.mxu0  ;;  %v2259_v29 = vpop.f32.mrf.mxu1 }
 0xb6c   :  { %3304 = vtanh.f32 %v2269_v61 }
 0xb6d   :  { %3306 = vtanh.f32 %v2263_v4 }
 0xb6e   :  { %3308 = vtanh.f32 %v2274_v26 }
 0xb77   :  { %v3303_v22 = vpop.eup %3302 }
 0xb78   :  { %v2267_v23 = vmul.f32 0.5, %v3303_v22 }
 0xb79   :  { %v3305_v6 = vpop.eup %3304 }
 0xb7a   :  { %v2268_v34 = vadd.f32 0.5, %v2267_v23  ;;  %v2271_v35 = vmul.f32 0.5, %v3305_v6  ;;  %v3307_v51 = vpop.eup %3306 }
 0xb7b   :  { %v3309_v37 = vpop.eup %3308 }
 0xb7c   :  { %v2272_v50 = vadd.f32 0.5, %v2271_v35  ;;  %v2279_v33 = vmul.f32 %v3307_v51, %v2268_v34  ;;  %v2276_v9 = vmul.f32 0.5, %v3309_v37 }
 0xb7e   :  { %v2278_v14 = vmul.f32 %v2272_v50, %v4646_v11  ;;  %v2277_v8 = vadd.f32 0.5, %v2276_v9 }
 0xb80   :  { %v4692_v24 = vadd.f32 %v2279_v33, %v2278_v14 }
 0xb82   :  { %3310 = vtanh.f32 %v4692_v24 }
 0xb8f   :  { %v3311_v16 = vpop.eup %3310 }
 0xb90   :  { %v4695_v21 = vmul.f32 %v3311_v16, %v2277_v8 }
 0xb92   :  { %v2285_v27 = vpack.c.bf16 %v4695_v21, %v4695_v21 }
 0xb94   :  { %2319 = vmatmul.mubr.bf16.vlgmr.msra.gmra.mxu0 %v2285_v27  ;;  %2360 = vmatmul.mubr.bf16.vlgmr.msra.gmra.mxu1 %v2285_v27 }
 0xb95   :  { %2394 = vmatpush1.bf16.msra.mxu0 %v4314_v15  ;;  %2435 = vmatpush1.bf16.msra.mxu1 %v4319_v3 }
 0xb96   :  { %2395 = vmatprep.subr.bf16.mxu0 %v4324_v25  ;;  %2436 = vmatprep.subr.bf16.mxu1 %v4329_v13 }
 0xb97   :  { %2425 = vmatprep.mubr.bf16.mxu0 %v4955_v0  ;;  %2466 = vmatprep.mubr.bf16.mxu1 %v4955_v0 }
 0xb99   :  { %2396 = vmatpush1.bf16.msra.mxu0 %v4336_v17  ;;  %2437 = vmatpush1.bf16.msra.mxu1 %v4341_v55 }
 0xb9a   :  { %2397 = vmatprep.subr.bf16.mxu0 %v4348_v54  ;;  %2438 = vmatprep.subr.bf16.mxu1 %v4353_v5 }
 0xb9d   :  { %2398 = vmatpush1.bf16.msra.mxu0 %v4362_v2  ;;  %2439 = vmatpush1.bf16.msra.mxu1 %v4367_v56 }
 0xb9e   :  { %2399 = vmatprep.subr.bf16.mxu0 %v4374_v20  ;;  %2440 = vmatprep.subr.bf16.mxu1 %v4379_v30 }
 0xba1   :  { %2400 = vmatpush1.bf16.msra.mxu0 %v4386_v57  ;;  %2441 = vmatpush1.bf16.msra.mxu1 %v4391_v7 }
 0xba2   :  { %2401 = vmatprep.subr.bf16.mxu0 %v4398_v59  ;;  %2442 = vmatprep.subr.bf16.mxu1 %v4403_v63 }
 0xba5   :  { %2402 = vmatpush1.bf16.msra.mxu0 %v4410_v62  ;;  %2443 = vmatpush1.bf16.msra.mxu1 %v4415_v60 }
 0xba6   :  { %2403 = vmatprep.subr.bf16.mxu0 %v4422_v1  ;;  %2444 = vmatprep.subr.bf16.mxu1 %v4427_v38 }
 0xba9   :  { %2404 = vmatpush1.bf16.msra.mxu0 %v4434_v39  ;;  %2445 = vmatpush1.bf16.msra.mxu1 %v4439_v40 }
 0xbaa   :  { %2405 = vmatprep.subr.bf16.mxu0 %v4446_v41  ;;  %2446 = vmatprep.subr.bf16.mxu1 %v4451_v42 }
 0xbad   :  { %2406 = vmatpush1.bf16.msra.mxu0 %v4458_v43  ;;  %2447 = vmatpush1.bf16.msra.mxu1 %v4463_v44 }
 0xbae   :  { %2407 = vmatprep.subr.bf16.mxu0 %v4470_v32  ;;  %2448 = vmatprep.subr.bf16.mxu1 %v4475_v47 }
 0xbb1   :  { %2408 = vmatpush1.bf16.msra.mxu0 %v4482_v48  ;;  %2449 = vmatpush1.bf16.msra.mxu1 %v4487_v49 }
 0xbb2   :  { %2500 = vmatprep.subr.bf16.mxu0 %v4296_v45  ;;  %2541 = vmatprep.subr.bf16.mxu1 %v4301_v46 }
 0xc54   :  { %v2320_v11 = vpop.f32.mrf.mxu0  ;;  %v2361_v52 = vpop.f32.mrf.mxu1 }
 0xc55   :  { %v2368_v61 = vadd.f32 %v2320_v11, %v4538_v18  ;;  %v2370_v35 = vadd.f32 %v2361_v52, %v4546_v19 }
 0xc56   :  { %v2322_v53 = vpop.f32.mrf.mxu0  ;;  %v2363_v29 = vpop.f32.mrf.mxu1 }
 0xc57   :  { %v2372_v4 = vmul.f32 0.5, %v2368_v61  ;;  %v2369_v58 = vadd.f32 %v2322_v53, %v4542_v28  ;;  %v2371_v45 = vadd.f32 %v2363_v29, %v4551_v10 }
 0xc58   :  { %v2324_v26 = vpop.f32.mrf.mxu0  ;;  %v2365_v22 = vpop.f32.mrf.mxu1 }
 0xc59   :  { %3312 = vtanh.f32 %v2372_v4  ;;  %v2376_v23 = vmul.f32 0.5, %v2369_v58  ;;  %v2381_v46 = vmul.f32 0.5, %v2371_v45 }
 0xc5a   :  { %v2325_v6 = vpop.f32.mrf.mxu0  ;;  %v2366_v34 = vpop.f32.mrf.mxu1 }
 0xc5b   :  { %3314 = vtanh.f32 %v2376_v23 }
 0xc5c   :  { %3316 = vtanh.f32 %v2370_v35 }
 0xc5d   :  { %3318 = vtanh.f32 %v2381_v46 }
 0xc66   :  { %v3313_v50 = vpop.eup %3312 }
 0xc67   :  { %v2374_v51 = vmul.f32 0.5, %v3313_v50 }
 0xc68   :  { %v3315_v14 = vpop.eup %3314 }
 0xc69   :  { %v2375_v33 = vadd.f32 0.5, %v2374_v51  ;;  %v2378_v37 = vmul.f32 0.5, %v3315_v14  ;;  %v3317_v8 = vpop.eup %3316 }
 0xc6a   :  { %v3319_v52 = vpop.eup %3318 }
 0xc6b   :  { %v2379_v9 = vadd.f32 0.5, %v2378_v37  ;;  %v2386_v27 = vmul.f32 %v3317_v8, %v2375_v33  ;;  %v2383_v61 = vmul.f32 0.5, %v3319_v52 }
 0xc6d   :  { %v2385_v16 = vmul.f32 %v2379_v9, %v4692_v24  ;;  %v2384_v53 = vadd.f32 0.5, %v2383_v61 }
 0xc6f   :  { %v4738_v11 = vadd.f32 %v2386_v27, %v2385_v16 }
 0xc71   :  { %3320 = vtanh.f32 %v4738_v11 }
 0xc7e   :  { %v3321_v29 = vpop.eup %3320 }
 0xc7f   :  { %v4741_v4 = vmul.f32 %v3321_v29, %v2384_v53 }
 0xc81   :  { %v2392_v58 = vpack.c.bf16 %v4741_v4, %v4741_v4 }
 0xc83   :  { %2426 = vmatmul.mubr.bf16.vlgmr.msra.gmra.mxu0 %v2392_v58  ;;  %2467 = vmatmul.mubr.bf16.vlgmr.msra.gmra.mxu1 %v2392_v58 }
 0xc84   :  { %2501 = vmatpush1.bf16.msra.mxu0 %v4314_v15  ;;  %2542 = vmatpush1.bf16.msra.mxu1 %v4319_v3  ;;  %v3383_v15 = vld [vmem:[%s4923_s6 + $0xe4] ss:$16 sps:$4 sm:$0xff]   ;;  %v3384_v3 = vld [vmem:[%s4923_s6 + $0xec] ss:$16 sps:$4 sm:$0xff]  }
 0xc85   :  { %2502 = vmatprep.subr.bf16.mxu0 %v4324_v25  ;;  %2543 = vmatprep.subr.bf16.mxu1 %v4329_v13 }
 0xc86   :  { %2532 = vmatprep.mubr.bf16.mxu0 %v4955_v0  ;;  %2573 = vmatprep.mubr.bf16.mxu1 %v4955_v0 }
 0xc88   :  { %2503 = vmatpush1.bf16.msra.mxu0 %v4336_v17  ;;  %2544 = vmatpush1.bf16.msra.mxu1 %v4341_v55 }
 0xc89   :  { %2504 = vmatprep.subr.bf16.mxu0 %v4348_v54  ;;  %2545 = vmatprep.subr.bf16.mxu1 %v4353_v5 }
 0xc8c   :  { %2505 = vmatpush1.bf16.msra.mxu0 %v4362_v2  ;;  %2546 = vmatpush1.bf16.msra.mxu1 %v4367_v56 }
 0xc8d   :  { %2506 = vmatprep.subr.bf16.mxu0 %v4374_v20  ;;  %2547 = vmatprep.subr.bf16.mxu1 %v4379_v30 }
 0xc90   :  { %2507 = vmatpush1.bf16.msra.mxu0 %v4386_v57  ;;  %2548 = vmatpush1.bf16.msra.mxu1 %v4391_v7 }
 0xc91   :  { %2508 = vmatprep.subr.bf16.mxu0 %v4398_v59  ;;  %2549 = vmatprep.subr.bf16.mxu1 %v4403_v63 }
 0xc94   :  { %2509 = vmatpush1.bf16.msra.mxu0 %v4410_v62  ;;  %2550 = vmatpush1.bf16.msra.mxu1 %v4415_v60 }
 0xc95   :  { %2510 = vmatprep.subr.bf16.mxu0 %v4422_v1  ;;  %2551 = vmatprep.subr.bf16.mxu1 %v4427_v38 }
 0xc98   :  { %2511 = vmatpush1.bf16.msra.mxu0 %v4434_v39  ;;  %2552 = vmatpush1.bf16.msra.mxu1 %v4439_v40 }
 0xc99   :  { %2512 = vmatprep.subr.bf16.mxu0 %v4446_v41  ;;  %2553 = vmatprep.subr.bf16.mxu1 %v4451_v42 }
 0xc9c   :  { %2513 = vmatpush1.bf16.msra.mxu0 %v4458_v43  ;;  %2554 = vmatpush1.bf16.msra.mxu1 %v4463_v44 }
 0xc9d   :  { %2514 = vmatprep.subr.bf16.mxu0 %v4470_v32  ;;  %2555 = vmatprep.subr.bf16.mxu1 %v4475_v47 }
 0xca0   :  { %2515 = vmatpush1.bf16.msra.mxu0 %v4482_v48  ;;  %2556 = vmatpush1.bf16.msra.mxu1 %v4487_v49 }
 0xca1   :  { %2607 = vmatprep.subr.bf16.mxu0 %v3383_v15  ;;  %2648 = vmatprep.subr.bf16.mxu1 %v3384_v3 }
 0xd43   :  { %v2427_v25 = vpop.f32.mrf.mxu0  ;;  %v2468_v13 = vpop.f32.mrf.mxu1 }
 0xd44   :  { %v2475_v17 = vadd.f32 %v2427_v25, %v4538_v18  ;;  %v2477_v35 = vadd.f32 %v2468_v13, %v4546_v19  ;;  %v3386_v25 = vld [vmem:[%s4923_s6 + $0xe8] ss:$16 sps:$4 sm:$0xff]   ;;  %v3387_v13 = vld [vmem:[%s4923_s6 + $0xc4] ss:$16 sps:$4 sm:$0xff]  }
 0xd45   :  { %v2429_v55 = vpop.f32.mrf.mxu0  ;;  %v2470_v54 = vpop.f32.mrf.mxu1 }
 0xd46   :  { %v2479_v5 = vmul.f32 0.5, %v2475_v17  ;;  %v2476_v24 = vadd.f32 %v2429_v55, %v4542_v28  ;;  %v2478_v45 = vadd.f32 %v2470_v54, %v4551_v10  ;;  %v3388_v17 = vld [vmem:[%s4923_s6 + $0xcc] ss:$16 sps:$4 sm:$0xff]   ;;  %v3389_v55 = vld [vmem:[%s4923_s6 + $0xc0] ss:$16 sps:$4 sm:$0xff]  }
 0xd47   :  { %v2431_v26 = vpop.f32.mrf.mxu0  ;;  %v2472_v22 = vpop.f32.mrf.mxu1  ;;  %v3390_v54 = vld [vmem:[%s4923_s6 + $0xc8] ss:$16 sps:$4 sm:$0xff]  }
 0xd48   :  { %3322 = vtanh.f32 %v2479_v5  ;;  %v2483_v23 = vmul.f32 0.5, %v2476_v24  ;;  %v2488_v46 = vmul.f32 0.5, %v2478_v45  ;;  %v3391_v5 = vld [vmem:[%s4923_s6 + $0xa4] ss:$16 sps:$4 sm:$0xff]   ;;  %v3392_v24 = vld [vmem:[%s4923_s6 + $0xac] ss:$16 sps:$4 sm:$0xff]  }
 0xd49   :  { %v2432_v6 = vpop.f32.mrf.mxu0  ;;  %v2473_v34 = vpop.f32.mrf.mxu1 }
 0xd4a   :  { %3324 = vtanh.f32 %v2483_v23 }
 0xd4b   :  { %3326 = vtanh.f32 %v2477_v35 }
 0xd4c   :  { %3328 = vtanh.f32 %v2488_v46 }
 0xd55   :  { %v3323_v50 = vpop.eup %3322 }
 0xd56   :  { %v2481_v51 = vmul.f32 0.5, %v3323_v50 }
 0xd57   :  { %v3325_v14 = vpop.eup %3324 }
 0xd58   :  { %v2482_v33 = vadd.f32 0.5, %v2481_v51  ;;  %v2485_v37 = vmul.f32 0.5, %v3325_v14  ;;  %v3327_v8 = vpop.eup %3326  ;;  %v3185_v51 = vld [vmem:[%s4925_s7 + $0x30] sm:$0xff]   ;;  %v2721_v14 = vpack.c.bf16 %v4603_v31, %v4557_v12  ;;  %v3188_v12 = vld [vmem:[%s4925_s7 + $0x18] sm:$0xff]  }
 0xd59   :  { %v3329_v61 = vpop.eup %3328  ;;  %v3189_v31 = vld [vmem:[%s4925_s7 + $0x10] sm:$0xff]  }
 0xd5a   :  { %v2486_v9 = vadd.f32 0.5, %v2485_v37  ;;  %v2493_v27 = vmul.f32 %v3327_v8, %v2482_v33  ;;  %v2490_v53 = vmul.f32 0.5, %v3329_v61  ;;  %v3186_v33 = vld [vmem:[%s4925_s7 + $0x28] sm:$0xff]   ;;  %v3187_v37 = vld [vmem:[%s4925_s7 + $0x20] sm:$0xff]  }
 0xd5b   :  { %v3191_v8 = vld [vmem:[%s4925_s7] sm:$0xff]  }
 0xd5c   :  { %v2492_v16 = vmul.f32 %v2486_v9, %v4738_v11  ;;  %v2491_v29 = vadd.f32 0.5, %v2490_v53  ;;  %v3385_v11 = vld [vmem:[%s4923_s6 + $0xe0] ss:$16 sps:$4 sm:$0xff]   ;;  %v3190_v9 = vld [vmem:[%s4925_s7 + $0x8] sm:$0xff]  }
 0xd5e   :  { %v4788_v52 = vadd.f32 %v2493_v27, %v2492_v16  ;;  %v2722_v16 = vpack.c.bf16 %v4695_v21, %v4649_v36 }
 0xd60   :  { %3330 = vtanh.f32 %v4788_v52 }
 0xd6d   :  { %v3331_v58 = vpop.eup %3330 }
 0xd6e   :  { %v4791_v15 = vmul.f32 %v3331_v58, %v2491_v29 }
 0xd70   :  { %v2499_v3 = vpack.c.bf16 %v4791_v15, %v4791_v15  ;;  %v2723_v27 = vpack.c.bf16 %v4791_v15, %v4741_v4 }
 0xd72   :  { %2533 = vmatmul.mubr.bf16.vlgmr.msra.gmra.mxu0 %v2499_v3  ;;  %2574 = vmatmul.mubr.bf16.vlgmr.msra.gmra.mxu1 %v2499_v3 }
 0xd73   :  { %2608 = vmatpush1.bf16.msra.mxu0 %v3385_v11  ;;  %2649 = vmatpush1.bf16.msra.mxu1 %v3386_v25 }
 0xd74   :  { %2609 = vmatprep.subr.bf16.mxu0 %v3387_v13  ;;  %2650 = vmatprep.subr.bf16.mxu1 %v3388_v17 }
 0xd75   :  { %2639 = vmatprep.mubr.bf16.mxu0 %v4955_v0  ;;  %2680 = vmatprep.mubr.bf16.mxu1 %v4955_v0  ;;  %v3184_v0 = vld [vmem:[%s4925_s7 + $0x38] sm:$0xff]  }
 0xd77   :  { %2610 = vmatpush1.bf16.msra.mxu0 %v3389_v55  ;;  %2651 = vmatpush1.bf16.msra.mxu1 %v3390_v54 }
 0xd78   :  { %2611 = vmatprep.subr.bf16.mxu0 %v3391_v5  ;;  %2652 = vmatprep.subr.bf16.mxu1 %v3392_v24 }
 0xd7b   :  { %2612 = vmatpush1.bf16.msra.mxu0 %v4362_v2  ;;  %2653 = vmatpush1.bf16.msra.mxu1 %v4367_v56 }
 0xd7c   :  { %2613 = vmatprep.subr.bf16.mxu0 %v4374_v20  ;;  %2654 = vmatprep.subr.bf16.mxu1 %v4379_v30 }
 0xd7f   :  { %2614 = vmatpush1.bf16.msra.mxu0 %v4386_v57  ;;  %2655 = vmatpush1.bf16.msra.mxu1 %v4391_v7 }
 0xd80   :  { %2615 = vmatprep.subr.bf16.mxu0 %v4398_v59  ;;  %2656 = vmatprep.subr.bf16.mxu1 %v4403_v63 }
 0xd83   :  { %2616 = vmatpush1.bf16.msra.mxu0 %v4410_v62  ;;  %2657 = vmatpush1.bf16.msra.mxu1 %v4415_v60 }
 0xd84   :  { %2617 = vmatprep.subr.bf16.mxu0 %v4422_v1  ;;  %2658 = vmatprep.subr.bf16.mxu1 %v4427_v38 }
 0xd87   :  { %2618 = vmatpush1.bf16.msra.mxu0 %v4434_v39  ;;  %2659 = vmatpush1.bf16.msra.mxu1 %v4439_v40 }
 0xd88   :  { %2619 = vmatprep.subr.bf16.mxu0 %v4446_v41  ;;  %2660 = vmatprep.subr.bf16.mxu1 %v4451_v42 }
 0xd8b   :  { %2620 = vmatpush1.bf16.msra.mxu0 %v4458_v43  ;;  %2661 = vmatpush1.bf16.msra.mxu1 %v4463_v44 }
 0xd8c   :  { %2621 = vmatprep.subr.bf16.mxu0 %v4470_v32  ;;  %2662 = vmatprep.subr.bf16.mxu1 %v4475_v47 }
 0xd8f   :  { %2622 = vmatpush1.bf16.msra.mxu0 %v4482_v48  ;;  %2663 = vmatpush1.bf16.msra.mxu1 %v4487_v49 }
 0xd90   :  { %3011 = vmatprep.subr.bf16.mxu0 %v3184_v0 }
 0xe32   :  { %v2534_v2 = vpop.f32.mrf.mxu0  ;;  %v2575_v56 = vpop.f32.mrf.mxu1 }
 0xe33   :  { %v2582_v20 = vadd.f32 %v2534_v2, %v4538_v18  ;;  %v2584_v39 = vadd.f32 %v2575_v56, %v4546_v19 }
 0xe34   :  { %v2536_v30 = vpop.f32.mrf.mxu0  ;;  %v2577_v57 = vpop.f32.mrf.mxu1 }
 0xe35   :  { %v2586_v7 = vmul.f32 0.5, %v2582_v20  ;;  %v2583_v59 = vadd.f32 %v2536_v30, %v4542_v28  ;;  %v2585_v40 = vadd.f32 %v2577_v57, %v4551_v10 }
 0xe36   :  { %v2538_v63 = vpop.f32.mrf.mxu0  ;;  %v2579_v62 = vpop.f32.mrf.mxu1 }
 0xe37   :  { %3332 = vtanh.f32 %v2586_v7  ;;  %v2590_v60 = vmul.f32 0.5, %v2583_v59  ;;  %v2595_v41 = vmul.f32 0.5, %v2585_v40 }
 0xe38   :  { %v2539_v1 = vpop.f32.mrf.mxu0  ;;  %v2580_v38 = vpop.f32.mrf.mxu1 }
 0xe39   :  { %3334 = vtanh.f32 %v2590_v60 }
 0xe3a   :  { %3336 = vtanh.f32 %v2584_v39 }
 0xe3b   :  { %3338 = vtanh.f32 %v2595_v41 }
 0xe44   :  { %v3333_v42 = vpop.eup %3332 }
 0xe45   :  { %v2588_v43 = vmul.f32 0.5, %v3333_v42 }
 0xe46   :  { %v3335_v44 = vpop.eup %3334 }
 0xe47   :  { %v2589_v32 = vadd.f32 0.5, %v2588_v43  ;;  %v2592_v47 = vmul.f32 0.5, %v3335_v44  ;;  %v3337_v49 = vpop.eup %3336 }
 0xe48   :  { %v3339_v6 = vpop.eup %3338 }
 0xe49   :  { %v2593_v48 = vadd.f32 0.5, %v2592_v47  ;;  %v2600_v22 = vmul.f32 %v3337_v49, %v2589_v32  ;;  %v2597_v34 = vmul.f32 0.5, %v3339_v6 }
 0xe4b   :  { %v2599_v26 = vmul.f32 %v2593_v48, %v4788_v52  ;;  %v2598_v35 = vadd.f32 0.5, %v2597_v34 }
 0xe4d   :  { %v4851_v23 = vadd.f32 %v2600_v22, %v2599_v26 }
 0xe4f   :  { %3340 = vtanh.f32 %v4851_v23 }
 0xe5c   :  { %v3341_v45 = vpop.eup %3340 }
 0xe5d   :  { %v4854_v46 = vmul.f32 %v3341_v45, %v2598_v35 }
 0xe5f   :  { %v2606_v50 = vpack.c.bf16 %v4854_v46, %v4854_v46 }
 0xe61   :  { %2640 = vmatmul.mubr.bf16.vlgmr.msra.gmra.mxu0 %v2606_v50  ;;  %2681 = vmatmul.mubr.bf16.vlgmr.msra.gmra.mxu1 %v2606_v50 }
 0xe62   :  { %3012 = vmatpush3.bf16.msra.mxu0 %v3184_v0  ;;  %3027 = vmatprep.mubr.bf16.mxu0 %v2721_v14 }
 0xe63   :  { %3013 = vmatprep.subr.bf16.mxu0 %v3185_v51 }
 0xe66   :  { %3014 = vmatpush3.bf16.msra.mxu0 %v3185_v51 }
 0xe67   :  { %3015 = vmatprep.subr.bf16.mxu0 %v3186_v33 }
 0xe6a   :  { %3016 = vmatpush3.bf16.msra.mxu0 %v3186_v33 }
 0xe6b   :  { %3017 = vmatprep.subr.bf16.mxu0 %v3187_v37 }
 0xe6e   :  { %3018 = vmatpush3.bf16.msra.mxu0 %v3187_v37 }
 0xe6f   :  { %3019 = vmatprep.subr.bf16.mxu0 %v3188_v12 }
 0xe72   :  { %3020 = vmatpush3.bf16.msra.mxu0 %v3188_v12 }
 0xe73   :  { %3021 = vmatprep.subr.bf16.mxu0 %v3189_v31 }
 0xe76   :  { %3022 = vmatpush3.bf16.msra.mxu0 %v3189_v31 }
 0xe77   :  { %3023 = vmatprep.subr.bf16.mxu0 %v3190_v9 }
 0xe7a   :  { %3024 = vmatpush3.bf16.msra.mxu0 %v3190_v9 }
 0xe7b   :  { %3025 = vmatprep.subr.bf16.mxu0 %v3191_v8 }
 0xe7e   :  { %3026 = vmatpush3.bf16.msra.mxu0 %v3191_v8 }
 0xe81   :  { %3028 = vmatmul.mubr.bf16.vlgmr.msra.gmra.mxu0 %v2722_v16 }
 0xe82   :  { %3031 = vmatprep.mubr.bf16.mxu0 %v2723_v27 }
 0xf21   :  { %v2641_v52 = vpop.f32.mrf.mxu0  ;;  %v2682_v61 = vpop.f32.mrf.mxu1 }
 0xf22   :  { %v2689_v53 = vadd.f32 %v2641_v52, %v4538_v18  ;;  %v2691_v21 = vadd.f32 %v2682_v61, %v4546_v19  ;;  %v2990_v19 = vld [vmem:[%s4926_s8] ss:$0 sm:$0xff] }
 0xf23   :  { %v2643_v29 = vpop.f32.mrf.mxu0  ;;  %v2684_v58 = vpop.f32.mrf.mxu1 }
 0xf24   :  { %v2693_v3 = vmul.f32 0.5, %v2689_v53  ;;  %v2690_v11 = vadd.f32 %v2643_v29, %v4542_v28  ;;  %v2692_v4 = vadd.f32 %v2684_v58, %v4551_v10 }
 0xf25   :  { %v2645_v25 = vpop.f32.mrf.mxu0  ;;  %v2686_v13 = vpop.f32.mrf.mxu1 }
 0xf26   :  { %3342 = vtanh.f32 %v2693_v3  ;;  %v2697_v17 = vmul.f32 0.5, %v2690_v11  ;;  %v2702_v15 = vmul.f32 0.5, %v2692_v4 }
 0xf27   :  { %v2646_v55 = vpop.f32.mrf.mxu0  ;;  %v2687_v36 = vpop.f32.mrf.mxu1 }
 0xf28   :  { %3344 = vtanh.f32 %v2697_v17 }
 0xf29   :  { %3346 = vtanh.f32 %v2691_v21 }
 0xf2a   :  { %3348 = vtanh.f32 %v2702_v15 }
 0xf33   :  { %v3343_v54 = vpop.eup %3342 }
 0xf34   :  { %v2695_v18 = vmul.f32 0.5, %v3343_v54 }
 0xf35   :  { %v3345_v5 = vpop.eup %3344 }
 0xf36   :  { %v2696_v24 = vadd.f32 0.5, %v2695_v18  ;;  %v2699_v0 = vmul.f32 0.5, %v3345_v5  ;;  %v3347_v2 = vpop.eup %3346 }
 0xf37   :  { %v3349_v7 = vpop.eup %3348 }
 0xf38   :  { %v2700_v28 = vadd.f32 0.5, %v2699_v0  ;;  %v2707_v20 = vmul.f32 %v3347_v2, %v2696_v24  ;;  %v2704_v60 = vmul.f32 0.5, %v3349_v7 }
 0xf3a   :  { %v2706_v56 = vmul.f32 %v2700_v28, %v4851_v23  ;;  %v2705_v40 = vadd.f32 0.5, %v2704_v60 }
 0xf3c   :  { %v2708_v30 = vadd.f32 %v2707_v20, %v2706_v56 }
 0xf3e   :  { %3350 = vtanh.f32 %v2708_v30 }
 0xf41   :  { %v3029_v57 = vpop.f32.mrf.mxu0 }
 0xf42   :  { %v2839_v10 = vadd.f32 %v3029_v57, %v2990_v19 }
 0xf43   :  { %v2830_v59 = vpop.f32.mrf.mxu0 }
 0xf44   :  { %2863 = vst [vmem:[%s4927_s9 + $0x10] sm:$0xff] %v2839_v10  ;;  %v2831_v63 = vadd.f32 %v2990_v19, %v2830_v59 }
 0xf45   :  { %v3030_v62 = vpop.f32.mrf.mxu0 }
 0xf46   :  { %2861 = vst [vmem:[%s4927_s9] sm:$0xff] %v2831_v63  ;;  %v2842_v1 = vadd.f32 %v3030_v62, %v2990_v19 }
 0xf47   :  { %v2833_v38 = vpop.f32.mrf.mxu0 }
 0xf48   :  { %2864 = vst [vmem:[%s4927_s9 + $0x18] sm:$0xff] %v2842_v1  ;;  %v2834_v39 = vadd.f32 %v2990_v19, %v2833_v38 }
 0xf4a   :  { %2862 = vst [vmem:[%s4927_s9 + $0x8] sm:$0xff] %v2834_v39 }
 0xf4b   :  { %v3351_v41 = vpop.eup %3350 }
 0xf4c   :  { %v2710_v42 = vmul.f32 %v3351_v41, %v2705_v40 }
 0xf4e   :  { %v2724_v43 = vpack.c.bf16 %v2710_v42, %v4854_v46 }
 0xf50   :  { %3032 = vmatmul.mubr.bf16.gmra.mxu0 %v2724_v43 }
0x1010   :  { %v3033_v44 = vpop.f32.mrf.mxu0 }
0x1011   :  { %v2855_v32 = vadd.f32 %v3033_v44, %v2990_v19 }
0x1012   :  { %v2846_v47 = vpop.f32.mrf.mxu0 }
0x1013   :  { %2867 = vst [vmem:[%s4927_s9 + $0x30] sm:$0xff] %v2855_v32  ;;  %v2847_v48 = vadd.f32 %v2990_v19, %v2846_v47 }
0x1014   :  { %v3034_v49 = vpop.f32.mrf.mxu0 }
0x1015   :  { %2865 = vst [vmem:[%s4927_s9 + $0x20] sm:$0xff] %v2847_v48  ;;  %v2858_v26 = vadd.f32 %v3034_v49, %v2990_v19 }
0x1016   :  { %v2849_v22 = vpop.f32.mrf.mxu0 }
0x1017   :  { %2868 = vst [vmem:[%s4927_s9 + $0x38] sm:$0xff] %v2858_v26  ;;  %v2850_v23 = vadd.f32 %v2990_v19, %v2849_v22 }
0x1019   :  { %2866 = vst [vmem:[%s4927_s9 + $0x28] sm:$0xff] %v2850_v23 }

</bundles_post_ra>
